<compile_context>
chip_gen: v5e
topology: v5e:2x2
jax: 0.10.0
libtpu: 0.0.40
codegen_flags: <defaults>
</compile_context>

<pallas_src>
import jax
import jax.numpy as jnp
from jax.experimental import pallas as pl
from jax.experimental.pallas import tpu as pltpu

IN_DIM = 2145 * 2                 # 4290
PAD_DIM = 4352                    # 34 * 128  (lane-dense padding of 4290)
P_DROP = 0.2
_KEEP_SCALE = 1.0 / (1.0 - P_DROP)
_DROP_THRESHOLD = int(round(P_DROP * (1 << 32)))   # drop iff hash_bits < threshold

# murmur3 fmix32 constants / per-layer salts (plain ints; wrapped in-kernel)
_M1 = 0x85EBCA6B
_M2 = 0xC2B2AE35
_SALT0 = 0x9E3779B9
_SALT1 = 0x7F4A7C15
_SALT2 = 0x94D049BB


def _mix_u32(x):
    """murmur3 finalizer — cheap per-element integer hash (VPU only)."""
    x = x ^ (x >> jnp.uint32(16))
    x = x * jnp.uint32(_M1)
    x = x ^ (x >> jnp.uint32(13))
    x = x * jnp.uint32(_M2)
    x = x ^ (x >> jnp.uint32(16))
    return x


def _dropout(h, seed_u32, row0_i32):
    """F.dropout(p=0.2, training=True): zero with prob p, scale survivors by 1/(1-p)."""
    rows, cols = h.shape
    r = jax.lax.broadcasted_iota(jnp.int32, (rows, cols), 0)
    c = jax.lax.broadcasted_iota(jnp.int32, (rows, cols), 1)
    idx = ((row0_i32 + r) * cols + c).astype(jnp.uint32)      # unique per element
    bits = _mix_u32(idx ^ seed_u32)
    keep = bits >= jnp.uint32(_DROP_THRESHOLD)                # integer-threshold compare
    return jnp.where(keep, h * jnp.float32(_KEEP_SCALE), 0.0)


def nn_kernel(seed_ref,                    # SMEM (1,) int32
              x_ref,                       # VMEM (TB, 4352)  bf16
              w0_ref, b0_ref,              # (4352, E) bf16, (1, E)   f32
              w1_ref, b1_ref,              # (E, 2E)   bf16, (1, 2E)  f32
              w2_ref, b2_ref,              # (2E, 4E)  bf16, (1, 4E)  f32
              w3_ref, b3_ref,              # (4E,4352) bf16, (1,4352) f32
              out_ref):                    # VMEM (TB, 4352)  f32
    seed = seed_ref[0].astype(jnp.uint32)
    tb = x_ref.shape[0]
    row0 = pl.program_id(0) * tb           # salt per batch tile (distinct masks)

    # layer 0: bf16 operands on the MXU, f32 accumulate
    h = jnp.dot(x_ref[...], w0_ref[...], preferred_element_type=jnp.float32)
    h = jnp.tanh(h + b0_ref[...])
    h = _dropout(h, _mix_u32(seed ^ jnp.uint32(_SALT0)), row0)

    h = jnp.dot(h.astype(jnp.bfloat16), w1_ref[...], preferred_element_type=jnp.float32)
    h = jnp.tanh(h + b1_ref[...])
    h = _dropout(h, _mix_u32(seed ^ jnp.uint32(_SALT1)), row0)

    h = jnp.dot(h.astype(jnp.bfloat16), w2_ref[...], preferred_element_type=jnp.float32)
    h = jnp.tanh(h + b2_ref[...])
    h = _dropout(h, _mix_u32(seed ^ jnp.uint32(_SALT2)), row0)

    out = jnp.dot(h.astype(jnp.bfloat16), w3_ref[...], preferred_element_type=jnp.float32)
    out_ref[...] = out + b3_ref[...]


def _round_up(x, m):
    return ((x + m - 1) // m) * m


def init_params(key, embedding_size):
    """PyTorch-style Linear init: U(-1/sqrt(fan_in), 1/sqrt(fan_in)), stored (in, out)."""
    dims = [(IN_DIM, embedding_size),
            (embedding_size, 2 * embedding_size),
            (2 * embedding_size, 4 * embedding_size),
            (4 * embedding_size, IN_DIM)]
    params = []
    for fan_in, fan_out in dims:
        key, kw, kb = jax.random.split(key, 3)
        bound = 1.0 / float(fan_in) ** 0.5
        w = jax.random.uniform(kw, (fan_in, fan_out), jnp.float32, -bound, bound)
        b = jax.random.uniform(kb, (1, fan_out), jnp.float32, -bound, bound)
        params.append((w, b))
    return params


def prepare_params(params):
    """Pad ragged 4290 dims to 4352 (zeros) and cast weights to bf16 for MXU streaming."""
    (w0, b0), (w1, b1), (w2, b2), (w3, b3) = params
    E = w0.shape[1]
    w0p = jnp.zeros((PAD_DIM, E), jnp.float32).at[:IN_DIM, :].set(w0)
    w3p = jnp.zeros((w3.shape[0], PAD_DIM), jnp.float32).at[:, :IN_DIM].set(w3)
    b3p = jnp.zeros((1, PAD_DIM), jnp.float32).at[:, :IN_DIM].set(b3)
    bf = lambda w: w.astype(jnp.bfloat16)
    return [(bf(w0p), b0), (bf(w1), b1), (bf(w2), b2), (bf(w3p), b3p)]


def nn_forward(x, prepared_params, seed: int):
    """x: (B, 4290) float32 -> (B, 4290) float32."""
    B = x.shape[0]

    # Batch tiling: TB rows per grid step (sublane-aligned), weights stay resident.
    B8 = _round_up(B, 8)
    TB = min(128, B8)
    B_pad = _round_up(B8, TB)
    grid = (B_pad // TB,)

    x_p = jnp.zeros((B_pad, PAD_DIM), jnp.bfloat16)
    x_p = x_p.at[:B, :IN_DIM].set(x.astype(jnp.bfloat16))

    seed_arr = jnp.asarray([seed], dtype=jnp.int32)

    flat = []
    for w, b in prepared_params:
        flat.extend([w, b])

    def resident(shape):
        return pl.BlockSpec(shape, lambda i: (0, 0))

    in_specs = [
        pl.BlockSpec(memory_space=pltpu.MemorySpace.SMEM),      # seed scalar
        pl.BlockSpec((TB, PAD_DIM), lambda i: (i, 0)),          # x tile
    ] + [resident(a.shape) for a in flat]                       # resident weights/biases
    out_specs = pl.BlockSpec((TB, PAD_DIM), lambda i: (i, 0))

    # Explicit VMEM budget: resident weights/biases + double-buffered act tiles.
    wb_bytes = sum(a.size * a.dtype.itemsize for a in flat)
    act_bytes = 2 * TB * PAD_DIM * 2 + 2 * TB * PAD_DIM * 4    # x (bf16) + out (f32), 2 bufs
    vmem_limit = min(64 << 20, max(32 << 20, int(1.5 * (wb_bytes + act_bytes)) + (4 << 20)))

    out_p = pl.pallas_call(
        nn_kernel,
        out_shape=jax.ShapeDtypeStruct((B_pad, PAD_DIM), jnp.float32),
        grid=grid,
        in_specs=in_specs,
        out_specs=out_specs,
        compiler_params=pltpu.CompilerParams(
            dimension_semantics=("parallel",),
            vmem_limit_bytes=vmem_limit),
    )(seed_arr, x_p, *flat)

    return out_p[:B, :IN_DIM]


if __name__ == "__main__":
    key = jax.random.PRNGKey(0)
    k_params, k_x = jax.random.split(key)

    embedding_size = 32          # small test config
    batch = 8

    params = init_params(k_params, embedding_size)
    prepared = prepare_params(params)
    x = jax.random.normal(k_x, (batch, IN_DIM), dtype=jnp.float32)

    out = nn_forward(x, prepared, seed=1234)
    out = jax.block_until_ready(out)

    assert out.shape == (batch, IN_DIM), out.shape
    assert bool(jnp.all(jnp.isfinite(out)))
    print("KERNEL_OK")
</pallas_src>

<mosaic_0001>
module attributes {stable_mosaic.version = 11 : i64} {
  func.func @nn_kernel(%arg0: i32, %arg1: memref<1xi32, #tpu.memory_space<smem>>, %arg2: memref<8x4352xbf16, #tpu.memory_space<vmem>>, %arg3: memref<4352x32xbf16, #tpu.memory_space<vmem>>, %arg4: memref<1x32xf32, #tpu.memory_space<vmem>>, %arg5: memref<32x64xbf16, #tpu.memory_space<vmem>>, %arg6: memref<1x64xf32, #tpu.memory_space<vmem>>, %arg7: memref<64x128xbf16, #tpu.memory_space<vmem>>, %arg8: memref<1x128xf32, #tpu.memory_space<vmem>>, %arg9: memref<128x4352xbf16, #tpu.memory_space<vmem>>, %arg10: memref<1x4352xf32, #tpu.memory_space<vmem>>, %arg11: memref<8x4352xf32, #tpu.memory_space<vmem>>) attributes {dimension_semantics = [#tpu.dimension_semantics<parallel>], iteration_bounds = array<i64: 1>, scalar_prefetch = 0 : i64, scratch_operands = 0 : i64, tpu.core_type = #tpu.core_type<tc>, window_params = [{transform_indices = @transform_0, window_bounds = array<i64: 1>}, {transform_indices = @transform_1, window_bounds = array<i64: 8, 4352>}, {pipeline_mode = #tpu.pipeline_mode<synchronous>, transform_indices = @transform_2, window_bounds = array<i64: 4352, 32>}, {pipeline_mode = #tpu.pipeline_mode<synchronous>, transform_indices = @transform_3, window_bounds = array<i64: 1, 32>}, {pipeline_mode = #tpu.pipeline_mode<synchronous>, transform_indices = @transform_4, window_bounds = array<i64: 32, 64>}, {pipeline_mode = #tpu.pipeline_mode<synchronous>, transform_indices = @transform_5, window_bounds = array<i64: 1, 64>}, {pipeline_mode = #tpu.pipeline_mode<synchronous>, transform_indices = @transform_6, window_bounds = array<i64: 64, 128>}, {pipeline_mode = #tpu.pipeline_mode<synchronous>, transform_indices = @transform_7, window_bounds = array<i64: 1, 128>}, {pipeline_mode = #tpu.pipeline_mode<synchronous>, transform_indices = @transform_8, window_bounds = array<i64: 128, 4352>}, {pipeline_mode = #tpu.pipeline_mode<synchronous>, transform_indices = @transform_9, window_bounds = array<i64: 1, 4352>}, {transform_indices = @transform_10, window_bounds = array<i64: 8, 4352>}]} {
    %c0 = arith.constant 0 : index
    %0 = memref.load %arg1[%c0] : memref<1xi32, #tpu.memory_space<smem>>
    %c8_i32 = arith.constant 8 : i32
    %1 = arith.muli %arg0, %c8_i32 : i32
    %c0_0 = arith.constant 0 : index
    %c0_1 = arith.constant 0 : index
    %2 = vector.load %arg2[%c0_0, %c0_1] : memref<8x4352xbf16, #tpu.memory_space<vmem>>, vector<8x4352xbf16>
    %c0_2 = arith.constant 0 : index
    %c0_3 = arith.constant 0 : index
    %3 = vector.load %arg3[%c0_2, %c0_3] : memref<4352x32xbf16, #tpu.memory_space<vmem>>, vector<4352x32xbf16>
    %cst = arith.constant dense<0.000000e+00> : vector<8x32xf32>
    %4 = tpu.matmul %2, %3, %cst {dimension_numbers = #tpu.dot_dimension_numbers<[1], [0], [0], [1], [0, 0, 1, 1], [], []>} : vector<8x4352xbf16>, vector<4352x32xbf16>, vector<8x32xf32> -> vector<8x32xf32>
    %c0_4 = arith.constant 0 : index
    %c0_5 = arith.constant 0 : index
    %5 = vector.load %arg4[%c0_4, %c0_5] : memref<1x32xf32, #tpu.memory_space<vmem>>, vector<1x32xf32>
    %6 = vector.broadcast %5 : vector<1x32xf32> to vector<8x32xf32>
    %7 = arith.addf %4, %6 : vector<8x32xf32>
    %8 = math.tanh %7 : vector<8x32xf32>
    %c-1640531527_i32 = arith.constant -1640531527 : i32
    %9 = arith.xori %0, %c-1640531527_i32 : i32
    %c16_i32 = arith.constant 16 : i32
    %10 = arith.shrui %9, %c16_i32 : i32
    %11 = arith.xori %9, %10 : i32
    %c-2048144789_i32 = arith.constant -2048144789 : i32
    %12 = arith.muli %11, %c-2048144789_i32 : i32
    %c13_i32 = arith.constant 13 : i32
    %13 = arith.shrui %12, %c13_i32 : i32
    %14 = arith.xori %12, %13 : i32
    %c-1028477387_i32 = arith.constant -1028477387 : i32
    %15 = arith.muli %14, %c-1028477387_i32 : i32
    %c16_i32_6 = arith.constant 16 : i32
    %16 = arith.shrui %15, %c16_i32_6 : i32
    %17 = arith.xori %15, %16 : i32
    %18 = tpu.iota {dimensions = array<i32: 0>} : vector<8x32xi32>
    %19 = tpu.iota {dimensions = array<i32: 1>} : vector<8x32xi32>
    %20 = vector.broadcast %1 : i32 to vector<8x32xi32>
    %21 = arith.addi %20, %18 : vector<8x32xi32>
    %c32_i32 = arith.constant 32 : i32
    %22 = vector.broadcast %c32_i32 : i32 to vector<8x32xi32>
    %23 = arith.muli %21, %22 : vector<8x32xi32>
    %24 = arith.addi %23, %19 : vector<8x32xi32>
    %25 = vector.broadcast %17 : i32 to vector<8x32xi32>
    %26 = arith.xori %24, %25 : vector<8x32xi32>
    %c16_i32_7 = arith.constant 16 : i32
    %27 = vector.broadcast %c16_i32_7 : i32 to vector<8x32xi32>
    %28 = arith.shrui %26, %27 : vector<8x32xi32>
    %29 = arith.xori %26, %28 : vector<8x32xi32>
    %c-2048144789_i32_8 = arith.constant -2048144789 : i32
    %30 = vector.broadcast %c-2048144789_i32_8 : i32 to vector<8x32xi32>
    %31 = arith.muli %29, %30 : vector<8x32xi32>
    %c13_i32_9 = arith.constant 13 : i32
    %32 = vector.broadcast %c13_i32_9 : i32 to vector<8x32xi32>
    %33 = arith.shrui %31, %32 : vector<8x32xi32>
    %34 = arith.xori %31, %33 : vector<8x32xi32>
    %c-1028477387_i32_10 = arith.constant -1028477387 : i32
    %35 = vector.broadcast %c-1028477387_i32_10 : i32 to vector<8x32xi32>
    %36 = arith.muli %34, %35 : vector<8x32xi32>
    %c16_i32_11 = arith.constant 16 : i32
    %37 = vector.broadcast %c16_i32_11 : i32 to vector<8x32xi32>
    %38 = arith.shrui %36, %37 : vector<8x32xi32>
    %39 = arith.xori %36, %38 : vector<8x32xi32>
    %c858993459_i32 = arith.constant 858993459 : i32
    %40 = vector.broadcast %c858993459_i32 : i32 to vector<8x32xi32>
    %41 = arith.cmpi uge, %39, %40 : vector<8x32xi32>
    %cst_12 = arith.constant 1.250000e+00 : f32
    %42 = vector.broadcast %cst_12 : f32 to vector<8x32xf32>
    %43 = arith.mulf %8, %42 : vector<8x32xf32>
    %cst_13 = arith.constant 0.000000e+00 : f32
    %44 = vector.broadcast %cst_13 : f32 to vector<8x32xf32>
    %45 = arith.select %41, %43, %44 : vector<8x32xi1>, vector<8x32xf32>
    %46 = arith.truncf %45 : vector<8x32xf32> to vector<8x32xbf16>
    %c0_14 = arith.constant 0 : index
    %c0_15 = arith.constant 0 : index
    %47 = vector.load %arg5[%c0_14, %c0_15] : memref<32x64xbf16, #tpu.memory_space<vmem>>, vector<32x64xbf16>
    %cst_16 = arith.constant dense<0.000000e+00> : vector<8x64xf32>
    %48 = tpu.matmul %46, %47, %cst_16 {dimension_numbers = #tpu.dot_dimension_numbers<[1], [0], [0], [1], [0, 0, 1, 1], [], []>} : vector<8x32xbf16>, vector<32x64xbf16>, vector<8x64xf32> -> vector<8x64xf32>
    %c0_17 = arith.constant 0 : index
    %c0_18 = arith.constant 0 : index
    %49 = vector.load %arg6[%c0_17, %c0_18] : memref<1x64xf32, #tpu.memory_space<vmem>>, vector<1x64xf32>
    %50 = vector.broadcast %49 : vector<1x64xf32> to vector<8x64xf32>
    %51 = arith.addf %48, %50 : vector<8x64xf32>
    %52 = math.tanh %51 : vector<8x64xf32>
    %c2135587861_i32 = arith.constant 2135587861 : i32
    %53 = arith.xori %0, %c2135587861_i32 : i32
    %c16_i32_19 = arith.constant 16 : i32
    %54 = arith.shrui %53, %c16_i32_19 : i32
    %55 = arith.xori %53, %54 : i32
    %c-2048144789_i32_20 = arith.constant -2048144789 : i32
    %56 = arith.muli %55, %c-2048144789_i32_20 : i32
    %c13_i32_21 = arith.constant 13 : i32
    %57 = arith.shrui %56, %c13_i32_21 : i32
    %58 = arith.xori %56, %57 : i32
    %c-1028477387_i32_22 = arith.constant -1028477387 : i32
    %59 = arith.muli %58, %c-1028477387_i32_22 : i32
    %c16_i32_23 = arith.constant 16 : i32
    %60 = arith.shrui %59, %c16_i32_23 : i32
    %61 = arith.xori %59, %60 : i32
    %62 = tpu.iota {dimensions = array<i32: 0>} : vector<8x64xi32>
    %63 = tpu.iota {dimensions = array<i32: 1>} : vector<8x64xi32>
    %64 = vector.broadcast %1 : i32 to vector<8x64xi32>
    %65 = arith.addi %64, %62 : vector<8x64xi32>
    %c64_i32 = arith.constant 64 : i32
    %66 = vector.broadcast %c64_i32 : i32 to vector<8x64xi32>
    %67 = arith.muli %65, %66 : vector<8x64xi32>
    %68 = arith.addi %67, %63 : vector<8x64xi32>
    %69 = vector.broadcast %61 : i32 to vector<8x64xi32>
    %70 = arith.xori %68, %69 : vector<8x64xi32>
    %c16_i32_24 = arith.constant 16 : i32
    %71 = vector.broadcast %c16_i32_24 : i32 to vector<8x64xi32>
    %72 = arith.shrui %70, %71 : vector<8x64xi32>
    %73 = arith.xori %70, %72 : vector<8x64xi32>
    %c-2048144789_i32_25 = arith.constant -2048144789 : i32
    %74 = vector.broadcast %c-2048144789_i32_25 : i32 to vector<8x64xi32>
    %75 = arith.muli %73, %74 : vector<8x64xi32>
    %c13_i32_26 = arith.constant 13 : i32
    %76 = vector.broadcast %c13_i32_26 : i32 to vector<8x64xi32>
    %77 = arith.shrui %75, %76 : vector<8x64xi32>
    %78 = arith.xori %75, %77 : vector<8x64xi32>
    %c-1028477387_i32_27 = arith.constant -1028477387 : i32
    %79 = vector.broadcast %c-1028477387_i32_27 : i32 to vector<8x64xi32>
    %80 = arith.muli %78, %79 : vector<8x64xi32>
    %c16_i32_28 = arith.constant 16 : i32
    %81 = vector.broadcast %c16_i32_28 : i32 to vector<8x64xi32>
    %82 = arith.shrui %80, %81 : vector<8x64xi32>
    %83 = arith.xori %80, %82 : vector<8x64xi32>
    %c858993459_i32_29 = arith.constant 858993459 : i32
    %84 = vector.broadcast %c858993459_i32_29 : i32 to vector<8x64xi32>
    %85 = arith.cmpi uge, %83, %84 : vector<8x64xi32>
    %cst_30 = arith.constant 1.250000e+00 : f32
    %86 = vector.broadcast %cst_30 : f32 to vector<8x64xf32>
    %87 = arith.mulf %52, %86 : vector<8x64xf32>
    %cst_31 = arith.constant 0.000000e+00 : f32
    %88 = vector.broadcast %cst_31 : f32 to vector<8x64xf32>
    %89 = arith.select %85, %87, %88 : vector<8x64xi1>, vector<8x64xf32>
    %90 = arith.truncf %89 : vector<8x64xf32> to vector<8x64xbf16>
    %c0_32 = arith.constant 0 : index
    %c0_33 = arith.constant 0 : index
    %91 = vector.load %arg7[%c0_32, %c0_33] : memref<64x128xbf16, #tpu.memory_space<vmem>>, vector<64x128xbf16>
    %cst_34 = arith.constant dense<0.000000e+00> : vector<8x128xf32>
    %92 = tpu.matmul %90, %91, %cst_34 {dimension_numbers = #tpu.dot_dimension_numbers<[1], [0], [0], [1], [0, 0, 1, 1], [], []>} : vector<8x64xbf16>, vector<64x128xbf16>, vector<8x128xf32> -> vector<8x128xf32>
    %c0_35 = arith.constant 0 : index
    %c0_36 = arith.constant 0 : index
    %93 = vector.load %arg8[%c0_35, %c0_36] : memref<1x128xf32, #tpu.memory_space<vmem>>, vector<1x128xf32>
    %94 = vector.broadcast %93 : vector<1x128xf32> to vector<8x128xf32>
    %95 = arith.addf %92, %94 : vector<8x128xf32>
    %96 = math.tanh %95 : vector<8x128xf32>
    %c-1798288965_i32 = arith.constant -1798288965 : i32
    %97 = arith.xori %0, %c-1798288965_i32 : i32
    %c16_i32_37 = arith.constant 16 : i32
    %98 = arith.shrui %97, %c16_i32_37 : i32
    %99 = arith.xori %97, %98 : i32
    %c-2048144789_i32_38 = arith.constant -2048144789 : i32
    %100 = arith.muli %99, %c-2048144789_i32_38 : i32
    %c13_i32_39 = arith.constant 13 : i32
    %101 = arith.shrui %100, %c13_i32_39 : i32
    %102 = arith.xori %100, %101 : i32
    %c-1028477387_i32_40 = arith.constant -1028477387 : i32
    %103 = arith.muli %102, %c-1028477387_i32_40 : i32
    %c16_i32_41 = arith.constant 16 : i32
    %104 = arith.shrui %103, %c16_i32_41 : i32
    %105 = arith.xori %103, %104 : i32
    %106 = tpu.iota {dimensions = array<i32: 0>} : vector<8x128xi32>
    %107 = tpu.iota {dimensions = array<i32: 1>} : vector<8x128xi32>
    %108 = vector.broadcast %1 : i32 to vector<8x128xi32>
    %109 = arith.addi %108, %106 : vector<8x128xi32>
    %c128_i32 = arith.constant 128 : i32
    %110 = vector.broadcast %c128_i32 : i32 to vector<8x128xi32>
    %111 = arith.muli %109, %110 : vector<8x128xi32>
    %112 = arith.addi %111, %107 : vector<8x128xi32>
    %113 = vector.broadcast %105 : i32 to vector<8x128xi32>
    %114 = arith.xori %112, %113 : vector<8x128xi32>
    %c16_i32_42 = arith.constant 16 : i32
    %115 = vector.broadcast %c16_i32_42 : i32 to vector<8x128xi32>
    %116 = arith.shrui %114, %115 : vector<8x128xi32>
    %117 = arith.xori %114, %116 : vector<8x128xi32>
    %c-2048144789_i32_43 = arith.constant -2048144789 : i32
    %118 = vector.broadcast %c-2048144789_i32_43 : i32 to vector<8x128xi32>
    %119 = arith.muli %117, %118 : vector<8x128xi32>
    %c13_i32_44 = arith.constant 13 : i32
    %120 = vector.broadcast %c13_i32_44 : i32 to vector<8x128xi32>
    %121 = arith.shrui %119, %120 : vector<8x128xi32>
    %122 = arith.xori %119, %121 : vector<8x128xi32>
    %c-1028477387_i32_45 = arith.constant -1028477387 : i32
    %123 = vector.broadcast %c-1028477387_i32_45 : i32 to vector<8x128xi32>
    %124 = arith.muli %122, %123 : vector<8x128xi32>
    %c16_i32_46 = arith.constant 16 : i32
    %125 = vector.broadcast %c16_i32_46 : i32 to vector<8x128xi32>
    %126 = arith.shrui %124, %125 : vector<8x128xi32>
    %127 = arith.xori %124, %126 : vector<8x128xi32>
    %c858993459_i32_47 = arith.constant 858993459 : i32
    %128 = vector.broadcast %c858993459_i32_47 : i32 to vector<8x128xi32>
    %129 = arith.cmpi uge, %127, %128 : vector<8x128xi32>
    %cst_48 = arith.constant 1.250000e+00 : f32
    %130 = vector.broadcast %cst_48 : f32 to vector<8x128xf32>
    %131 = arith.mulf %96, %130 : vector<8x128xf32>
    %cst_49 = arith.constant 0.000000e+00 : f32
    %132 = vector.broadcast %cst_49 : f32 to vector<8x128xf32>
    %133 = arith.select %129, %131, %132 : vector<8x128xi1>, vector<8x128xf32>
    %134 = arith.truncf %133 : vector<8x128xf32> to vector<8x128xbf16>
    %c0_50 = arith.constant 0 : index
    %c0_51 = arith.constant 0 : index
    %135 = vector.load %arg9[%c0_50, %c0_51] : memref<128x4352xbf16, #tpu.memory_space<vmem>>, vector<128x4352xbf16>
    %cst_52 = arith.constant dense<0.000000e+00> : vector<8x4352xf32>
    %136 = tpu.matmul %134, %135, %cst_52 {dimension_numbers = #tpu.dot_dimension_numbers<[1], [0], [0], [1], [0, 0, 1, 1], [], []>} : vector<8x128xbf16>, vector<128x4352xbf16>, vector<8x4352xf32> -> vector<8x4352xf32>
    %c0_53 = arith.constant 0 : index
    %c0_54 = arith.constant 0 : index
    %137 = vector.load %arg10[%c0_53, %c0_54] : memref<1x4352xf32, #tpu.memory_space<vmem>>, vector<1x4352xf32>
    %138 = vector.broadcast %137 : vector<1x4352xf32> to vector<8x4352xf32>
    %139 = arith.addf %136, %138 : vector<8x4352xf32>
    %c0_55 = arith.constant 0 : index
    %c0_56 = arith.constant 0 : index
    %140 = vector.load %arg11[%c0_55, %c0_56] : memref<8x4352xf32, #tpu.memory_space<vmem>>, vector<8x4352xf32>
    tpu.vector_store %arg11[%c0_55, %c0_56], %139 {strides = array<i32>} : memref<8x4352xf32, #tpu.memory_space<vmem>>, vector<8x4352xf32>,
    return
  }
  func.func @transform_0(%arg0: i32) -> i32 {
    %c0_i32 = arith.constant 0 : i32
    %c0_i32_0 = arith.constant 0 : i32
    return %c0_i32 : i32
  }
  func.func @transform_1(%arg0: i32) -> (i32, i32) {
    %c0_i32 = arith.constant 0 : i32
    %c0_i32_0 = arith.constant 0 : i32
    return %arg0, %c0_i32 : i32, i32
  }
  func.func @transform_2(%arg0: i32) -> (i32, i32) {
    %c0_i32 = arith.constant 0 : i32
    %c0_i32_0 = arith.constant 0 : i32
    %c0_i32_1 = arith.constant 0 : i32
    return %c0_i32, %c0_i32_0 : i32, i32
  }
  func.func @transform_3(%arg0: i32) -> (i32, i32) {
    %c0_i32 = arith.constant 0 : i32
    %c0_i32_0 = arith.constant 0 : i32
    %c0_i32_1 = arith.constant 0 : i32
    return %c0_i32, %c0_i32_0 : i32, i32
  }
  func.func @transform_4(%arg0: i32) -> (i32, i32) {
    %c0_i32 = arith.constant 0 : i32
    %c0_i32_0 = arith.constant 0 : i32
    %c0_i32_1 = arith.constant 0 : i32
    return %c0_i32, %c0_i32_0 : i32, i32
  }
  func.func @transform_5(%arg0: i32) -> (i32, i32) {
    %c0_i32 = arith.constant 0 : i32
    %c0_i32_0 = arith.constant 0 : i32
    %c0_i32_1 = arith.constant 0 : i32
    return %c0_i32, %c0_i32_0 : i32, i32
  }
  func.func @transform_6(%arg0: i32) -> (i32, i32) {
    %c0_i32 = arith.constant 0 : i32
    %c0_i32_0 = arith.constant 0 : i32
    %c0_i32_1 = arith.constant 0 : i32
    return %c0_i32, %c0_i32_0 : i32, i32
  }
  func.func @transform_7(%arg0: i32) -> (i32, i32) {
    %c0_i32 = arith.constant 0 : i32
    %c0_i32_0 = arith.constant 0 : i32
    %c0_i32_1 = arith.constant 0 : i32
    return %c0_i32, %c0_i32_0 : i32, i32
  }
  func.func @transform_8(%arg0: i32) -> (i32, i32) {
    %c0_i32 = arith.constant 0 : i32
    %c0_i32_0 = arith.constant 0 : i32
    %c0_i32_1 = arith.constant 0 : i32
    return %c0_i32, %c0_i32_0 : i32, i32
  }
  func.func @transform_9(%arg0: i32) -> (i32, i32) {
    %c0_i32 = arith.constant 0 : i32
    %c0_i32_0 = arith.constant 0 : i32
    %c0_i32_1 = arith.constant 0 : i32
    return %c0_i32, %c0_i32_0 : i32, i32
  }
  func.func @transform_10(%arg0: i32) -> (i32, i32) {
    %c0_i32 = arith.constant 0 : i32
    %c0_i32_0 = arith.constant 0 : i32
    return %arg0, %c0_i32 : i32, i32
  }
}

</mosaic_0001>

<bundles_post_ra>
// kernel: tpu_custom_call.1
= control target key start
LH: loop header
LB: loop body
LE: loop exit
PB: predicated region body
PF: predicated region fallthrough
CT: control target
= control target key end

     0   :  { %s10836_s0 = inlined_call_operand.<no memory space> [shape: s32[1], index: 0, kind: input, shape index: {}]   ;;  %s10837_s1 = inlined_call_operand.vmem [shape: bf16[8,4352], index: 1, kind: input, shape index: {}]   ;;  %s10838_s2 = inlined_call_operand.vmem [shape: bf16[4352,32], index: 2, kind: input, shape index: {}]   ;;  %s10839_s3 = inlined_call_operand.vmem [shape: f32[1,32], index: 3, kind: input, shape index: {}]   ;;  %s10840_s4 = inlined_call_operand.vmem [shape: bf16[32,64], index: 4, kind: input, shape index: {}]   ;;  %s10841_s5 = inlined_call_operand.vmem [shape: f32[1,64], index: 5, kind: input, shape index: {}]   ;;  %s10842_s6 = inlined_call_operand.vmem [shape: bf16[64,128], index: 6, kind: input, shape index: {}]   ;;  %s10843_s7 = inlined_call_operand.vmem [shape: f32[1,128], index: 7, kind: input, shape index: {}]   ;;  %s10844_s8 = inlined_call_operand.vmem [shape: bf16[128,4352], index: 8, kind: input, shape index: {}]   ;;  %s10845_s9 = inlined_call_operand.vmem [shape: f32[1,4352], index: 9, kind: input, shape index: {}]   ;;  %s10846_s10 = inlined_call_operand.hbm [shape: f32[8,4352], index: 10, kind: output, shape index: {}]  }
   0x1   :  { %v7494_v0 = vld [vmem:[%s10838_s2 + $0x38] sm:$0xff]  ;;  %v7493_v4 = vld [vmem:[%s10838_s2 + $0x30] sm:$0xff]  ;;  %v7492_v8 = vld [vmem:[%s10838_s2 + $0x28] sm:$0xff] }
   0x2   :  { %v7502_v1 = vld [vmem:[%s10838_s2 + $0x78] sm:$0xff]  ;;  %2356 = vmatpush.bf16.msra.mxu0 %v7494_v0  ;;  %v7501_v5 = vld [vmem:[%s10838_s2 + $0x70] sm:$0xff]  ;;  %v7500_v9 = vld [vmem:[%s10838_s2 + $0x68] sm:$0xff] }
   0x3   :  { %v7510_v2 = vld [vmem:[%s10838_s2 + $0xb8] sm:$0xff]  ;;  %2369 = vmatpush.bf16.msra.mxu1 %v7502_v1  ;;  %v7509_v6 = vld [vmem:[%s10838_s2 + $0xb0] sm:$0xff]  ;;  %v7508_v10 = vld [vmem:[%s10838_s2 + $0xa8] sm:$0xff] }
   0x4   :  { %v7518_v3 = vld [vmem:[%s10838_s2 + $0xf8] sm:$0xff]  ;;  %2382 = vmatpush.bf16.msra.mxu2 %v7510_v2  ;;  %v7517_v7 = vld [vmem:[%s10838_s2 + $0xf0] sm:$0xff]  ;;  %v7516_v11 = vld [vmem:[%s10838_s2 + $0xe8] sm:$0xff] }
   0x5   :  { %2395 = vmatpush.bf16.msra.mxu3 %v7518_v3  ;;  %v7491_v12 = vld [vmem:[%s10838_s2 + $0x20] sm:$0xff]  ;;  %v7490_v16 = vld [vmem:[%s10838_s2 + $0x18] sm:$0xff]  ;;  %v7489_v20 = vld [vmem:[%s10838_s2 + $0x10] sm:$0xff] }
   0x6   :  { %2357 = vmatpush.bf16.msra.mxu0 %v7493_v4  ;;  %v7499_v13 = vld [vmem:[%s10838_s2 + $0x60] sm:$0xff]  ;;  %v7498_v17 = vld [vmem:[%s10838_s2 + $0x58] sm:$0xff]  ;;  %v7497_v21 = vld [vmem:[%s10838_s2 + $0x50] sm:$0xff] }
   0x7   :  { %2370 = vmatpush.bf16.msra.mxu1 %v7501_v5  ;;  %v7507_v14 = vld [vmem:[%s10838_s2 + $0xa0] sm:$0xff]  ;;  %v7506_v18 = vld [vmem:[%s10838_s2 + $0x98] sm:$0xff]  ;;  %v7505_v22 = vld [vmem:[%s10838_s2 + $0x90] sm:$0xff] }
   0x8   :  { %2383 = vmatpush.bf16.msra.mxu2 %v7509_v6  ;;  %v7515_v15 = vld [vmem:[%s10838_s2 + $0xe0] sm:$0xff]  ;;  %v7514_v19 = vld [vmem:[%s10838_s2 + $0xd8] sm:$0xff]  ;;  %v7513_v23 = vld [vmem:[%s10838_s2 + $0xd0] sm:$0xff] }
   0x9   :  { %2396 = vmatpush.bf16.msra.mxu3 %v7517_v7 }
   0xa   :  { %2358 = vmatpush.bf16.msra.mxu0 %v7492_v8 }
   0xb   :  { %2371 = vmatpush.bf16.msra.mxu1 %v7500_v9 }
   0xc   :  { %2384 = vmatpush.bf16.msra.mxu2 %v7508_v10 }
   0xd   :  { %2397 = vmatpush.bf16.msra.mxu3 %v7516_v11 }
   0xe   :  { %2359 = vmatpush.bf16.msra.mxu0 %v7491_v12 }
   0xf   :  { %2372 = vmatpush.bf16.msra.mxu1 %v7499_v13 }
  0x10   :  { %2385 = vmatpush.bf16.msra.mxu2 %v7507_v14 }
  0x11   :  { %2398 = vmatpush.bf16.msra.mxu3 %v7515_v15 }
  0x12   :  { %2360 = vmatpush.bf16.msra.mxu0 %v7490_v16 }
  0x13   :  { %2373 = vmatpush.bf16.msra.mxu1 %v7498_v17 }
  0x14   :  { %2386 = vmatpush.bf16.msra.mxu2 %v7506_v18 }
  0x15   :  { %2399 = vmatpush.bf16.msra.mxu3 %v7514_v19 }
  0x16   :  { %16 = vsyncpa [#allocation4], 0  ;;  %2361 = vmatpush.bf16.msra.mxu0 %v7489_v20  ;;  %v7488_v24 = vld [vmem:[%s10838_s2 + $0x8] sm:$0xff]  ;;  %v40_v26 = vld [vmem:[%s10837_s1] sm:$0xff]  ;;  %s2799_s23 = sxor.u32 2654435769, %s10836_s0 }
  0x17   :  { %2374 = vmatpush.bf16.msra.mxu1 %v7497_v21  ;;  %v7496_v25 = vld [vmem:[%s10838_s2 + $0x48] sm:$0xff]  ;;  %v622_v30 = vunpack.c.l.b16 %v40_v26  ;;  %v7487_v31 = vld [vmem:[%s10838_s2] sm:$0xff]  ;;  %v7526_v35 = vld [vmem:[%s10838_s2 + $0x138] sm:$0xff]  ;;  %v623_v36 = vunpack.c.h.b16 %v40_v26  ;;  %s2800_s24 = sshrl.u32 %s2799_s23, 16  ;;  %vm2852_vm1 = vcmask 261120   ;;  %vm2933_vm3 = vcmask 523264  }
  0x18   :  { %2387 = vmatpush.bf16.msra.mxu2 %v7505_v22  ;;  %v7504_v27 = vld [vmem:[%s10838_s2 + $0x88] sm:$0xff]  ;;  %v7495_v32 = vld [vmem:[%s10838_s2 + $0x40] sm:$0xff]  ;;  %v7534_v37 = vld [vmem:[%s10838_s2 + $0x178] sm:$0xff]  ;;  %s2870_s16 = sxor.u32 2135587861, %s10836_s0 }
  0x19   :  { %2400 = vmatpush.bf16.msra.mxu3 %v7513_v23  ;;  %v7512_v28 = vld [vmem:[%s10838_s2 + $0xc8] sm:$0xff]  ;;  %v7503_v34 = vld [vmem:[%s10838_s2 + $0x80] sm:$0xff]  ;;  %v7542_v38 = vld [vmem:[%s10838_s2 + $0x1b8] sm:$0xff]  ;;  %v656_v40 = vpack.c.b16 %v622_v30, %v622_v30  ;;  %v657_v45 = vpack.c.b16 %v623_v36, %v623_v36  ;;  %s2871_s17 = sshrl.u32 %s2870_s16, 16 }
  0x1a   :  { %v41_v29 = vld [vmem:[%s10837_s1 + $0x8] sm:$0xff]  ;;  %2362 = vmatpush.bf16.msra.mxu0 %v7488_v24  ;;  %v7511_v39 = vld [vmem:[%s10838_s2 + $0xc0] sm:$0xff]  ;;  %v7550_v42 = vld [vmem:[%s10838_s2 + $0x1f8] sm:$0xff]  ;;  %s2872_s18 = sxor.u32 %s2871_s17, %s2870_s16 }
  0x1b   :  { %2375 = vmatpush.bf16.msra.mxu1 %v7496_v25  ;;  %v624_v33 = vunpack.c.l.b16 %v41_v29  ;;  %v625_v41 = vunpack.c.h.b16 %v41_v29  ;;  %v7525_v44 = vld [vmem:[%s10838_s2 + $0x130] sm:$0xff]  ;;  %v7524_v50 = vld [vmem:[%s10838_s2 + $0x128] sm:$0xff]  ;;  %v7523_v54 = vld [vmem:[%s10838_s2 + $0x120] sm:$0xff]  ;;  %s2873_s19 = smul.u32 2246822507, %s2872_s18 }
  0x1c   :  { %2388 = vmatpush.bf16.msra.mxu2 %v7504_v27  ;;  %v7533_v46 = vld [vmem:[%s10838_s2 + $0x170] sm:$0xff]  ;;  %v7532_v51 = vld [vmem:[%s10838_s2 + $0x168] sm:$0xff]  ;;  %v7531_v55 = vld [vmem:[%s10838_s2 + $0x160] sm:$0xff] }
  0x1d   :  { %2401 = vmatpush.bf16.msra.mxu3 %v7512_v28  ;;  %v658_v43 = vpack.c.b16 %v624_v33, %v624_v33  ;;  %v7541_v47 = vld [vmem:[%s10838_s2 + $0x1b0] sm:$0xff]  ;;  %v659_v48 = vpack.c.b16 %v625_v41, %v625_v41  ;;  %v7540_v52 = vld [vmem:[%s10838_s2 + $0x1a8] sm:$0xff]  ;;  %v7539_v56 = vld [vmem:[%s10838_s2 + $0x1a0] sm:$0xff]  ;;  %s2874_s20 = sshrl.u32 %s2873_s19, 13 }
  0x1e   :  { %2363 = vmatpush.bf16.msra.mxu0 %v7487_v31  ;;  %v7549_v49 = vld [vmem:[%s10838_s2 + $0x1f0] sm:$0xff]  ;;  %v7548_v53 = vld [vmem:[%s10838_s2 + $0x1e8] sm:$0xff]  ;;  %v7547_v57 = vld [vmem:[%s10838_s2 + $0x1e0] sm:$0xff]  ;;  %s2875_s21 = sxor.u32 %s2874_s20, %s2873_s19  ;;  %s8073_s19 = smov [#allocation3]  }
  0x1f   :  { %2376 = vmatpush.bf16.msra.mxu1 %v7495_v32  ;;  %v7522_v58 = vld [vmem:[%s10838_s2 + $0x118] sm:$0xff]  ;;  %v7521_v62 = vld [vmem:[%s10838_s2 + $0x110] sm:$0xff]  ;;  %v7520_v2 = vld [vmem:[%s10838_s2 + $0x108] sm:$0xff]  ;;  %s2876_s22 = smul.u32 3266489909, %s2875_s21  ;;  %s5169_s20 = sshll.u32 %s8073_s19, 4  ;;  %s5170_s20 = int_to_ptr.vmem [resolvable:$true] %s5169_s20 }
  0x20   :  { %2389 = vmatpush.bf16.msra.mxu2 %v7503_v34  ;;  %v7530_v59 = vld [vmem:[%s10838_s2 + $0x158] sm:$0xff]  ;;  %v7529_v63 = vld [vmem:[%s10838_s2 + $0x150] sm:$0xff]  ;;  %v7528_v3 = vld [vmem:[%s10838_s2 + $0x148] sm:$0xff] }
  0x21   :  { %2402 = vmatpush.bf16.msra.mxu3 %v7511_v39  ;;  %2364 = vmatmul.bf16.vlgmr.msra.gmra.mxu0 %v656_v40  ;;  %v7538_v60 = vld [vmem:[%s10838_s2 + $0x198] sm:$0xff]  ;;  %v7537_v0 = vld [vmem:[%s10838_s2 + $0x190] sm:$0xff]  ;;  %v7536_v4 = vld [vmem:[%s10838_s2 + $0x188] sm:$0xff] }
  0x22   :  { %2408 = vmatpush.bf16.msrb.mxu0 %v7526_v35  ;;  %2377 = vmatmul.bf16.vlgmr.msra.gmra.mxu1 %v657_v45  ;;  %v7546_v61 = vld [vmem:[%s10838_s2 + $0x1d8] sm:$0xff]  ;;  %v7545_v1 = vld [vmem:[%s10838_s2 + $0x1d0] sm:$0xff]  ;;  %v7544_v7 = vld [vmem:[%s10838_s2 + $0x1c8] sm:$0xff] }
  0x23   :  { %2421 = vmatpush.bf16.msrb.mxu1 %v7534_v37  ;;  %2390 = vmatmul.bf16.vlgmr.msra.gmra.mxu2 %v658_v43  ;;  %v43_v5 = vld [vmem:[%s10837_s1 + $0x18] sm:$0xff]  ;;  %v42_v6 = vld [vmem:[%s10837_s1 + $0x10] sm:$0xff]  ;;  %v7519_v8 = vld [vmem:[%s10838_s2 + $0x100] sm:$0xff] }
  0x24   :  { %2434 = vmatpush.bf16.msrb.mxu2 %v7542_v38  ;;  %2403 = vmatmul.bf16.vlgmr.msra.gmra.mxu3 %v659_v48  ;;  %v628_v9 = vunpack.c.l.b16 %v43_v5  ;;  %v7527_v10 = vld [vmem:[%s10838_s2 + $0x140] sm:$0xff]  ;;  %v626_v12 = vunpack.c.l.b16 %v42_v6  ;;  %v627_v13 = vunpack.c.h.b16 %v42_v6  ;;  %v7558_v14 = vld [vmem:[%s10838_s2 + $0x238] sm:$0xff]  ;;  %v629_v18 = vunpack.c.h.b16 %v43_v5  ;;  %v7557_v23 = vld [vmem:[%s10838_s2 + $0x230] sm:$0xff] }
  0x25   :  { %2447 = vmatpush.bf16.msrb.mxu3 %v7550_v42  ;;  %v7535_v11 = vld [vmem:[%s10838_s2 + $0x180] sm:$0xff]  ;;  %v7566_v15 = vld [vmem:[%s10838_s2 + $0x278] sm:$0xff]  ;;  %v7565_v24 = vld [vmem:[%s10838_s2 + $0x270] sm:$0xff] }
  0x26   :  { %2409 = vmatpush.bf16.msrb.mxu0 %v7525_v44  ;;  %v7574_v16 = vld [vmem:[%s10838_s2 + $0x2b8] sm:$0xff]  ;;  %v7543_v17 = vld [vmem:[%s10838_s2 + $0x1c0] sm:$0xff]  ;;  %v662_v20 = vpack.c.b16 %v628_v9, %v628_v9  ;;  %v660_v21 = vpack.c.b16 %v626_v12, %v626_v12  ;;  %v661_v22 = vpack.c.b16 %v627_v13, %v627_v13  ;;  %v7573_v25 = vld [vmem:[%s10838_s2 + $0x2b0] sm:$0xff]  ;;  %v663_v26 = vpack.c.b16 %v629_v18, %v629_v18 }
  0x27   :  { %2422 = vmatpush.bf16.msrb.mxu1 %v7533_v46  ;;  %v7582_v19 = vld [vmem:[%s10838_s2 + $0x2f8] sm:$0xff]  ;;  %v7581_v27 = vld [vmem:[%s10838_s2 + $0x2f0] sm:$0xff]  ;;  %v7556_v28 = vld [vmem:[%s10838_s2 + $0x228] sm:$0xff] }
  0x28   :  { %2435 = vmatpush.bf16.msrb.mxu2 %v7541_v47  ;;  %v7564_v29 = vld [vmem:[%s10838_s2 + $0x268] sm:$0xff]  ;;  %v7555_v32 = vld [vmem:[%s10838_s2 + $0x220] sm:$0xff]  ;;  %v7554_v36 = vld [vmem:[%s10838_s2 + $0x218] sm:$0xff] }
  0x29   :  { %2448 = vmatpush.bf16.msrb.mxu3 %v7549_v49  ;;  %v7572_v30 = vld [vmem:[%s10838_s2 + $0x2a8] sm:$0xff]  ;;  %v7563_v33 = vld [vmem:[%s10838_s2 + $0x260] sm:$0xff]  ;;  %v7562_v37 = vld [vmem:[%s10838_s2 + $0x258] sm:$0xff] }
  0x2a   :  { %2410 = vmatpush.bf16.msrb.mxu0 %v7524_v50  ;;  %v7580_v31 = vld [vmem:[%s10838_s2 + $0x2e8] sm:$0xff]  ;;  %v7571_v34 = vld [vmem:[%s10838_s2 + $0x2a0] sm:$0xff]  ;;  %v7570_v38 = vld [vmem:[%s10838_s2 + $0x298] sm:$0xff] }
  0x2b   :  { %2423 = vmatpush.bf16.msrb.mxu1 %v7532_v51  ;;  %v7579_v35 = vld [vmem:[%s10838_s2 + $0x2e0] sm:$0xff]  ;;  %v7578_v39 = vld [vmem:[%s10838_s2 + $0x2d8] sm:$0xff]  ;;  %v7553_v40 = vld [vmem:[%s10838_s2 + $0x210] sm:$0xff] }
  0x2c   :  { %2436 = vmatpush.bf16.msrb.mxu2 %v7540_v52  ;;  %v7561_v41 = vld [vmem:[%s10838_s2 + $0x250] sm:$0xff]  ;;  %v7552_v44 = vld [vmem:[%s10838_s2 + $0x208] sm:$0xff]  ;;  %v44_v46 = vld [vmem:[%s10837_s1 + $0x20] sm:$0xff] }
  0x2d   :  { %2449 = vmatpush.bf16.msrb.mxu3 %v7548_v53  ;;  %v7569_v42 = vld [vmem:[%s10838_s2 + $0x290] sm:$0xff]  ;;  %v7560_v45 = vld [vmem:[%s10838_s2 + $0x248] sm:$0xff]  ;;  %v630_v50 = vunpack.c.l.b16 %v44_v46  ;;  %v7551_v51 = vld [vmem:[%s10838_s2 + $0x200] sm:$0xff] }
  0x2e   :  { %2411 = vmatpush.bf16.msrb.mxu0 %v7523_v54  ;;  %v7577_v43 = vld [vmem:[%s10838_s2 + $0x2d0] sm:$0xff]  ;;  %v7568_v47 = vld [vmem:[%s10838_s2 + $0x288] sm:$0xff]  ;;  %v7559_v52 = vld [vmem:[%s10838_s2 + $0x240] sm:$0xff] }
  0x2f   :  { %2424 = vmatpush.bf16.msrb.mxu1 %v7531_v55  ;;  %v45_v48 = vld [vmem:[%s10837_s1 + $0x28] sm:$0xff]  ;;  %v7567_v54 = vld [vmem:[%s10838_s2 + $0x280] sm:$0xff]  ;;  %v7590_v55 = vld [vmem:[%s10838_s2 + $0x338] sm:$0xff] }
  0x30   :  { %2437 = vmatpush.bf16.msrb.mxu2 %v7539_v56  ;;  %v7576_v49 = vld [vmem:[%s10838_s2 + $0x2c8] sm:$0xff]  ;;  %v632_v53 = vunpack.c.l.b16 %v45_v48  ;;  %v631_v56 = vunpack.c.h.b16 %v44_v46  ;;  %v7613_v5 = vld [vmem:[%s10838_s2 + $0x3f0] sm:$0xff]  ;;  %v7603_v12 = vld [vmem:[%s10838_s2 + $0x3a0] sm:$0xff] }
  0x31   :  { %2450 = vmatpush.bf16.msrb.mxu3 %v7547_v57  ;;  %v7598_v57 = vld [vmem:[%s10838_s2 + $0x378] sm:$0xff]  ;;  %v7588_v6 = vld [vmem:[%s10838_s2 + $0x328] sm:$0xff]  ;;  %v7611_v13 = vld [vmem:[%s10838_s2 + $0x3e0] sm:$0xff] }
  0x32   :  { %2412 = vmatpush.bf16.msrb.mxu0 %v7522_v58  ;;  %v7606_v58 = vld [vmem:[%s10838_s2 + $0x3b8] sm:$0xff]  ;;  %v7612_v9 = vld [vmem:[%s10838_s2 + $0x3e8] sm:$0xff]  ;;  %v7585_v18 = vld [vmem:[%s10838_s2 + $0x310] sm:$0xff] }
  0x33   :  { %2425 = vmatpush.bf16.msrb.mxu1 %v7530_v59  ;;  %v633_v59 = vunpack.c.h.b16 %v45_v48  ;;  %v7637_v46 = vld [vmem:[%s10838_s2 + $0x4b0] sm:$0xff]  ;;  %v7620_v48 = vld [vmem:[%s10838_s2 + $0x428] sm:$0xff] }
  0x34   :  { %2438 = vmatpush.bf16.msrb.mxu2 %v7538_v60  ;;  %v7575_v60 = vld [vmem:[%s10838_s2 + $0x2c0] sm:$0xff] }
  0x35   :  { %2451 = vmatpush.bf16.msrb.mxu3 %v7546_v61  ;;  %v664_v61 = vpack.c.b16 %v630_v50, %v630_v50  ;;  %v7636_v50 = vld [vmem:[%s10838_s2 + $0x4a8] sm:$0xff] }
  0x36   :  { %2413 = vmatpush.bf16.msrb.mxu0 %v7521_v62  ;;  %v666_v62 = vpack.c.b16 %v632_v53, %v632_v53  ;;  %v7627_v53 = vld [vmem:[%s10838_s2 + $0x460] sm:$0xff] }
  0x37   :  { %2426 = vmatpush.bf16.msrb.mxu1 %v7529_v63  ;;  %v7614_v63 = vld [vmem:[%s10838_s2 + $0x3f8] sm:$0xff] }
  0x38   :  { %2439 = vmatpush.bf16.msrb.mxu2 %v7537_v0  ;;  %v665_v0 = vpack.c.b16 %v631_v56, %v631_v56  ;;  %v7618_v56 = vld [vmem:[%s10838_s2 + $0x418] sm:$0xff] }
  0x39   :  { %2452 = vmatpush.bf16.msrb.mxu3 %v7545_v1  ;;  %v7589_v1 = vld [vmem:[%s10838_s2 + $0x330] sm:$0xff] }
  0x3a   :  { %2414 = vmatpush.bf16.msrb.mxu0 %v7520_v2  ;;  %v667_v2 = vpack.c.b16 %v633_v59, %v633_v59  ;;  %v7642_v59 = vld [vmem:[%s10838_s2 + $0x4d8] sm:$0xff] }
  0x3b   :  { %2427 = vmatpush.bf16.msrb.mxu1 %v7528_v3  ;;  %v7597_v3 = vld [vmem:[%s10838_s2 + $0x370] sm:$0xff] }
  0x3c   :  { %2440 = vmatpush.bf16.msrb.mxu2 %v7536_v4  ;;  %v7605_v4 = vld [vmem:[%s10838_s2 + $0x3b0] sm:$0xff] }
  0x3d   :  { %2453 = vmatpush.bf16.msrb.mxu3 %v7544_v7  ;;  %v7596_v7 = vld [vmem:[%s10838_s2 + $0x368] sm:$0xff] }
  0x3e   :  { %2415 = vmatpush.bf16.msrb.mxu0 %v7519_v8  ;;  %v7604_v8 = vld [vmem:[%s10838_s2 + $0x3a8] sm:$0xff] }
  0x3f   :  { %2428 = vmatpush.bf16.msrb.mxu1 %v7527_v10  ;;  %v7587_v10 = vld [vmem:[%s10838_s2 + $0x320] sm:$0xff] }
  0x40   :  { %2441 = vmatpush.bf16.msrb.mxu2 %v7535_v11  ;;  %v7595_v11 = vld [vmem:[%s10838_s2 + $0x360] sm:$0xff] }
  0x41   :  { %2454 = vmatpush.bf16.msrb.mxu3 %v7543_v17  ;;  %2416 = vmatmul.bf16.vlgmr.msrb.gmra.mxu0 %v660_v21  ;;  %v7610_v17 = vld [vmem:[%s10838_s2 + $0x3d8] sm:$0xff]  ;;  %v7609_v21 = vld [vmem:[%s10838_s2 + $0x3d0] sm:$0xff] }
  0x42   :  { %2460 = vmatpush.bf16.msra.mxu0 %v7558_v14  ;;  %2429 = vmatmul.bf16.vlgmr.msrb.gmra.mxu1 %v661_v22  ;;  %v7586_v14 = vld [vmem:[%s10838_s2 + $0x318] sm:$0xff]  ;;  %v7584_v22 = vld [vmem:[%s10838_s2 + $0x308] sm:$0xff] }
  0x43   :  { %2473 = vmatpush.bf16.msra.mxu1 %v7566_v15  ;;  %2442 = vmatmul.bf16.vlgmr.msrb.gmra.mxu2 %v662_v20  ;;  %v7594_v15 = vld [vmem:[%s10838_s2 + $0x358] sm:$0xff]  ;;  %v7601_v20 = vld [vmem:[%s10838_s2 + $0x390] sm:$0xff] }
  0x44   :  { %2486 = vmatpush.bf16.msra.mxu2 %v7574_v16  ;;  %2455 = vmatmul.bf16.vlgmr.msrb.gmra.mxu3 %v663_v26  ;;  %v7602_v16 = vld [vmem:[%s10838_s2 + $0x398] sm:$0xff] }
  0x45   :  { %2499 = vmatpush.bf16.msra.mxu3 %v7582_v19  ;;  %v7593_v19 = vld [vmem:[%s10838_s2 + $0x350] sm:$0xff]  ;;  %v47_v26 = vld [vmem:[%s10837_s1 + $0x38] sm:$0xff] }
  0x46   :  { %2461 = vmatpush.bf16.msra.mxu0 %v7557_v23  ;;  %v7592_v23 = vld [vmem:[%s10838_s2 + $0x348] sm:$0xff] }
  0x47   :  { %2474 = vmatpush.bf16.msra.mxu1 %v7565_v24  ;;  %v46_v24 = vld [vmem:[%s10837_s1 + $0x30] sm:$0xff] }
  0x48   :  { %2487 = vmatpush.bf16.msra.mxu2 %v7573_v25  ;;  %v7600_v25 = vld [vmem:[%s10838_s2 + $0x388] sm:$0xff] }
  0x49   :  { %2500 = vmatpush.bf16.msra.mxu3 %v7581_v27  ;;  %v7608_v27 = vld [vmem:[%s10838_s2 + $0x3c8] sm:$0xff] }
  0x4a   :  { %2462 = vmatpush.bf16.msra.mxu0 %v7556_v28  ;;  %v7583_v28 = vld [vmem:[%s10838_s2 + $0x300] sm:$0xff] }
  0x4b   :  { %2475 = vmatpush.bf16.msra.mxu1 %v7564_v29  ;;  %v634_v29 = vunpack.c.l.b16 %v46_v24 }
  0x4c   :  { %2488 = vmatpush.bf16.msra.mxu2 %v7572_v30  ;;  %v7591_v30 = vld [vmem:[%s10838_s2 + $0x340] sm:$0xff] }
  0x4d   :  { %2501 = vmatpush.bf16.msra.mxu3 %v7580_v31  ;;  %v7622_v31 = vld [vmem:[%s10838_s2 + $0x438] sm:$0xff] }
  0x4e   :  { %2463 = vmatpush.bf16.msra.mxu0 %v7555_v32  ;;  %v636_v32 = vunpack.c.l.b16 %v47_v26 }
  0x4f   :  { %2476 = vmatpush.bf16.msra.mxu1 %v7563_v33  ;;  %v635_v33 = vunpack.c.h.b16 %v46_v24  ;;  %v7669_v24 = vld [vmem:[%s10838_s2 + $0x5b0] sm:$0xff] }
  0x50   :  { %2489 = vmatpush.bf16.msra.mxu2 %v7571_v34  ;;  %v7599_v34 = vld [vmem:[%s10838_s2 + $0x380] sm:$0xff] }
  0x51   :  { %2502 = vmatpush.bf16.msra.mxu3 %v7579_v35  ;;  %v7630_v35 = vld [vmem:[%s10838_s2 + $0x478] sm:$0xff] }
  0x52   :  { %2464 = vmatpush.bf16.msra.mxu0 %v7554_v36  ;;  %v637_v36 = vunpack.c.h.b16 %v47_v26  ;;  %v7652_v26 = vld [vmem:[%s10838_s2 + $0x528] sm:$0xff] }
  0x53   :  { %2477 = vmatpush.bf16.msra.mxu1 %v7562_v37  ;;  %v7638_v37 = vld [vmem:[%s10838_s2 + $0x4b8] sm:$0xff] }
  0x54   :  { %2490 = vmatpush.bf16.msra.mxu2 %v7570_v38  ;;  %v7607_v38 = vld [vmem:[%s10838_s2 + $0x3c0] sm:$0xff] }
  0x55   :  { %2503 = vmatpush.bf16.msra.mxu3 %v7578_v39  ;;  %v668_v39 = vpack.c.b16 %v634_v29, %v634_v29  ;;  %v8038_v29 = vld [vmem:[%s10839_s3] ss:$0 sm:$0xff]  ;;  %s2801_s3 = sxor.u32 %s2800_s24, %s2799_s23 }
  0x56   :  { %2465 = vmatpush.bf16.msra.mxu0 %v7553_v40  ;;  %v7646_v40 = vld [vmem:[%s10838_s2 + $0x4f8] sm:$0xff]  ;;  %s2802_s25 = smul.u32 2246822507, %s2801_s3 }
  0x57   :  { %2478 = vmatpush.bf16.msra.mxu1 %v7561_v41  ;;  %v670_v41 = vpack.c.b16 %v636_v32, %v636_v32 }
  0x58   :  { %2491 = vmatpush.bf16.msra.mxu2 %v7569_v42  ;;  %v669_v42 = vpack.c.b16 %v635_v33, %v635_v33  ;;  %v7659_v33 = vld [vmem:[%s10838_s2 + $0x560] sm:$0xff]  ;;  %s2803_s26 = sshrl.u32 %s2802_s25, 13 }
  0x59   :  { %2504 = vmatpush.bf16.msra.mxu3 %v7577_v43  ;;  %v671_v43 = vpack.c.b16 %v637_v36, %v637_v36  ;;  %s2804_s27 = sxor.u32 %s2803_s26, %s2802_s25 }
  0x5a   :  { %2466 = vmatpush.bf16.msra.mxu0 %v7552_v44  ;;  %v7621_v44 = vld [vmem:[%s10838_s2 + $0x430] sm:$0xff]  ;;  %s2805_s28 = smul.u32 3266489909, %s2804_s27 }
  0x5b   :  { %2479 = vmatpush.bf16.msra.mxu1 %v7560_v45  ;;  %v7629_v45 = vld [vmem:[%s10838_s2 + $0x470] sm:$0xff] }
  0x5c   :  { %2492 = vmatpush.bf16.msra.mxu2 %v7568_v47  ;;  %v7645_v47 = vld [vmem:[%s10838_s2 + $0x4f0] sm:$0xff]  ;;  %s2806_s29 = sshrl.u32 %s2805_s28, 16 }
  0x5d   :  { %2505 = vmatpush.bf16.msra.mxu3 %v7576_v49  ;;  %v7628_v49 = vld [vmem:[%s10838_s2 + $0x468] sm:$0xff]  ;;  %s2807_s30 = sxor.u32 %s2806_s29, %s2805_s28 }
  0x5e   :  { %2467 = vmatpush.bf16.msra.mxu0 %v7551_v51  ;;  %v7644_v51 = vld [vmem:[%s10838_s2 + $0x4e8] sm:$0xff] }
  0x5f   :  { %2480 = vmatpush.bf16.msra.mxu1 %v7559_v52  ;;  %v7619_v52 = vld [vmem:[%s10838_s2 + $0x420] sm:$0xff] }
  0x60   :  { %2493 = vmatpush.bf16.msra.mxu2 %v7567_v54  ;;  %v7635_v54 = vld [vmem:[%s10838_s2 + $0x4a0] sm:$0xff] }
  0x61   :  { %2506 = vmatpush.bf16.msra.mxu3 %v7575_v60  ;;  %2468 = vmatmul.bf16.vlgmr.msra.gmra.mxu0 %v664_v61  ;;  %v7617_v60 = vld [vmem:[%s10838_s2 + $0x410] sm:$0xff] }
  0x62   :  { %2512 = vmatpush.bf16.msrb.mxu0 %v7590_v55  ;;  %2481 = vmatmul.bf16.vlgmr.msra.gmra.mxu1 %v665_v0  ;;  %v7643_v55 = vld [vmem:[%s10838_s2 + $0x4e0] sm:$0xff]  ;;  %v7625_v61 = vld [vmem:[%s10838_s2 + $0x450] sm:$0xff]  ;;  %v7616_v0 = vld [vmem:[%s10838_s2 + $0x408] sm:$0xff] }
  0x63   :  { %2525 = vmatpush.bf16.msrb.mxu1 %v7598_v57  ;;  %2494 = vmatmul.bf16.vlgmr.msra.gmra.mxu2 %v666_v62  ;;  %v7626_v57 = vld [vmem:[%s10838_s2 + $0x458] sm:$0xff]  ;;  %v7633_v62 = vld [vmem:[%s10838_s2 + $0x490] sm:$0xff] }
  0x64   :  { %2538 = vmatpush.bf16.msrb.mxu2 %v7606_v58  ;;  %2507 = vmatmul.bf16.vlgmr.msra.gmra.mxu3 %v667_v2  ;;  %v7634_v58 = vld [vmem:[%s10838_s2 + $0x498] sm:$0xff]  ;;  %v7632_v2 = vld [vmem:[%s10838_s2 + $0x488] sm:$0xff] }
  0x65   :  { %2551 = vmatpush.bf16.msrb.mxu3 %v7614_v63  ;;  %v7641_v63 = vld [vmem:[%s10838_s2 + $0x4d0] sm:$0xff] }
  0x66   :  { %2513 = vmatpush.bf16.msrb.mxu0 %v7589_v1  ;;  %v7624_v1 = vld [vmem:[%s10838_s2 + $0x448] sm:$0xff] }
  0x67   :  { %2526 = vmatpush.bf16.msrb.mxu1 %v7597_v3  ;;  %v48_v3 = vld [vmem:[%s10837_s1 + $0x40] sm:$0xff] }
  0x68   :  { %2539 = vmatpush.bf16.msrb.mxu2 %v7605_v4  ;;  %v49_v4 = vld [vmem:[%s10837_s1 + $0x48] sm:$0xff] }
  0x69   :  { %2552 = vmatpush.bf16.msrb.mxu3 %v7613_v5  ;;  %v7640_v5 = vld [vmem:[%s10838_s2 + $0x4c8] sm:$0xff] }
  0x6a   :  { %2514 = vmatpush.bf16.msrb.mxu0 %v7588_v6  ;;  %v7615_v6 = vld [vmem:[%s10838_s2 + $0x400] sm:$0xff] }
  0x6b   :  { %2527 = vmatpush.bf16.msrb.mxu1 %v7596_v7  ;;  %v638_v7 = vunpack.c.l.b16 %v48_v3 }
  0x6c   :  { %2540 = vmatpush.bf16.msrb.mxu2 %v7604_v8  ;;  %v640_v8 = vunpack.c.l.b16 %v49_v4 }
  0x6d   :  { %2553 = vmatpush.bf16.msrb.mxu3 %v7612_v9  ;;  %v7623_v9 = vld [vmem:[%s10838_s2 + $0x440] sm:$0xff] }
  0x6e   :  { %2515 = vmatpush.bf16.msrb.mxu0 %v7587_v10  ;;  %v7631_v10 = vld [vmem:[%s10838_s2 + $0x480] sm:$0xff] }
  0x6f   :  { %2528 = vmatpush.bf16.msrb.mxu1 %v7595_v11  ;;  %v639_v11 = vunpack.c.h.b16 %v48_v3  ;;  %v7694_v3 = vld [vmem:[%s10838_s2 + $0x678] sm:$0xff] }
  0x70   :  { %2541 = vmatpush.bf16.msrb.mxu2 %v7603_v12  ;;  %v7654_v12 = vld [vmem:[%s10838_s2 + $0x538] sm:$0xff] }
  0x71   :  { %2554 = vmatpush.bf16.msrb.mxu3 %v7611_v13  ;;  %v7662_v13 = vld [vmem:[%s10838_s2 + $0x578] sm:$0xff] }
  0x72   :  { %2516 = vmatpush.bf16.msrb.mxu0 %v7586_v14  ;;  %v641_v14 = vunpack.c.h.b16 %v49_v4 }
  0x73   :  { %2529 = vmatpush.bf16.msrb.mxu1 %v7594_v15  ;;  %v7670_v15 = vld [vmem:[%s10838_s2 + $0x5b8] sm:$0xff] }
  0x74   :  { %2542 = vmatpush.bf16.msrb.mxu2 %v7602_v16  ;;  %v7639_v16 = vld [vmem:[%s10838_s2 + $0x4c0] sm:$0xff] }
  0x75   :  { %2555 = vmatpush.bf16.msrb.mxu3 %v7610_v17  ;;  %v672_v17 = vpack.c.b16 %v638_v7, %v638_v7  ;;  %v7671_v7 = vld [vmem:[%s10838_s2 + $0x5c0] sm:$0xff] }
  0x76   :  { %2517 = vmatpush.bf16.msrb.mxu0 %v7585_v18  ;;  %v674_v18 = vpack.c.b16 %v640_v8, %v640_v8 }
  0x77   :  { %2530 = vmatpush.bf16.msrb.mxu1 %v7593_v19  ;;  %v7678_v19 = vld [vmem:[%s10838_s2 + $0x5f8] sm:$0xff] }
  0x78   :  { %2543 = vmatpush.bf16.msrb.mxu2 %v7601_v20  ;;  %v673_v20 = vpack.c.b16 %v639_v11, %v639_v11 }
  0x79   :  { %2556 = vmatpush.bf16.msrb.mxu3 %v7609_v21  ;;  %v675_v21 = vpack.c.b16 %v641_v14, %v641_v14  ;;  %v7693_v14 = vld [vmem:[%s10838_s2 + $0x670] sm:$0xff] }
  0x7a   :  { %2518 = vmatpush.bf16.msrb.mxu0 %v7584_v22  ;;  %v7653_v22 = vld [vmem:[%s10838_s2 + $0x530] sm:$0xff] }
  0x7b   :  { %2531 = vmatpush.bf16.msrb.mxu1 %v7592_v23  ;;  %v7661_v23 = vld [vmem:[%s10838_s2 + $0x570] sm:$0xff] }
  0x7c   :  { %2544 = vmatpush.bf16.msrb.mxu2 %v7600_v25  ;;  %v7677_v25 = vld [vmem:[%s10838_s2 + $0x5f0] sm:$0xff] }
  0x7d   :  { %2557 = vmatpush.bf16.msrb.mxu3 %v7608_v27  ;;  %v7660_v27 = vld [vmem:[%s10838_s2 + $0x568] sm:$0xff] }
  0x7e   :  { %2519 = vmatpush.bf16.msrb.mxu0 %v7583_v28  ;;  %v7668_v28 = vld [vmem:[%s10838_s2 + $0x5a8] sm:$0xff] }
  0x7f   :  { %2532 = vmatpush.bf16.msrb.mxu1 %v7591_v30  ;;  %v7676_v30 = vld [vmem:[%s10838_s2 + $0x5e8] sm:$0xff] }
  0x80   :  { %2545 = vmatpush.bf16.msrb.mxu2 %v7599_v34  ;;  %v7667_v34 = vld [vmem:[%s10838_s2 + $0x5a0] sm:$0xff] }
  0x81   :  { %2558 = vmatpush.bf16.msrb.mxu3 %v7607_v38  ;;  %2520 = vmatmul.bf16.vlgmr.msrb.gmra.mxu0 %v668_v39  ;;  %v7650_v39 = vld [vmem:[%s10838_s2 + $0x518] sm:$0xff] }
  0x82   :  { %2564 = vmatpush.bf16.msra.mxu0 %v7622_v31  ;;  %2533 = vmatmul.bf16.vlgmr.msrb.gmra.mxu1 %v669_v42  ;;  %v7651_v31 = vld [vmem:[%s10838_s2 + $0x520] sm:$0xff]  ;;  %v7674_v42 = vld [vmem:[%s10838_s2 + $0x5d8] sm:$0xff] }
  0x83   :  { %2577 = vmatpush.bf16.msra.mxu1 %v7630_v35  ;;  %2546 = vmatmul.bf16.vlgmr.msrb.gmra.mxu2 %v670_v41  ;;  %v7666_v41 = vld [vmem:[%s10838_s2 + $0x598] sm:$0xff] }
  0x84   :  { %2590 = vmatpush.bf16.msra.mxu2 %v7638_v37  ;;  %2559 = vmatmul.bf16.vlgmr.msrb.gmra.mxu3 %v671_v43  ;;  %v7675_v37 = vld [vmem:[%s10838_s2 + $0x5e0] sm:$0xff] }
  0x85   :  { %2603 = vmatpush.bf16.msra.mxu3 %v7646_v40  ;;  %v7658_v40 = vld [vmem:[%s10838_s2 + $0x558] sm:$0xff] }
  0x86   :  { %2565 = vmatpush.bf16.msra.mxu0 %v7621_v44  ;;  %v7649_v44 = vld [vmem:[%s10838_s2 + $0x510] sm:$0xff] }
  0x87   :  { %2578 = vmatpush.bf16.msra.mxu1 %v7629_v45 }
  0x88   :  { %2591 = vmatpush.bf16.msra.mxu2 %v7637_v46 }
  0x89   :  { %2604 = vmatpush.bf16.msra.mxu3 %v7645_v47  ;;  %v7657_v47 = vld [vmem:[%s10838_s2 + $0x550] sm:$0xff] }
  0x8a   :  { %2566 = vmatpush.bf16.msra.mxu0 %v7620_v48  ;;  %v7665_v48 = vld [vmem:[%s10838_s2 + $0x590] sm:$0xff] }
  0x8b   :  { %2579 = vmatpush.bf16.msra.mxu1 %v7628_v49 }
  0x8c   :  { %2592 = vmatpush.bf16.msra.mxu2 %v7636_v50 }
  0x8d   :  { %2605 = vmatpush.bf16.msra.mxu3 %v7644_v51  ;;  %v7673_v51 = vld [vmem:[%s10838_s2 + $0x5d0] sm:$0xff] }
  0x8e   :  { %2567 = vmatpush.bf16.msra.mxu0 %v7619_v52 }
  0x8f   :  { %2580 = vmatpush.bf16.msra.mxu1 %v7627_v53  ;;  %v7648_v53 = vld [vmem:[%s10838_s2 + $0x508] sm:$0xff] }
  0x90   :  { %2593 = vmatpush.bf16.msra.mxu2 %v7635_v54  ;;  %v7656_v54 = vld [vmem:[%s10838_s2 + $0x548] sm:$0xff] }
  0x91   :  { %2606 = vmatpush.bf16.msra.mxu3 %v7643_v55  ;;  %v7664_v55 = vld [vmem:[%s10838_s2 + $0x588] sm:$0xff] }
  0x92   :  { %2568 = vmatpush.bf16.msra.mxu0 %v7618_v56  ;;  %v50_v56 = vld [vmem:[%s10837_s1 + $0x50] sm:$0xff] }
  0x93   :  { %2581 = vmatpush.bf16.msra.mxu1 %v7626_v57  ;;  %v51_v57 = vld [vmem:[%s10837_s1 + $0x58] sm:$0xff] }
  0x94   :  { %2594 = vmatpush.bf16.msra.mxu2 %v7634_v58  ;;  %v7672_v58 = vld [vmem:[%s10838_s2 + $0x5c8] sm:$0xff]  ;;  %v645_v4 = vunpack.c.h.b16 %v51_v57 }
  0x95   :  { %2607 = vmatpush.bf16.msra.mxu3 %v7642_v59 }
  0x96   :  { %2569 = vmatpush.bf16.msra.mxu0 %v7617_v60  ;;  %v7647_v60 = vld [vmem:[%s10838_s2 + $0x500] sm:$0xff] }
  0x97   :  { %2582 = vmatpush.bf16.msra.mxu1 %v7625_v61  ;;  %v642_v61 = vunpack.c.l.b16 %v50_v56 }
  0x98   :  { %2595 = vmatpush.bf16.msra.mxu2 %v7633_v62  ;;  %v644_v62 = vunpack.c.l.b16 %v51_v57  ;;  %v7718_v57 = vld [vmem:[%s10838_s2 + $0x738] sm:$0xff] }
  0x99   :  { %2608 = vmatpush.bf16.msra.mxu3 %v7641_v63  ;;  %v7655_v63 = vld [vmem:[%s10838_s2 + $0x540] sm:$0xff]  ;;  %v676_v8 = vpack.c.b16 %v642_v61, %v642_v61 }
  0x9a   :  { %2570 = vmatpush.bf16.msra.mxu0 %v7616_v0  ;;  %v7663_v0 = vld [vmem:[%s10838_s2 + $0x580] sm:$0xff] }
  0x9b   :  { %2583 = vmatpush.bf16.msra.mxu1 %v7624_v1  ;;  %v643_v1 = vunpack.c.h.b16 %v50_v56  ;;  %v7703_v61 = vld [vmem:[%s10838_s2 + $0x6c0] sm:$0xff] }
  0x9c   :  { %2596 = vmatpush.bf16.msra.mxu2 %v7632_v2  ;;  %v7686_v2 = vld [vmem:[%s10838_s2 + $0x638] sm:$0xff] }
  0x9d   :  { %2609 = vmatpush.bf16.msra.mxu3 %v7640_v5  ;;  %v677_v11 = vpack.c.b16 %v643_v1, %v643_v1 }
  0x9e   :  { %2571 = vmatpush.bf16.msra.mxu0 %v7615_v6  ;;  %v2365_v32 = vpop.f32.mrf.mxu0  ;;  %v7702_v6 = vld [vmem:[%s10838_s2 + $0x6b8] sm:$0xff] }
  0x9f   :  { %2584 = vmatpush.bf16.msra.mxu1 %v7623_v9  ;;  %v2366_v35 = vadd.f32 %v8038_v29, %v2365_v32  ;;  %v2378_v36 = vpop.f32.mrf.mxu1  ;;  %v678_v9 = vpack.c.b16 %v644_v62, %v644_v62 }
  0xa0   :  { %2597 = vmatpush.bf16.msra.mxu2 %v7631_v10  ;;  %v7710_v10 = vld [vmem:[%s10838_s2 + $0x6f8] sm:$0xff] }
  0xa1   :  { %2610 = vmatpush.bf16.msra.mxu3 %v7639_v16  ;;  %2572 = vmatmul.bf16.vlgmr.msra.gmra.mxu0 %v672_v17  ;;  %v2379_v38 = vadd.f32 %v2378_v36, %v2366_v35  ;;  %v7709_v16 = vld [vmem:[%s10838_s2 + $0x6f0] sm:$0xff]  ;;  %v7684_v17 = vld [vmem:[%s10838_s2 + $0x628] sm:$0xff] }
  0xa2   :  { %2616 = vmatpush.bf16.msrb.mxu0 %v7654_v12  ;;  %2585 = vmatmul.bf16.vlgmr.msra.gmra.mxu1 %v673_v20  ;;  %v679_v12 = vpack.c.b16 %v645_v4, %v645_v4  ;;  %v7708_v20 = vld [vmem:[%s10838_s2 + $0x6e8] sm:$0xff]  ;;  %v7681_v35 = vld [vmem:[%s10838_s2 + $0x610] sm:$0xff] }
  0xa3   :  { %2629 = vmatpush.bf16.msrb.mxu1 %v7662_v13  ;;  %2598 = vmatmul.bf16.vlgmr.msra.gmra.mxu2 %v674_v18  ;;  %v7685_v13 = vld [vmem:[%s10838_s2 + $0x630] sm:$0xff]  ;;  %v7692_v18 = vld [vmem:[%s10838_s2 + $0x668] sm:$0xff] }
  0xa4   :  { %2642 = vmatpush.bf16.msrb.mxu2 %v7670_v15  ;;  %2611 = vmatmul.bf16.vlgmr.msra.gmra.mxu3 %v675_v21  ;;  %v7701_v15 = vld [vmem:[%s10838_s2 + $0x6b0] sm:$0xff]  ;;  %v7683_v21 = vld [vmem:[%s10838_s2 + $0x620] sm:$0xff] }
  0xa5   :  { %2655 = vmatpush.bf16.msrb.mxu3 %v7678_v19  ;;  %v7700_v19 = vld [vmem:[%s10838_s2 + $0x6a8] sm:$0xff]  ;;  %v7689_v36 = vld [vmem:[%s10838_s2 + $0x650] sm:$0xff] }
  0xa6   :  { %2617 = vmatpush.bf16.msrb.mxu0 %v7653_v22  ;;  %v2391_v43 = vpop.f32.mrf.mxu2  ;;  %v2367_v46 = vpop.f32.mrf.mxu0  ;;  %v7691_v22 = vld [vmem:[%s10838_s2 + $0x660] sm:$0xff]  ;;  %v7725_v4 = vld [vmem:[%s10838_s2 + $0x770] sm:$0xff] }
  0xa7   :  { %2630 = vmatpush.bf16.msrb.mxu1 %v7661_v23  ;;  %v2392_v45 = vadd.f32 %v2391_v43, %v2379_v38  ;;  %v2404_v49 = vpop.f32.mrf.mxu3  ;;  %v2380_v50 = vpop.f32.mrf.mxu1  ;;  %v7699_v23 = vld [vmem:[%s10838_s2 + $0x6a0] sm:$0xff]  ;;  %v7680_v43 = vld [vmem:[%s10838_s2 + $0x608] sm:$0xff] }
  0xa8   :  { %2643 = vmatpush.bf16.msrb.mxu2 %v7669_v24  ;;  %v52_v46 = vld [vmem:[%s10837_s1 + $0x60] sm:$0xff] }
  0xa9   :  { %2656 = vmatpush.bf16.msrb.mxu3 %v7677_v25  ;;  %v8714_v52 = vadd.f32 %v2404_v49, %v2392_v45  ;;  %v7696_v45 = vld [vmem:[%s10838_s2 + $0x688] sm:$0xff]  ;;  %v7679_v50 = vld [vmem:[%s10838_s2 + $0x600] sm:$0xff] }
  0xaa   :  { %2618 = vmatpush.bf16.msrb.mxu0 %v7652_v26  ;;  %v7704_v49 = vld [vmem:[%s10838_s2 + $0x6c8] sm:$0xff] }
  0xab   :  { %2631 = vmatpush.bf16.msrb.mxu1 %v7660_v27  ;;  %v7707_v27 = vld [vmem:[%s10838_s2 + $0x6e0] sm:$0xff] }
  0xac   :  { %2644 = vmatpush.bf16.msrb.mxu2 %v7668_v28  ;;  %v7682_v28 = vld [vmem:[%s10838_s2 + $0x618] sm:$0xff] }
  0xad   :  { %2657 = vmatpush.bf16.msrb.mxu3 %v7676_v30  ;;  %v7690_v30 = vld [vmem:[%s10838_s2 + $0x658] sm:$0xff] }
  0xae   :  { %2619 = vmatpush.bf16.msrb.mxu0 %v7651_v31  ;;  %v2393_v59 = vpop.f32.mrf.mxu2  ;;  %v7698_v31 = vld [vmem:[%s10838_s2 + $0x698] sm:$0xff] }
  0xaf   :  { %2632 = vmatpush.bf16.msrb.mxu1 %v7659_v33  ;;  %v2406_v5 = vpop.f32.mrf.mxu3  ;;  %v7706_v33 = vld [vmem:[%s10838_s2 + $0x6d8] sm:$0xff] }
  0xb0   :  { %2645 = vmatpush.bf16.msrb.mxu2 %v7667_v34  ;;  %v7733_v5 = vld [vmem:[%s10838_s2 + $0x7b0] sm:$0xff] }
  0xb1   :  { %2658 = vmatpush.bf16.msrb.mxu3 %v7675_v37  ;;  %v7697_v37 = vld [vmem:[%s10838_s2 + $0x690] sm:$0xff] }
  0xb2   :  { %2620 = vmatpush.bf16.msrb.mxu0 %v7650_v39 }
  0xb3   :  { %2633 = vmatpush.bf16.msrb.mxu1 %v7658_v40 }
  0xb4   :  { %2646 = vmatpush.bf16.msrb.mxu2 %v7666_v41 }
  0xb5   :  { %2659 = vmatpush.bf16.msrb.mxu3 %v7674_v42  ;;  %v7705_v42 = vld [vmem:[%s10838_s2 + $0x6d0] sm:$0xff] }
  0xb6   :  { %2621 = vmatpush.bf16.msrb.mxu0 %v7649_v44  ;;  %v7688_v44 = vld [vmem:[%s10838_s2 + $0x648] sm:$0xff] }
  0xb7   :  { %2634 = vmatpush.bf16.msrb.mxu1 %v7657_v47  ;;  %v53_v47 = vld [vmem:[%s10837_s1 + $0x68] sm:$0xff] }
  0xb8   :  { %2647 = vmatpush.bf16.msrb.mxu2 %v7665_v48  ;;  %v649_v59 = vunpack.c.h.b16 %v53_v47 }
  0xb9   :  { %2660 = vmatpush.bf16.msrb.mxu3 %v7673_v51  ;;  %v646_v51 = vunpack.c.l.b16 %v52_v46 }
  0xba   :  { %2622 = vmatpush.bf16.msrb.mxu0 %v7648_v53  ;;  %v7687_v53 = vld [vmem:[%s10838_s2 + $0x640] sm:$0xff] }
  0xbb   :  { %2635 = vmatpush.bf16.msrb.mxu1 %v7656_v54  ;;  %v7695_v54 = vld [vmem:[%s10838_s2 + $0x680] sm:$0xff]  ;;  %v680_v62 = vpack.c.b16 %v646_v51, %v646_v51 }
  0xbc   :  { %2648 = vmatpush.bf16.msrb.mxu2 %v7664_v55  ;;  %v647_v55 = vunpack.c.h.b16 %v52_v46  ;;  %v7727_v46 = vld [vmem:[%s10838_s2 + $0x780] sm:$0xff] }
  0xbd   :  { %2661 = vmatpush.bf16.msrb.mxu3 %v7672_v58  ;;  %v7726_v58 = vld [vmem:[%s10838_s2 + $0x778] sm:$0xff] }
  0xbe   :  { %2623 = vmatpush.bf16.msrb.mxu0 %v7647_v60  ;;  %v2417_v24 = vpop.f32.mrf.mxu0  ;;  %v7734_v60 = vld [vmem:[%s10838_s2 + $0x7b8] sm:$0xff]  ;;  %v681_v1 = vpack.c.b16 %v647_v55, %v647_v55  ;;  %v7749_v55 = vld [vmem:[%s10838_s2 + $0x830] sm:$0xff] }
  0xbf   :  { %2636 = vmatpush.bf16.msrb.mxu1 %v7655_v63  ;;  %v2430_v25 = vpop.f32.mrf.mxu1  ;;  %v2418_v26 = vadd.f32 %v2417_v24, %v8714_v52  ;;  %v648_v52 = vunpack.c.l.b16 %v53_v47  ;;  %v7738_v24 = vld [vmem:[%s10838_s2 + $0x7d8] sm:$0xff] }
  0xc0   :  { %2649 = vmatpush.bf16.msrb.mxu2 %v7663_v0  ;;  %v7742_v0 = vld [vmem:[%s10838_s2 + $0x7f8] sm:$0xff] }
  0xc1   :  { %2662 = vmatpush.bf16.msrb.mxu3 %v7671_v7  ;;  %2624 = vmatmul.bf16.vlgmr.msrb.gmra.mxu0 %v676_v8  ;;  %v2431_v29 = vadd.f32 %v2430_v25, %v2418_v26  ;;  %v682_v63 = vpack.c.b16 %v648_v52, %v648_v52  ;;  %v7716_v7 = vld [vmem:[%s10838_s2 + $0x728] sm:$0xff]  ;;  %v7750_v47 = vld [vmem:[%s10838_s2 + $0x838] sm:$0xff] }
  0xc2   :  { %2668 = vmatpush.bf16.msra.mxu0 %v7686_v2  ;;  %2637 = vmatmul.bf16.vlgmr.msrb.gmra.mxu1 %v677_v11  ;;  %v683_v2 = vpack.c.b16 %v649_v59, %v649_v59  ;;  %v7724_v8 = vld [vmem:[%s10838_s2 + $0x768] sm:$0xff] }
  0xc3   :  { %2681 = vmatpush.bf16.msra.mxu1 %v7694_v3  ;;  %2650 = vmatmul.bf16.vlgmr.msrb.gmra.mxu2 %v678_v9  ;;  %v7717_v3 = vld [vmem:[%s10838_s2 + $0x730] sm:$0xff]  ;;  %v7732_v9 = vld [vmem:[%s10838_s2 + $0x7a8] sm:$0xff] }
  0xc4   :  { %2694 = vmatpush.bf16.msra.mxu2 %v7702_v6  ;;  %2663 = vmatmul.bf16.vlgmr.msrb.gmra.mxu3 %v679_v12  ;;  %v7741_v6 = vld [vmem:[%s10838_s2 + $0x7f0] sm:$0xff] }
  0xc5   :  { %2707 = vmatpush.bf16.msra.mxu3 %v7710_v10  ;;  %v7740_v10 = vld [vmem:[%s10838_s2 + $0x7e8] sm:$0xff] }
  0xc6   :  { %2669 = vmatpush.bf16.msra.mxu0 %v7685_v13  ;;  %v2443_v32 = vpop.f32.mrf.mxu2  ;;  %v2419_v39 = vpop.f32.mrf.mxu0  ;;  %v7715_v13 = vld [vmem:[%s10838_s2 + $0x720] sm:$0xff] }
  0xc7   :  { %2682 = vmatpush.bf16.msra.mxu1 %v7693_v14  ;;  %v2444_v34 = vadd.f32 %v2443_v32, %v2431_v29  ;;  %v2456_v38 = vpop.f32.mrf.mxu3  ;;  %v2432_v41 = vpop.f32.mrf.mxu1  ;;  %v7723_v14 = vld [vmem:[%s10838_s2 + $0x760] sm:$0xff]  ;;  %v7721_v29 = vld [vmem:[%s10838_s2 + $0x750] sm:$0xff]  ;;  %v7736_v39 = vld [vmem:[%s10838_s2 + $0x7c8] sm:$0xff] }
  0xc8   :  { %2695 = vmatpush.bf16.msra.mxu2 %v7701_v15  ;;  %v7731_v15 = vld [vmem:[%s10838_s2 + $0x7a0] sm:$0xff]  ;;  %v7737_v32 = vld [vmem:[%s10838_s2 + $0x7d0] sm:$0xff] }
  0xc9   :  { %2708 = vmatpush.bf16.msra.mxu3 %v7709_v16  ;;  %v2457_v40 = vadd.f32 %v2456_v38, %v2444_v34  ;;  %v54_v34 = vld [vmem:[%s10837_s1 + $0x70] sm:$0xff]  ;;  %v7711_v41 = vld [vmem:[%s10838_s2 + $0x700] sm:$0xff] }
  0xca   :  { %2670 = vmatpush.bf16.msra.mxu0 %v7684_v17 }
  0xcb   :  { %2683 = vmatpush.bf16.msra.mxu1 %v7692_v18  ;;  %v7739_v18 = vld [vmem:[%s10838_s2 + $0x7e0] sm:$0xff] }
  0xcc   :  { %2696 = vmatpush.bf16.msra.mxu2 %v7700_v19  ;;  %v7714_v19 = vld [vmem:[%s10838_s2 + $0x718] sm:$0xff] }
  0xcd   :  { %2709 = vmatpush.bf16.msra.mxu3 %v7708_v20  ;;  %v7722_v20 = vld [vmem:[%s10838_s2 + $0x758] sm:$0xff] }
  0xce   :  { %2671 = vmatpush.bf16.msra.mxu0 %v7683_v21  ;;  %v2445_v48 = vpop.f32.mrf.mxu2  ;;  %v7730_v21 = vld [vmem:[%s10838_s2 + $0x798] sm:$0xff] }
  0xcf   :  { %2684 = vmatpush.bf16.msra.mxu1 %v7691_v22  ;;  %v2458_v56 = vpop.f32.mrf.mxu3  ;;  %v7758_v48 = vld [vmem:[%s10838_s2 + $0x878] sm:$0xff] }
  0xd0   :  { %2697 = vmatpush.bf16.msra.mxu2 %v7699_v23  ;;  %v7757_v56 = vld [vmem:[%s10838_s2 + $0x870] sm:$0xff] }
  0xd1   :  { %2710 = vmatpush.bf16.msra.mxu3 %v7707_v27  ;;  %v7713_v27 = vld [vmem:[%s10838_s2 + $0x710] sm:$0xff] }
  0xd2   :  { %2672 = vmatpush.bf16.msra.mxu0 %v7682_v28 }
  0xd3   :  { %2685 = vmatpush.bf16.msra.mxu1 %v7690_v30  ;;  %v7729_v30 = vld [vmem:[%s10838_s2 + $0x790] sm:$0xff] }
  0xd4   :  { %2698 = vmatpush.bf16.msra.mxu2 %v7698_v31 }
  0xd5   :  { %2711 = vmatpush.bf16.msra.mxu3 %v7706_v33  ;;  %v7712_v33 = vld [vmem:[%s10838_s2 + $0x708] sm:$0xff] }
  0xd6   :  { %2673 = vmatpush.bf16.msra.mxu0 %v7681_v35  ;;  %v7720_v35 = vld [vmem:[%s10838_s2 + $0x748] sm:$0xff] }
  0xd7   :  { %2686 = vmatpush.bf16.msra.mxu1 %v7689_v36  ;;  %v7728_v36 = vld [vmem:[%s10838_s2 + $0x788] sm:$0xff] }
  0xd8   :  { %2699 = vmatpush.bf16.msra.mxu2 %v7697_v37  ;;  %v55_v37 = vld [vmem:[%s10837_s1 + $0x78] sm:$0xff] }
  0xd9   :  { %2712 = vmatpush.bf16.msra.mxu3 %v7705_v42  ;;  %v652_v42 = vunpack.c.l.b16 %v55_v37 }
  0xda   :  { %2674 = vmatpush.bf16.msra.mxu0 %v7680_v43  ;;  %v651_v43 = vunpack.c.h.b16 %v54_v34 }
  0xdb   :  { %2687 = vmatpush.bf16.msra.mxu1 %v7688_v44  ;;  %v686_v52 = vpack.c.b16 %v652_v42, %v652_v42 }
  0xdc   :  { %2700 = vmatpush.bf16.msra.mxu2 %v7696_v45  ;;  %v7719_v45 = vld [vmem:[%s10838_s2 + $0x740] sm:$0xff] }
  0xdd   :  { %2713 = vmatpush.bf16.msra.mxu3 %v7704_v49  ;;  %v653_v49 = vunpack.c.h.b16 %v55_v37 }
  0xde   :  { %2675 = vmatpush.bf16.msra.mxu0 %v7679_v50  ;;  %v2469_v11 = vpop.f32.mrf.mxu0  ;;  %v7735_v50 = vld [vmem:[%s10838_s2 + $0x7c0] sm:$0xff] }
  0xdf   :  { %2688 = vmatpush.bf16.msra.mxu1 %v7687_v53  ;;  %v2470_v12 = vadd.f32 %v2469_v11, %v2457_v40  ;;  %v2482_v16 = vpop.f32.mrf.mxu1  ;;  %v650_v40 = vunpack.c.l.b16 %v54_v34  ;;  %v685_v53 = vpack.c.b16 %v651_v43, %v651_v43  ;;  %v7744_v11 = vld [vmem:[%s10838_s2 + $0x808] sm:$0xff] }
  0xe0   :  { %2701 = vmatpush.bf16.msra.mxu2 %v7695_v54  ;;  %v687_v54 = vpack.c.b16 %v653_v49, %v653_v49 }
  0xe1   :  { %2714 = vmatpush.bf16.msra.mxu3 %v7703_v61  ;;  %2676 = vmatmul.bf16.vlgmr.msra.gmra.mxu0 %v680_v62  ;;  %v2483_v17 = vadd.f32 %v2482_v16, %v2470_v12  ;;  %v684_v51 = vpack.c.b16 %v650_v40, %v650_v40  ;;  %v7747_v61 = vld [vmem:[%s10838_s2 + $0x820] sm:$0xff] }
  0xe2   :  { %2720 = vmatpush.bf16.msrb.mxu0 %v7718_v57  ;;  %2689 = vmatmul.bf16.vlgmr.msra.gmra.mxu1 %v681_v1  ;;  %v7748_v57 = vld [vmem:[%s10838_s2 + $0x828] sm:$0xff]  ;;  %v7746_v1 = vld [vmem:[%s10838_s2 + $0x818] sm:$0xff]  ;;  %v56_v12 = vld [vmem:[%s10837_s1 + $0x80] sm:$0xff]  ;;  %s2877_s1 = sshrl.u32 %s2876_s22, 16 }
  0xe3   :  { %2733 = vmatpush.bf16.msrb.mxu1 %v7726_v58  ;;  %2702 = vmatmul.bf16.vlgmr.msra.gmra.mxu2 %v682_v63  ;;  %v7756_v58 = vld [vmem:[%s10838_s2 + $0x868] sm:$0xff]  ;;  %v7755_v63 = vld [vmem:[%s10838_s2 + $0x860] sm:$0xff] }
  0xe4   :  { %2746 = vmatpush.bf16.msrb.mxu2 %v7734_v60  ;;  %2715 = vmatmul.bf16.vlgmr.msra.gmra.mxu3 %v683_v2  ;;  %v7754_v2 = vld [vmem:[%s10838_s2 + $0x858] sm:$0xff] }
  0xe5   :  { %2759 = vmatpush.bf16.msrb.mxu3 %v7742_v0 }
  0xe6   :  { %2721 = vmatpush.bf16.msrb.mxu0 %v7717_v3  ;;  %v2495_v22 = vpop.f32.mrf.mxu2  ;;  %v2471_v25 = vpop.f32.mrf.mxu0 }
  0xe7   :  { %2734 = vmatpush.bf16.msrb.mxu1 %v7725_v4  ;;  %v2496_v23 = vadd.f32 %v2495_v22, %v2483_v17  ;;  %v2508_v26 = vpop.f32.mrf.mxu3  ;;  %v2484_v31 = vpop.f32.mrf.mxu1  ;;  %v7743_v17 = vld [vmem:[%s10838_s2 + $0x800] sm:$0xff] }
  0xe8   :  { %2747 = vmatpush.bf16.msrb.mxu2 %v7733_v5 }
  0xe9   :  { %2760 = vmatpush.bf16.msrb.mxu3 %v7741_v6  ;;  %v2509_v28 = vadd.f32 %v2508_v26, %v2496_v23 }
  0xea   :  { %2722 = vmatpush.bf16.msrb.mxu0 %v7716_v7  ;;  %v7745_v7 = vld [vmem:[%s10838_s2 + $0x810] sm:$0xff] }
  0xeb   :  { %2735 = vmatpush.bf16.msrb.mxu1 %v7724_v8 }
  0xec   :  { %2748 = vmatpush.bf16.msrb.mxu2 %v7732_v9 }
  0xed   :  { %2761 = vmatpush.bf16.msrb.mxu3 %v7740_v10  ;;  %v7753_v10 = vld [vmem:[%s10838_s2 + $0x850] sm:$0xff] }
  0xee   :  { %2723 = vmatpush.bf16.msrb.mxu0 %v7715_v13  ;;  %v2497_v38 = vpop.f32.mrf.mxu2  ;;  %v7752_v13 = vld [vmem:[%s10838_s2 + $0x848] sm:$0xff] }
  0xef   :  { %2736 = vmatpush.bf16.msrb.mxu1 %v7723_v14  ;;  %v2510_v44 = vpop.f32.mrf.mxu3 }
  0xf0   :  { %2749 = vmatpush.bf16.msrb.mxu2 %v7731_v15  ;;  %v654_v15 = vunpack.c.l.b16 %v56_v12 }
  0xf1   :  { %2762 = vmatpush.bf16.msrb.mxu3 %v7739_v18  ;;  %v655_v18 = vunpack.c.h.b16 %v56_v12 }
  0xf2   :  { %2724 = vmatpush.bf16.msrb.mxu0 %v7714_v19  ;;  %v7751_v19 = vld [vmem:[%s10838_s2 + $0x840] sm:$0xff]  ;;  %s2878_s2 = sxor.u32 %s2877_s1, %s2876_s22  ;;  %s5171_s1 = sshll.u32 %s10846_s10, 4  ;;  %s5172_s1 = int_to_ptr.hbm [resolvable:$true] %s5171_s1 }
  0xf3   :  { %2737 = vmatpush.bf16.msrb.mxu1 %v7722_v20  ;;  %v688_v20 = vpack.c.b16 %v654_v15, %v654_v15 }
  0xf4   :  { %2750 = vmatpush.bf16.msrb.mxu2 %v7730_v21  ;;  %v689_v21 = vpack.c.b16 %v655_v18, %v655_v18 }
  0xf5   :  { %2763 = vmatpush.bf16.msrb.mxu3 %v7738_v24 }
  0xf6   :  { %2725 = vmatpush.bf16.msrb.mxu0 %v7713_v27 }
  0xf7   :  { %2738 = vmatpush.bf16.msrb.mxu1 %v7721_v29 }
  0xf8   :  { %2751 = vmatpush.bf16.msrb.mxu2 %v7729_v30 }
  0xf9   :  { %2764 = vmatpush.bf16.msrb.mxu3 %v7737_v32 }
  0xfa   :  { %2726 = vmatpush.bf16.msrb.mxu0 %v7712_v33 }
  0xfb   :  { %2739 = vmatpush.bf16.msrb.mxu1 %v7720_v35 }
  0xfc   :  { %2752 = vmatpush.bf16.msrb.mxu2 %v7728_v36 }
  0xfd   :  { %2765 = vmatpush.bf16.msrb.mxu3 %v7736_v39 }
  0xfe   :  { %2727 = vmatpush.bf16.msrb.mxu0 %v7711_v41  ;;  %v2521_v59 = vpop.f32.mrf.mxu0 }
  0xff   :  { %2740 = vmatpush.bf16.msrb.mxu1 %v7719_v45  ;;  %v2522_v60 = vadd.f32 %v2521_v59, %v2509_v28  ;;  %v2534_v62 = vpop.f32.mrf.mxu1 }
 0x100   :  { %2753 = vmatpush.bf16.msrb.mxu2 %v7727_v46 }
 0x101   :  { %2766 = vmatpush.bf16.msrb.mxu3 %v7735_v50  ;;  %2728 = vmatmul.bf16.vlgmr.msrb.gmra.mxu0 %v684_v51  ;;  %v2535_v0 = vadd.f32 %v2534_v62, %v2522_v60  ;;  %v2808_v51 = vlaneseq }
 0x102   :  { %2772 = vmatpush.bf16.msra.mxu0 %v7750_v47  ;;  %2741 = vmatmul.bf16.vlgmr.msrb.gmra.mxu1 %v685_v53 }
 0x103   :  { %2785 = vmatpush.bf16.msra.mxu1 %v7758_v48  ;;  %2754 = vmatmul.bf16.vlgmr.msrb.gmra.mxu2 %v686_v52  ;;  %v9005_v53 = vshrl.u32 %v2808_v51, 7 }
 0x104   :  { %2767 = vmatmul.bf16.vlgmr.msrb.gmra.mxu3 %v687_v54  ;;  %v9007_v54 = vand.u32 127, %v2808_v51 }
 0x106   :  { %2773 = vmatpush.bf16.msra.mxu0 %v7749_v55  ;;  %v2547_v3 = vpop.f32.mrf.mxu2  ;;  %v2523_v6 = vpop.f32.mrf.mxu0  ;;  %v2814_v55 = vmul.u32 32, %v9005_v53 }
 0x107   :  { %2786 = vmatpush.bf16.msra.mxu1 %v7757_v56  ;;  %v2548_v4 = vadd.f32 %v2547_v3, %v2535_v0  ;;  %v2560_v5 = vpop.f32.mrf.mxu3  ;;  %v2536_v8 = vpop.f32.mrf.mxu1 }
 0x108   :  { %v2815_v56 = vadd.s32 %v2814_v55, %v9007_v54  ;;  %v7759_v8 = vld [vmem:[%s10840_s4] sm:$0xff]  ;;  %v7259_v55 = vld [vmem:[%s10844_s8 + $0x778] sm:$0xf] }
 0x109   :  { %v2561_v9 = vadd.f32 %v2560_v5, %v2548_v4 }
 0x10a   :  { %2774 = vmatpush.bf16.msra.mxu0 %v7748_v57  ;;  %v2816_v57 = vstv %s2807_s30 }
 0x10b   :  { %2787 = vmatpush.bf16.msra.mxu1 %v7756_v58 }
 0x10e   :  { %2775 = vmatpush.bf16.msra.mxu0 %v7747_v61  ;;  %v2549_v14 = vpop.f32.mrf.mxu2  ;;  %v2817_v61 = vxor.u32 %v2816_v57, %v2815_v56  ;;  %v8021_v56 = vld [vmem:[%s10844_s8 + $0x7fc] sm:$0xf0] }
 0x10f   :  { %2788 = vmatpush.bf16.msra.mxu1 %v7755_v63  ;;  %v2562_v16 = vpop.f32.mrf.mxu3 }
 0x110   :  { %v2818_v63 = vshrl.u32 %v2817_v61, 16 }
 0x112   :  { %2776 = vmatpush.bf16.msra.mxu0 %v7746_v1  ;;  %v2819_v6 = vxor.u32 %v2818_v63, %v2817_v61  ;;  %v7115_v61 = vld [vmem:[%s10844_s8 + $0x660] sm:$0xf]  ;;  %v7986_v63 = vld [vmem:[%s10844_s8 + $0x6e4] sm:$0xf0] }
 0x113   :  { %2789 = vmatpush.bf16.msra.mxu1 %v7754_v2  ;;  %v7760_v2 = vld [vmem:[%s10840_s4 + $0x8] sm:$0xff] }
 0x114   :  { %2862 = vmatpush.bf16.msra.mxu2 %v7760_v2  ;;  %v7116_v2 = vor.u32 %v7986_v63, %v7115_v61 }
 0x116   :  { %2777 = vmatpush.bf16.msra.mxu0 %v7745_v7 }
 0x117   :  { %2790 = vmatpush.bf16.msra.mxu1 %v7753_v10  ;;  %v2820_v10 = vmul.u32 2246822507, %v2819_v6  ;;  %v7970_v6 = vld [vmem:[%s10844_s8 + $0x66c] sm:$0xf] }
 0x118   :  { %2863 = vmatpush.bf16.msra.mxu2 %v7759_v8  ;;  %v7125_v8 = vld [vmem:[%s10844_s8 + $0x6f0] sm:$0xf0] }
 0x119   :  { %v2821_v14 = vshrl.u32 %v2820_v10, 13 }
 0x11a   :  { %2778 = vmatpush.bf16.msra.mxu0 %v7744_v11 }
 0x11b   :  { %2791 = vmatpush.bf16.msra.mxu1 %v7752_v13  ;;  %v2822_v16 = vxor.u32 %v2821_v14, %v2820_v10  ;;  %v7952_v10 = vld [vmem:[%s10844_s8 + $0x5d4] sm:$0xf0] }
 0x11c   :  { %v6987_v14 = vld [vmem:[%s10844_s8 + $0x558] sm:$0xf] }
 0x11e   :  { %2779 = vmatpush.bf16.msra.mxu0 %v7743_v17  ;;  %v2573_v22 = vpop.f32.mrf.mxu0 }
 0x11f   :  { %2792 = vmatpush.bf16.msra.mxu1 %v7751_v19  ;;  %v2574_v23 = vadd.f32 %v2573_v22, %v2561_v9  ;;  %v2586_v24 = vpop.f32.mrf.mxu1  ;;  %v2823_v19 = vmul.u32 3266489909, %v2822_v16  ;;  %v7953_v16 = vld [vmem:[%s10844_s8 + $0x5dc] sm:$0xf0] }
 0x121   :  { %2780 = vmatmul.bf16.vlgmr.msra.gmra.mxu0 %v688_v20  ;;  %v2587_v25 = vadd.f32 %v2586_v24, %v2574_v23 }
 0x122   :  { %2793 = vmatmul.bf16.vlgmr.msra.gmra.mxu1 %v689_v21  ;;  %v2824_v21 = vshrl.u32 %v2823_v19, 16 }
 0x126   :  { %v2599_v26 = vpop.f32.mrf.mxu2  ;;  %v2575_v29 = vpop.f32.mrf.mxu0 }
 0x127   :  { %v2600_v27 = vadd.f32 %v2599_v26, %v2587_v25  ;;  %v2612_v28 = vpop.f32.mrf.mxu3  ;;  %v2588_v31 = vpop.f32.mrf.mxu1  ;;  %v2825_v26 = vxor.u32 %v2824_v21, %v2823_v19  ;;  %v6843_v21 = vld [vmem:[%s10844_s8 + $0x440] sm:$0xf] }
 0x129   :  { %v2613_v30 = vadd.f32 %v2612_v28, %v2600_v27  ;;  %v6268_v27 = vxor.u32 2147483648, %v2825_v26  ;;  %v6851_v26 = vld [vmem:[%s10844_s8 + $0x448] sm:$0xf] }
 0x12b   :  { %vm2828_vm0 = vcmp.ge.s32.totalorder %v6268_v27, 3006477107  ;;  %v7919_v27 = vld [vmem:[%s10844_s8 + $0x4cc] sm:$0xf0] }
 0x12e   :  { %v2601_v32 = vpop.f32.mrf.mxu2 }
 0x12f   :  { %v2614_v33 = vpop.f32.mrf.mxu3 }
 0x13e   :  { %v2625_v34 = vpop.f32.mrf.mxu0 }
 0x13f   :  { %v2626_v35 = vadd.f32 %v2625_v34, %v2613_v30  ;;  %v2638_v36 = vpop.f32.mrf.mxu1  ;;  %v2879_v34 = vmul.u32 64, %v9005_v53 }
 0x141   :  { %v2639_v37 = vadd.f32 %v2638_v36, %v2626_v35  ;;  %v2880_v35 = vadd.s32 %v2879_v34, %v9007_v54  ;;  %v2881_v36 = vstv %s2878_s2  ;;  %v6707_v34 = vld [vmem:[%s10844_s8 + $0x330] sm:$0xf]  ;;  %s2951_s2 = sxor.u32 2496678331, %s10836_s0 }
 0x142   :  { %s2952_s23 = sshrl.u32 %s2951_s2, 16 }
 0x143   :  { %s2953_s24 = sxor.u32 %s2952_s23, %s2951_s2 }
 0x144   :  { %s2954_s3 = smul.u32 2246822507, %s2953_s24 }
 0x146   :  { %v2651_v38 = vpop.f32.mrf.mxu2  ;;  %v2627_v40 = vpop.f32.mrf.mxu0  ;;  %s2955_s25 = sshrl.u32 %s2954_s3, 13 }
 0x147   :  { %v2664_v39 = vpop.f32.mrf.mxu3  ;;  %v2640_v41 = vpop.f32.mrf.mxu1  ;;  %v2652_v59 = vadd.f32 %v2651_v38, %v2639_v37  ;;  %v2882_v37 = vxor.u32 %v2881_v36, %v2880_v35  ;;  %v7764_v40 = vld [vmem:[%s10842_s6 + $0x18] sm:$0xff]  ;;  %v7867_v36 = vld [vmem:[%s10844_s8 + $0x334] sm:$0xf]  ;;  %s2956_s26 = sxor.u32 %s2955_s25, %s2954_s3 }
 0x148   :  { %2941 = vmatpush.bf16.msra.mxu3 %v7764_v40  ;;  %v7884_v35 = vld [vmem:[%s10844_s8 + $0x3b4] sm:$0xf0]  ;;  %v7885_v40 = vld [vmem:[%s10844_s8 + $0x3bc] sm:$0xf0]  ;;  %s2957_s27 = smul.u32 3266489909, %s2956_s26 }
 0x149   :  { %v2665_v62 = vadd.f32 %v2664_v39, %v2652_v59  ;;  %v2883_v38 = vshrl.u32 %v2882_v37, 16  ;;  %v8004_v59 = vld [vmem:[%s10844_s8 + $0x77c] sm:$0xf] }
 0x14a   :  { %s2958_s28 = sshrl.u32 %s2957_s27, 16 }
 0x14b   :  { %v2884_v39 = vxor.u32 %v2883_v38, %v2882_v37  ;;  %v6709_v38 = vld [vmem:[%s10844_s8 + $0x3b8] sm:$0xf0]  ;;  %s2959_s29 = sxor.u32 %s2958_s28, %s2957_s27 }
 0x14d   :  { %v2885_v41 = vmul.u32 2246822507, %v2884_v39  ;;  %v6715_v39 = vld [vmem:[%s10844_s8 + $0x338] sm:$0xf] }
 0x14e   :  { %v2653_v42 = vpop.f32.mrf.mxu2 }
 0x14f   :  { %v2666_v43 = vpop.f32.mrf.mxu3  ;;  %v7763_v42 = vld [vmem:[%s10842_s6 + $0x10] sm:$0xff] }
 0x150   :  { %2942 = vmatpush.bf16.msra.mxu3 %v7763_v42  ;;  %v2886_v43 = vshrl.u32 %v2885_v41, 13  ;;  %v7868_v42 = vld [vmem:[%s10844_s8 + $0x33c] sm:$0xf] }
 0x15e   :  { %v2677_v44 = vpop.f32.mrf.mxu0 }
 0x15f   :  { %v2690_v45 = vpop.f32.mrf.mxu1  ;;  %v2678_v0 = vadd.f32 %v2677_v44, %v2665_v62  ;;  %v7762_v44 = vld [vmem:[%s10842_s6 + $0x8] sm:$0xff] }
 0x160   :  { %2943 = vmatpush.bf16.msra.mxu3 %v7762_v44 }
 0x161   :  { %v2691_v7 = vadd.f32 %v2690_v45, %v2678_v0  ;;  %v9031_v45 = vxor.u32 %v2886_v43, %v2885_v41  ;;  %v7969_v0 = vld [vmem:[%s10844_s8 + $0x664] sm:$0xf]  ;;  %v8039_v41 = vld [vmem:[%s10841_s5] ss:$0 sm:$0xff] }
 0x162   :  { %v6717_v43 = vld [vmem:[%s10844_s8 + $0x3c0] sm:$0xf0] }
 0x166   :  { %v2703_v46 = vpop.f32.mrf.mxu2  ;;  %v2679_v48 = vpop.f32.mrf.mxu0 }
 0x167   :  { %v2716_v47 = vpop.f32.mrf.mxu3  ;;  %v2692_v49 = vpop.f32.mrf.mxu1  ;;  %v2704_v9 = vadd.f32 %v2703_v46, %v2691_v7  ;;  %v7761_v46 = vld [vmem:[%s10842_s6] sm:$0xff]  ;;  %v7251_v48 = vld [vmem:[%s10844_s8 + $0x770] sm:$0xf] }
 0x168   :  { %2944 = vmatpush.bf16.msra.mxu3 %v7761_v46  ;;  %v8020_v49 = vld [vmem:[%s10844_s8 + $0x7f4] sm:$0xf0]  ;;  %v6708_v46 = vor.u32 %v7884_v35, %v6707_v34  ;;  %v8006_v34 = vld [vmem:[%s10844_s8 + $0x78c] sm:$0xf]  ;;  %v7277_v35 = vld [vmem:[%s10844_s8 + $0x810] sm:$0xf0] }
 0x169   :  { %v2717_v12 = vadd.f32 %v2716_v47, %v2704_v9  ;;  %v2888_v47 = vmul.u32 3266489909, %v9031_v45  ;;  %v7252_v51 = vor.u32 %v8020_v49, %v7251_v48  ;;  %v6979_v9 = vld [vmem:[%s10844_s8 + $0x550] sm:$0xf]  ;;  %v6712_v48 = vor.u32 %v7867_v36, %v6709_v38 }
 0x16a   :  { %v6716_v49 = vor.u32 %v7885_v40, %v6715_v39 }
 0x16b   :  { %4688 = vmatpush.bf16.msrb.mxu2 %v7252_v51  ;;  %v7850_v51 = vld [vmem:[%s10844_s8 + $0x2a4] sm:$0xf0] }
 0x16e   :  { %v2705_v50 = vpop.f32.mrf.mxu2 }
 0x16f   :  { %v2718_v52 = vpop.f32.mrf.mxu3  ;;  %v8003_v50 = vld [vmem:[%s10844_s8 + $0x774] sm:$0xf]  ;;  %4689 = vmatpush.bf16.msrb.mxu2 %v7116_v2  ;;  %v7816_v2 = vld [vmem:[%s10844_s8 + $0x194] sm:$0xf0] }
 0x170   :  { %v7253_v52 = vld [vmem:[%s10844_s8 + $0x7f8] sm:$0xf0] }
 0x171   :  { %v7256_v57 = vor.u32 %v8003_v50, %v7253_v52  ;;  %v6571_v50 = vld [vmem:[%s10844_s8 + $0x220] sm:$0xf]  ;;  %v7833_v52 = vld [vmem:[%s10844_s8 + $0x224] sm:$0xf] }
 0x173   :  { %4701 = vmatpush.bf16.msrb.mxu3 %v7256_v57  ;;  %v7851_v57 = vld [vmem:[%s10844_s8 + $0x2ac] sm:$0xf0] }
 0x17e   :  { %v2729_v58 = vpop.f32.mrf.mxu0 }
 0x17f   :  { %v2742_v60 = vpop.f32.mrf.mxu1  ;;  %v2730_v15 = vadd.f32 %v2729_v58, %v2717_v12  ;;  %v7260_v58 = vor.u32 %v8021_v56, %v7259_v55  ;;  %v7935_v12 = vld [vmem:[%s10844_s8 + $0x554] sm:$0xf]  ;;  %v6573_v55 = vld [vmem:[%s10844_s8 + $0x2a8] sm:$0xf0]  ;;  %v6579_v56 = vld [vmem:[%s10844_s8 + $0x228] sm:$0xf] }
 0x180   :  { %v6576_v63 = vor.u32 %v7833_v52, %v6573_v55  ;;  %v7972_v52 = vld [vmem:[%s10844_s8 + $0x67c] sm:$0xf] }
 0x181   :  { %v2743_v17 = vadd.f32 %v2742_v60, %v2730_v15  ;;  %v7261_v60 = vld [vmem:[%s10844_s8 + $0x800] sm:$0xf0]  ;;  %4714 = vmatpush.bf16.msrb.mxu0 %v7260_v58  ;;  %v6980_v15 = vor.u32 %v7952_v10, %v6979_v9  ;;  %v6867_v10 = vld [vmem:[%s10844_s8 + $0x458] sm:$0xf] }
 0x182   :  { %v7264_v62 = vor.u32 %v8004_v59, %v7261_v60  ;;  %v7834_v59 = vld [vmem:[%s10844_s8 + $0x22c] sm:$0xf]  ;;  %v6581_v60 = vld [vmem:[%s10844_s8 + $0x2b0] sm:$0xf0]  ;;  %v6445_v9 = vld [vmem:[%s10844_s8 + $0x1a0] sm:$0xf0] }
 0x183   :  { %4690 = vmatpush.bf16.msrb.mxu2 %v6980_v15 }
 0x184   :  { %4727 = vmatpush.bf16.msrb.mxu1 %v7264_v62  ;;  %v6572_v62 = vor.u32 %v7850_v51, %v6571_v50  ;;  %v7139_v50 = vld [vmem:[%s10844_s8 + $0x678] sm:$0xf]  ;;  %v7989_v51 = vld [vmem:[%s10844_s8 + $0x6fc] sm:$0xf0] }
 0x186   :  { %v2755_v1 = vpop.f32.mrf.mxu2  ;;  %v2731_v3 = vpop.f32.mrf.mxu0 }
 0x187   :  { %v2768_v4 = vpop.f32.mrf.mxu3  ;;  %v2744_v5 = vpop.f32.mrf.mxu1  ;;  %v2756_v18 = vadd.f32 %v2755_v1, %v2743_v17  ;;  %v7117_v1 = vld [vmem:[%s10844_s8 + $0x6e8] sm:$0xf0]  ;;  %v7936_v17 = vld [vmem:[%s10844_s8 + $0x55c] sm:$0xf] }
 0x188   :  { %v7120_v3 = vor.u32 %v7969_v0, %v7117_v1  ;;  %v7987_v5 = vld [vmem:[%s10844_s8 + $0x6ec] sm:$0xf0]  ;;  %v6580_v0 = vor.u32 %v7851_v57, %v6579_v56  ;;  %v6995_v56 = vld [vmem:[%s10844_s8 + $0x560] sm:$0xf]  ;;  %v7954_v57 = vld [vmem:[%s10844_s8 + $0x5e4] sm:$0xf0] }
 0x189   :  { %v2769_v20 = vadd.f32 %v2768_v4, %v2756_v18  ;;  %v7123_v4 = vld [vmem:[%s10844_s8 + $0x668] sm:$0xf]  ;;  %v6989_v18 = vld [vmem:[%s10844_s8 + $0x5e0] sm:$0xf0]  ;;  %v6435_v1 = vld [vmem:[%s10844_s8 + $0x110] sm:$0xf] }
 0x18a   :  { %v7124_v7 = vor.u32 %v7987_v5, %v7123_v4  ;;  %4702 = vmatpush.bf16.msrb.mxu3 %v7120_v3  ;;  %v7799_v3 = vld [vmem:[%s10844_s8 + $0x114] sm:$0xf]  ;;  %v6584_v4 = vor.u32 %v7834_v59, %v6581_v60  ;;  %v6437_v5 = vld [vmem:[%s10844_s8 + $0x198] sm:$0xf0]  ;;  %v7937_v60 = vld [vmem:[%s10844_s8 + $0x564] sm:$0xf] }
 0x18c   :  { %4715 = vmatpush.bf16.msrb.mxu0 %v7124_v7  ;;  %v7817_v7 = vld [vmem:[%s10844_s8 + $0x19c] sm:$0xf0] }
 0x18e   :  { %v2757_v11 = vpop.f32.mrf.mxu2 }
 0x18f   :  { %v2770_v13 = vpop.f32.mrf.mxu3  ;;  %v7128_v11 = vor.u32 %v7970_v6, %v7125_v8  ;;  %v6443_v6 = vld [vmem:[%s10844_s8 + $0x118] sm:$0xf]  ;;  %v7800_v8 = vld [vmem:[%s10844_s8 + $0x11c] sm:$0xf] }
 0x190   :  { %v6981_v13 = vld [vmem:[%s10844_s8 + $0x5d8] sm:$0xf0]  ;;  %v6444_v15 = vor.u32 %v7817_v7, %v6443_v6 }
 0x191   :  { %v6984_v19 = vor.u32 %v7935_v12, %v6981_v13  ;;  %4728 = vmatpush.bf16.msrb.mxu1 %v7128_v11  ;;  %v6436_v11 = vor.u32 %v7816_v2, %v6435_v1  ;;  %v6299_v12 = vld [vmem:[%s10844_s8] sm:$0xf]  ;;  %v7782_v13 = vld [vmem:[%s10844_s8 + $0x84] sm:$0xf0]  ;;  %v7005_v1 = vld [vmem:[%s10844_s8 + $0x5f0] sm:$0xf0]  ;;  %v6996_v2 = vor.u32 %v7954_v57, %v6995_v56 }
 0x192   :  { %v7802_v57 = vld [vmem:[%s10844_s8 + $0x12c] sm:$0xf] }
 0x193   :  { %4703 = vmatpush.bf16.msrb.mxu3 %v6984_v19 }
 0x19e   :  { %v2781_v22 = vpop.f32.mrf.mxu0 }
 0x19f   :  { %v2782_v23 = vadd.f32 %v2781_v22, %v2769_v20  ;;  %v2794_v24 = vpop.f32.mrf.mxu1  ;;  %v6988_v20 = vor.u32 %v7953_v16, %v6987_v14  ;;  %v7918_v22 = vld [vmem:[%s10844_s8 + $0x4c4] sm:$0xf0]  ;;  %v6440_v14 = vor.u32 %v7799_v3, %v6437_v5  ;;  %v7765_v16 = vld [vmem:[%s10844_s8 + $0x4] sm:$0xf]  ;;  %v7920_v5 = vld [vmem:[%s10844_s8 + $0x4d4] sm:$0xf0] }
 0x1a1   :  { %v2795_v25 = vadd.f32 %v2794_v24, %v2782_v23  ;;  %v7901_v23 = vld [vmem:[%s10844_s8 + $0x444] sm:$0xf]  ;;  %v6992_v24 = vor.u32 %v7936_v17, %v6989_v18  ;;  %4716 = vmatpush.bf16.msrb.mxu0 %v6988_v20  ;;  %v6301_v17 = vld [vmem:[%s10844_s8 + $0x88] sm:$0xf0]  ;;  %v6307_v18 = vld [vmem:[%s10844_s8 + $0x8] sm:$0xf]  ;;  %v6448_v20 = vor.u32 %v7800_v8, %v6445_v9 }
 0x1a2   :  { %v7903_v8 = vld [vmem:[%s10844_s8 + $0x454] sm:$0xf]  ;;  %v6861_v9 = vld [vmem:[%s10844_s8 + $0x4d8] sm:$0xf0] }
 0x1a3   :  { %8041 = vtanh.f32 %v2795_v25  ;;  %v6845_v25 = vld [vmem:[%s10844_s8 + $0x4c8] sm:$0xf0]  ;;  %4729 = vmatpush.bf16.msrb.mxu1 %v6992_v24 }
 0x1a6   :  { %v2783_v28 = vpop.f32.mrf.mxu0 }
 0x1a7   :  { %v2796_v29 = vpop.f32.mrf.mxu1  ;;  %v7902_v28 = vld [vmem:[%s10844_s8 + $0x44c] sm:$0xf] }
 0x1a8   :  { %v6853_v29 = vld [vmem:[%s10844_s8 + $0x4d0] sm:$0xf0] }
 0x1a9   :  { %v8042_v30 = vpop.eup %8041  ;;  %v6856_v37 = vor.u32 %v7902_v28, %v6853_v29  ;;  %v6300_v29 = vor.u32 %v7782_v13, %v6299_v12  ;;  %v7904_v12 = vld [vmem:[%s10844_s8 + $0x45c] sm:$0xf]  ;;  %v6869_v13 = vld [vmem:[%s10844_s8 + $0x4e0] sm:$0xf0] }
 0x1aa   :  { %v2829_v31 = vmul.f32 1.25, %v8042_v30  ;;  %v2889_v30 = vshrl.u32 %v2888_v47, 16 }
 0x1ab   :  { %4730 = vmatpush.bf16.msrb.mxu1 %v6856_v37  ;;  %v6304_v37 = vor.u32 %v7765_v16, %v6301_v17  ;;  %v6872_v17 = vor.u32 %v7904_v12, %v6869_v13  ;;  %v8040_v13 = vld [vmem:[%s10843_s7] ss:$0 sm:$0xff] }
 0x1ac   :  { %v2830_v32 = vsel %vm2828_vm0, %v2829_v31, 0.0  ;;  %v6844_v31 = vor.u32 %v7918_v22, %v6843_v21  ;;  %v2890_v44 = vxor.u32 %v2889_v30, %v2888_v47  ;;  %v6720_v47 = vor.u32 %v7868_v42, %v6717_v43  ;;  %v7783_v21 = vld [vmem:[%s10844_s8 + $0x8c] sm:$0xf0]  ;;  %v7766_v22 = vld [vmem:[%s10844_s8 + $0xc] sm:$0xf] }
 0x1ad   :  { %v2831_v33 = vpack.c.bf16 %v2830_v32, %v2830_v32  ;;  %v6848_v32 = vor.u32 %v7901_v23, %v6845_v25  ;;  %v6309_v23 = vld [vmem:[%s10844_s8 + $0x90] sm:$0xf0]  ;;  %v7267_v25 = vld [vmem:[%s10844_s8 + $0x780] sm:$0xf]  ;;  %v7269_v30 = vld [vmem:[%s10844_s8 + $0x808] sm:$0xf0] }
 0x1ae   :  { %4691 = vmatpush.bf16.msrb.mxu2 %v6844_v31  ;;  %v6278_v61 = vxor.u32 2147483648, %v2890_v44  ;;  %v7275_v31 = vld [vmem:[%s10844_s8 + $0x788] sm:$0xf]  ;;  %v6312_v38 = vor.u32 %v7766_v22, %v6309_v23  ;;  %v7131_v42 = vld [vmem:[%s10844_s8 + $0x670] sm:$0xf] }
 0x1af   :  { %6277 = vmatmul.msk.bf16.vlgmr.msra.gmra.mxu2 %vm2852_vm1, %v2831_v33  ;;  %v6852_v33 = vor.u32 %v7919_v27, %v6851_v26  ;;  %4704 = vmatpush.bf16.msrb.mxu3 %v6848_v32  ;;  %v8022_v26 = vld [vmem:[%s10844_s8 + $0x804] sm:$0xf0]  ;;  %v8005_v27 = vld [vmem:[%s10844_s8 + $0x784] sm:$0xf]  ;;  %v6308_v32 = vor.u32 %v7783_v21, %v6307_v18  ;;  %v7988_v43 = vld [vmem:[%s10844_s8 + $0x6f4] sm:$0xf0] }
 0x1b0   :  { %4731 = vmatpush.bf16.msrb.mxu1 %v6720_v47  ;;  %vm9212_vm2 = vcmp.ge.s32.totalorder %v6278_v61, 3006477107  ;;  %v7268_v40 = vor.u32 %v8022_v26, %v7267_v25  ;;  %v7132_v47 = vor.u32 %v7988_v43, %v7131_v42  ;;  %v6997_v61 = vld [vmem:[%s10844_s8 + $0x5e8] sm:$0xf0]  ;;  %v2960_v18 = vmul.u32 128, %v9005_v53 }
 0x1b1   :  { %4717 = vmatpush.bf16.msrb.mxu0 %v6852_v33  ;;  %v8023_v33 = vld [vmem:[%s10844_s8 + $0x80c] sm:$0xf0]  ;;  %v7000_v3 = vor.u32 %v7937_v60, %v6997_v61  ;;  %v6723_v22 = vld [vmem:[%s10844_s8 + $0x340] sm:$0xf]  ;;  %v7886_v23 = vld [vmem:[%s10844_s8 + $0x3c4] sm:$0xf0] }
 0x1b2   :  { %4692 = vmatpush.bf16.msrb.mxu2 %v6708_v46  ;;  %v7276_v44 = vor.u32 %v8023_v33, %v7275_v31  ;;  %v7280_v46 = vor.u32 %v8006_v34, %v7277_v35  ;;  %v6724_v25 = vor.u32 %v7886_v23, %v6723_v22  ;;  %v6725_v53 = vld [vmem:[%s10844_s8 + $0x3c8] sm:$0xf0]  ;;  %v7887_v26 = vld [vmem:[%s10844_s8 + $0x3cc] sm:$0xf0]  ;;  %v7852_v34 = vld [vmem:[%s10844_s8 + $0x2b4] sm:$0xf0] }
 0x1b3   :  { %4705 = vmatpush.bf16.msrb.mxu3 %v6712_v48  ;;  %v7971_v48 = vld [vmem:[%s10844_s8 + $0x674] sm:$0xf]  ;;  %v6587_v33 = vld [vmem:[%s10844_s8 + $0x230] sm:$0xf]  ;;  %v7836_v42 = vld [vmem:[%s10844_s8 + $0x23c] sm:$0xf] }
 0x1b4   :  { %4732 = vmatpush.bf16.msrb.mxu1 %v6584_v4  ;;  %v6859_v4 = vld [vmem:[%s10844_s8 + $0x450] sm:$0xf]  ;;  %v7835_v35 = vld [vmem:[%s10844_s8 + $0x234] sm:$0xf]  ;;  %v6597_v43 = vld [vmem:[%s10844_s8 + $0x2c0] sm:$0xf0] }
 0x1b5   :  { %4718 = vmatpush.bf16.msrb.mxu0 %v6716_v49  ;;  %v7133_v49 = vld [vmem:[%s10844_s8 + $0x6f8] sm:$0xf0]  ;;  %v6315_v61 = vld [vmem:[%s10844_s8 + $0x10] sm:$0xf] }
 0x1b6   :  { %4693 = vmatpush.bf16.msrb.mxu2 %v6572_v62  ;;  %v7136_v55 = vor.u32 %v7971_v48, %v7133_v49  ;;  %v7003_v62 = vld [vmem:[%s10844_s8 + $0x568] sm:$0xf]  ;;  %v6451_v48 = vld [vmem:[%s10844_s8 + $0x120] sm:$0xf]  ;;  %v7285_v23 = vld [vmem:[%s10844_s8 + $0x818] sm:$0xf0] }
 0x1b7   :  { %4706 = vmatpush.bf16.msrb.mxu3 %v6576_v63  ;;  %v7955_v63 = vld [vmem:[%s10844_s8 + $0x5ec] sm:$0xf0]  ;;  %v7818_v49 = vld [vmem:[%s10844_s8 + $0x1a4] sm:$0xf0] }
 0x1b8   :  { %4733 = vmatpush.bf16.msrb.mxu1 %v6448_v20  ;;  %v7004_v6 = vor.u32 %v7955_v63, %v7003_v62  ;;  %v2962_v20 = vstv %s2959_s29  ;;  %v7784_v62 = vld [vmem:[%s10844_s8 + $0x94] sm:$0xf0]  ;;  %v7767_v63 = vld [vmem:[%s10844_s8 + $0x14] sm:$0xf] }
 0x1b9   :  { %4719 = vmatpush.bf16.msrb.mxu0 %v6580_v0  ;;  %v7938_v0 = vld [vmem:[%s10844_s8 + $0x56c] sm:$0xf] }
 0x1ba   :  { %4694 = vmatpush.bf16.msrb.mxu2 %v6436_v11  ;;  %v7008_v7 = vor.u32 %v7938_v0, %v7005_v1  ;;  %v7921_v11 = vld [vmem:[%s10844_s8 + $0x4dc] sm:$0xf0]  ;;  %v6316_v0 = vor.u32 %v7784_v62, %v6315_v61  ;;  %v6317_v1 = vld [vmem:[%s10844_s8 + $0x98] sm:$0xf0]  ;;  %v7905_v61 = vld [vmem:[%s10844_s8 + $0x464] sm:$0xf] }
 0x1bb   :  { %4707 = vmatpush.bf16.msrb.mxu3 %v6440_v14  ;;  %v6860_v14 = vor.u32 %v7920_v5, %v6859_v4  ;;  %v6868_v16 = vor.u32 %v7921_v11, %v6867_v10  ;;  %v6320_v4 = vor.u32 %v7767_v63, %v6317_v1  ;;  %v6877_v62 = vld [vmem:[%s10844_s8 + $0x4e8] sm:$0xf0]  ;;  %v6883_v63 = vld [vmem:[%s10844_s8 + $0x468] sm:$0xf] }
 0x1bc   :  { %4734 = vmatpush.bf16.msrb.mxu1 %v6312_v38  ;;  %v6595_v38 = vld [vmem:[%s10844_s8 + $0x238] sm:$0xf]  ;;  %v7906_v1 = vld [vmem:[%s10844_s8 + $0x46c] sm:$0xf] }
 0x1bd   :  { %4720 = vmatpush.bf16.msrb.mxu0 %v6444_v15  ;;  %v6864_v15 = vor.u32 %v7903_v8, %v6861_v9 }
 0x1be   :  { %4695 = vmatpush.bf16.msrb.mxu2 %v6300_v29  ;;  %v7870_v29 = vld [vmem:[%s10844_s8 + $0x34c] sm:$0xf] }
 0x1bf   :  { %4708 = vmatpush.bf16.msrb.mxu3 %v6304_v37  ;;  %v6589_v37 = vld [vmem:[%s10844_s8 + $0x2b8] sm:$0xf0] }
 0x1c0   :  { %4779 = vmatpush.bf16.msra.mxu1 %v7280_v46  ;;  %v6600_v46 = vor.u32 %v7836_v42, %v6597_v43  ;;  %v7011_v43 = vld [vmem:[%s10844_s8 + $0x570] sm:$0xf] }
 0x1c1   :  { %4721 = vmatpush.bf16.msrb.mxu0 %v6308_v32 }
 0x1c2   :  { %4740 = vmatpush.bf16.msra.mxu2 %v7268_v40  ;;  %v6592_v40 = vor.u32 %v7835_v35, %v6589_v37  ;;  %v7973_v35 = vld [vmem:[%s10844_s8 + $0x684] sm:$0xf]  ;;  %v7155_v37 = vld [vmem:[%s10844_s8 + $0x688] sm:$0xf] }
 0x1c5   :  { %4766 = vmatpush.bf16.msra.mxu0 %v7276_v44 }
 0x1c6   :  { %4741 = vmatpush.bf16.msra.mxu2 %v7132_v47  ;;  %v7819_v47 = vld [vmem:[%s10844_s8 + $0x1ac] sm:$0xf0] }
 0x1ca   :  { %4742 = vmatpush.bf16.msra.mxu2 %v6996_v2  ;;  %v6323_v2 = vld [vmem:[%s10844_s8 + $0x18] sm:$0xf] }
 0x1ce   :  { %4743 = vmatpush.bf16.msra.mxu2 %v6860_v14 }
 0x1d2   :  { %4744 = vmatpush.bf16.msra.mxu2 %v6724_v25  ;;  %v8025_v25 = vld [vmem:[%s10844_s8 + $0x81c] sm:$0xf0] }
 0x232   :  { %v2865_v45 = vpop.f32.mrf.mxu2 }
 0x233   :  { %v2866_v58 = vadd.f32 %v8039_v41, %v2865_v45  ;;  %v7272_v41 = vor.u32 %v8005_v27, %v7269_v30  ;;  %v7141_v45 = vld [vmem:[%s10844_s8 + $0x700] sm:$0xf0]  ;;  %v6733_v30 = vld [vmem:[%s10844_s8 + $0x3d0] sm:$0xf0] }
 0x234   :  { %v7144_v59 = vor.u32 %v7972_v52, %v7141_v45  ;;  %v6736_v32 = vor.u32 %v7870_v29, %v6733_v30  ;;  %v6453_v52 = vld [vmem:[%s10844_s8 + $0x1a8] sm:$0xf0]  ;;  %v6459_v45 = vld [vmem:[%s10844_s8 + $0x128] sm:$0xf] }
 0x235   :  { %8043 = vtanh.f32 %v2866_v58  ;;  %v7140_v58 = vor.u32 %v7989_v51, %v7139_v50  ;;  %v7801_v50 = vld [vmem:[%s10844_s8 + $0x124] sm:$0xf]  ;;  %v6452_v51 = vor.u32 %v7818_v49, %v6451_v48  ;;  %v6460_v56 = vor.u32 %v7819_v47, %v6459_v45  ;;  %v7939_v49 = vld [vmem:[%s10844_s8 + $0x574] sm:$0xf]  ;;  %v7940_v45 = vld [vmem:[%s10844_s8 + $0x57c] sm:$0xf] }
 0x236   :  { %4780 = vmatpush.bf16.msra.mxu1 %v7144_v59  ;;  %v7021_v47 = vld [vmem:[%s10844_s8 + $0x600] sm:$0xf0] }
 0x237   :  { %4767 = vmatpush.bf16.msra.mxu0 %v7140_v58  ;;  %v6461_v58 = vld [vmem:[%s10844_s8 + $0x1b0] sm:$0xf0] }
 0x238   :  { %v6464_v60 = vor.u32 %v7802_v57, %v6461_v58  ;;  %v6875_v57 = vld [vmem:[%s10844_s8 + $0x460] sm:$0xf]  ;;  %v7922_v58 = vld [vmem:[%s10844_s8 + $0x4e4] sm:$0xf0] }
 0x23a   :  { %v2867_v19 = vpop.f32.mrf.mxu2  ;;  %4781 = vmatpush.bf16.msra.mxu1 %v7008_v7  ;;  %v6325_v7 = vld [vmem:[%s10844_s8 + $0xa0] sm:$0xf0] }
 0x23b   :  { %v8044_v24 = vpop.eup %8043  ;;  %4768 = vmatpush.bf16.msra.mxu0 %v7004_v6  ;;  %v2961_v19 = vadd.s32 %v2960_v18, %v9007_v54  ;;  %v6731_v54 = vld [vmem:[%s10844_s8 + $0x348] sm:$0xf]  ;;  %v7768_v6 = vld [vmem:[%s10844_s8 + $0x1c] sm:$0xf] }
 0x23c   :  { %v2894_v28 = vmul.f32 1.25, %v8044_v24  ;;  %v7869_v24 = vld [vmem:[%s10844_s8 + $0x344] sm:$0xf]  ;;  %v6328_v8 = vor.u32 %v7768_v6, %v6325_v7  ;;  %v7888_v6 = vld [vmem:[%s10844_s8 + $0x3d4] sm:$0xf0] }
 0x23d   :  { %v2963_v21 = vxor.u32 %v2962_v20, %v2961_v19  ;;  %v6728_v27 = vor.u32 %v7869_v24, %v6725_v53  ;;  %v7283_v19 = vld [vmem:[%s10844_s8 + $0x790] sm:$0xf]  ;;  %v8024_v20 = vld [vmem:[%s10844_s8 + $0x814] sm:$0xf0] }
 0x23e   :  { %v2895_v36 = vsel %vm9212_vm2, %v2894_v28, 0.0  ;;  %4782 = vmatpush.bf16.msra.mxu1 %v6872_v17  ;;  %v6732_v28 = vor.u32 %v7887_v26, %v6731_v54  ;;  %v7291_v24 = vld [vmem:[%s10844_s8 + $0x798] sm:$0xf]  ;;  %v8008_v54 = vld [vmem:[%s10844_s8 + $0x79c] sm:$0xf]  ;;  %v7284_v29 = vor.u32 %v8024_v20, %v7283_v19 }
 0x23f   :  { %v2896_v39 = vpack.c.bf16 %v2895_v36, %v2895_v36  ;;  %4769 = vmatpush.bf16.msra.mxu0 %v6868_v16  ;;  %v2964_v31 = vshrl.u32 %v2963_v21, 16  ;;  %v6588_v36 = vor.u32 %v7852_v34, %v6587_v33  ;;  %v7293_v26 = vld [vmem:[%s10844_s8 + $0x820] sm:$0xf0]  ;;  %v7292_v33 = vor.u32 %v8025_v25, %v7291_v24  ;;  %v7855_v24 = vld [vmem:[%s10844_s8 + $0x2cc] sm:$0xf0] }
 0x240   :  { %v7296_v34 = vor.u32 %v8008_v54, %v7293_v26  ;;  %v7838_v25 = vld [vmem:[%s10844_s8 + $0x24c] sm:$0xf] }
 0x241   :  { %6295 = vmatmul.msk.bf16.vlgmr.msra.gmra.mxu3 %vm2933_vm3, %v2896_v39  ;;  %v7853_v39 = vld [vmem:[%s10844_s8 + $0x2bc] sm:$0xf0]  ;;  %v2965_v44 = vxor.u32 %v2964_v31, %v2963_v21  ;;  %4745 = vmatpush.bf16.msra.mxu2 %v6588_v36  ;;  %v8007_v21 = vld [vmem:[%s10844_s8 + $0x794] sm:$0xf]  ;;  %v7149_v36 = vld [vmem:[%s10844_s8 + $0x708] sm:$0xf0] }
 0x242   :  { %4753 = vmatpush.bf16.msra.mxu3 %v7272_v41  ;;  %4783 = vmatpush.bf16.msra.mxu1 %v6736_v32  ;;  %v6596_v41 = vor.u32 %v7853_v39, %v6595_v38  ;;  %v7288_v30 = vor.u32 %v8007_v21, %v7285_v23  ;;  %v7147_v31 = vld [vmem:[%s10844_s8 + $0x680] sm:$0xf]  ;;  %v7990_v32 = vld [vmem:[%s10844_s8 + $0x704] sm:$0xf0]  ;;  %v7991_v38 = vld [vmem:[%s10844_s8 + $0x70c] sm:$0xf0]  ;;  %v7152_v42 = vor.u32 %v7973_v35, %v7149_v36 }
 0x243   :  { %4770 = vmatpush.bf16.msra.mxu0 %v6732_v28  ;;  %v2966_v59 = vmul.u32 2246822507, %v2965_v44  ;;  %v7974_v39 = vld [vmem:[%s10844_s8 + $0x68c] sm:$0xf]  ;;  %v7956_v44 = vld [vmem:[%s10844_s8 + $0x5f4] sm:$0xf0] }
 0x244   :  { %v7837_v21 = vld [vmem:[%s10844_s8 + $0x244] sm:$0xf]  ;;  %v6611_v23 = vld [vmem:[%s10844_s8 + $0x248] sm:$0xf]  ;;  %v6475_v35 = vld [vmem:[%s10844_s8 + $0x138] sm:$0xf] }
 0x245   :  { %4746 = vmatpush.bf16.msra.mxu2 %v6452_v51  ;;  %v2967_v9 = vshrl.u32 %v2966_v59, 13  ;;  %v7019_v51 = vld [vmem:[%s10844_s8 + $0x578] sm:$0xf]  ;;  %v7821_v36 = vld [vmem:[%s10844_s8 + $0x1bc] sm:$0xf0] }
 0x246   :  { %4754 = vmatpush.bf16.msra.mxu3 %v7136_v55  ;;  %4784 = vmatpush.bf16.msra.mxu1 %v6600_v46  ;;  %v6456_v55 = vor.u32 %v7801_v50, %v6453_v52  ;;  %v7156_v46 = vor.u32 %v7991_v38, %v7155_v37  ;;  %v7013_v50 = vld [vmem:[%s10844_s8 + $0x5f8] sm:$0xf0]  ;;  %v7957_v52 = vld [vmem:[%s10844_s8 + $0x5fc] sm:$0xf0]  ;;  %v6477_v38 = vld [vmem:[%s10844_s8 + $0x1c0] sm:$0xf0] }
 0x247   :  { %4771 = vmatpush.bf16.msra.mxu0 %v6596_v41  ;;  %v2968_v10 = vxor.u32 %v2967_v9, %v2966_v59  ;;  %v7148_v41 = vor.u32 %v7990_v32, %v7147_v31  ;;  %v7020_v59 = vor.u32 %v7957_v52, %v7019_v51  ;;  %v7871_v9 = vld [vmem:[%s10844_s8 + $0x354] sm:$0xf]  ;;  %v6612_v31 = vor.u32 %v7855_v24, %v6611_v23  ;;  %v7804_v37 = vld [vmem:[%s10844_s8 + $0x13c] sm:$0xf]  ;;  %v7770_v51 = vld [vmem:[%s10844_s8 + $0x2c] sm:$0xf] }
 0x248   :  { %v6341_v52 = vld [vmem:[%s10844_s8 + $0xb0] sm:$0xf0]  ;;  %v7942_v23 = vld [vmem:[%s10844_s8 + $0x58c] sm:$0xf] }
 0x249   :  { %4747 = vmatpush.bf16.msra.mxu2 %v6316_v0  ;;  %v2969_v11 = vmul.u32 3266489909, %v2968_v10  ;;  %v7923_v0 = vld [vmem:[%s10844_s8 + $0x4ec] sm:$0xf0]  ;;  %v6741_v10 = vld [vmem:[%s10844_s8 + $0x3d8] sm:$0xf0] }
 0x24a   :  { %4755 = vmatpush.bf16.msra.mxu3 %v7000_v3  ;;  %4785 = vmatpush.bf16.msra.mxu1 %v6464_v60  ;;  %v7785_v3 = vld [vmem:[%s10844_s8 + $0x9c] sm:$0xf0]  ;;  %v7024_v60 = vor.u32 %v7940_v45, %v7021_v47  ;;  %v6884_v7 = vor.u32 %v7923_v0, %v6883_v63  ;;  %v8026_v47 = vld [vmem:[%s10844_s8 + $0x824] sm:$0xf0]  ;;  %v6344_v0 = vor.u32 %v7770_v51, %v6341_v52  ;;  %v7037_v24 = vld [vmem:[%s10844_s8 + $0x610] sm:$0xf0] }
 0x24b   :  { %4772 = vmatpush.bf16.msra.mxu0 %v6460_v56  ;;  %v6324_v5 = vor.u32 %v7785_v3, %v6323_v2  ;;  %v2970_v12 = vshrl.u32 %v2969_v11, 16  ;;  %v7016_v56 = vor.u32 %v7939_v49, %v7013_v50  ;;  %v6885_v2 = vld [vmem:[%s10844_s8 + $0x4f0] sm:$0xf0]  ;;  %v6876_v3 = vor.u32 %v7922_v58, %v6875_v57  ;;  %v6339_v49 = vld [vmem:[%s10844_s8 + $0x28] sm:$0xf] }
 0x24c   :  { %v7787_v50 = vld [vmem:[%s10844_s8 + $0xac] sm:$0xf0]  ;;  %v7299_v45 = vld [vmem:[%s10844_s8 + $0x7a0] sm:$0xf]  ;;  %v7307_v57 = vld [vmem:[%s10844_s8 + $0x7a8] sm:$0xf] }
 0x24d   :  { %v2971_v14 = vxor.u32 %v2970_v12, %v2969_v11  ;;  %v6747_v11 = vld [vmem:[%s10844_s8 + $0x358] sm:$0xf]  ;;  %v7889_v12 = vld [vmem:[%s10844_s8 + $0x3dc] sm:$0xf0]  ;;  %v6340_v63 = vor.u32 %v7787_v50, %v6339_v49  ;;  %v7874_v49 = vld [vmem:[%s10844_s8 + $0x36c] sm:$0xf] }
 0x24e   :  { %4756 = vmatpush.bf16.msra.mxu3 %v6864_v15  ;;  %4786 = vmatpush.bf16.msra.mxu1 %v6328_v8  ;;  %v6888_v8 = vor.u32 %v7906_v1, %v6885_v2  ;;  %v6748_v19 = vor.u32 %v7889_v12, %v6747_v11  ;;  %v7300_v1 = vor.u32 %v8026_v47, %v7299_v45  ;;  %v7976_v11 = vld [vmem:[%s10844_s8 + $0x69c] sm:$0xf]  ;;  %v7173_v12 = vld [vmem:[%s10844_s8 + $0x720] sm:$0xf0]  ;;  %v6765_v50 = vld [vmem:[%s10844_s8 + $0x3f0] sm:$0xf0] }
 0x24f   :  { %4773 = vmatpush.bf16.msra.mxu0 %v6324_v5  ;;  %v6296_v17 = vxor.u32 2147483648, %v2971_v14  ;;  %v6739_v5 = vld [vmem:[%s10844_s8 + $0x350] sm:$0xf]  ;;  %v6749_v14 = vld [vmem:[%s10844_s8 + $0x3e0] sm:$0xf0] }
 0x250   :  { %v6619_v45 = vld [vmem:[%s10844_s8 + $0x250] sm:$0xf]  ;;  %v7856_v47 = vld [vmem:[%s10844_s8 + $0x2d4] sm:$0xf0] }
 0x251   :  { %vm2974_vm4 = vcmp.ge.s32.totalorder %v6296_v17, 3006477107  ;;  %v6603_v17 = vld [vmem:[%s10844_s8 + $0x240] sm:$0xf] }
 0x252   :  { %4757 = vmatpush.bf16.msra.mxu3 %v6728_v27  ;;  %vm9466_vm5 = vmpackc.low %vm2974_vm4, %vm2974_vm4 }
 0x256   :  { %4758 = vmatpush.bf16.msra.mxu3 %v6592_v40  ;;  %v7157_v40 = vld [vmem:[%s10844_s8 + $0x710] sm:$0xf0] }
 0x257   :  { %v7160_v48 = vor.u32 %v7974_v39, %v7157_v40  ;;  %v6331_v39 = vld [vmem:[%s10844_s8 + $0x20] sm:$0xf] }
 0x25a   :  { %4759 = vmatpush.bf16.msra.mxu3 %v6456_v55  ;;  %v7012_v55 = vor.u32 %v7956_v44, %v7011_v43  ;;  %v7769_v43 = vld [vmem:[%s10844_s8 + $0x24] sm:$0xf]  ;;  %v6333_v44 = vld [vmem:[%s10844_s8 + $0xa8] sm:$0xf0] }
 0x25e   :  { %4760 = vmatpush.bf16.msra.mxu3 %v6320_v4  ;;  %v6880_v4 = vor.u32 %v7905_v61, %v6877_v62  ;;  %v8010_v61 = vld [vmem:[%s10844_s8 + $0x7ac] sm:$0xf]  ;;  %v7309_v62 = vld [vmem:[%s10844_s8 + $0x830] sm:$0xf0] }
 0x2c4   :  { %v2946_v15 = vpop.f32.mrf.mxu3 }
 0x2c5   :  { %v2947_v16 = vadd.f32 %v8040_v13, %v2946_v15  ;;  %v7872_v13 = vld [vmem:[%s10844_s8 + $0x35c] sm:$0xf]  ;;  %v6740_v15 = vor.u32 %v7888_v6, %v6739_v5  ;;  %v7312_v6 = vor.u32 %v8010_v61, %v7309_v62  ;;  %v6629_v62 = vld [vmem:[%s10844_s8 + $0x2e0] sm:$0xf0] }
 0x2c6   :  { %v6752_v20 = vor.u32 %v7872_v13, %v6749_v14  ;;  %v7840_v61 = vld [vmem:[%s10844_s8 + $0x25c] sm:$0xf] }
 0x2c7   :  { %8045 = vtanh.f32 %v2947_v16  ;;  %v6744_v16 = vor.u32 %v7871_v9, %v6741_v10  ;;  %v7171_v9 = vld [vmem:[%s10844_s8 + $0x698] sm:$0xf]  ;;  %v7993_v10 = vld [vmem:[%s10844_s8 + $0x71c] sm:$0xf0] }
 0x2cc   :  { %v2948_v18 = vpop.f32.mrf.mxu3 }
 0x2cd   :  { %v8046_v22 = vpop.eup %8045  ;;  %v7854_v18 = vld [vmem:[%s10844_s8 + $0x2c4] sm:$0xf0] }
 0x2ce   :  { %v2975_v53 = vmul.f32 1.25, %v8046_v22  ;;  %v6605_v22 = vld [vmem:[%s10844_s8 + $0x2c8] sm:$0xf0]  ;;  %v6604_v54 = vor.u32 %v7854_v18, %v6603_v17  ;;  %v7172_v17 = vor.u32 %v7993_v10, %v7171_v9  ;;  %v7176_v18 = vor.u32 %v7976_v11, %v7173_v12  ;;  %v6493_v10 = vld [vmem:[%s10844_s8 + $0x1d0] sm:$0xf0] }
 0x2cf   :  { %v6608_v26 = vor.u32 %v7837_v21, %v6605_v22  ;;  %v7035_v21 = vld [vmem:[%s10844_s8 + $0x588] sm:$0xf]  ;;  %v7959_v22 = vld [vmem:[%s10844_s8 + $0x60c] sm:$0xf0]  ;;  %v7806_v9 = vld [vmem:[%s10844_s8 + $0x14c] sm:$0xf] }
 0x2d0   :  { %v9470_v28 = vpack.c.bf16 %v2975_v53, %v2975_v53  ;;  %v6613_v53 = vld [vmem:[%s10844_s8 + $0x2d0] sm:$0xf0]  ;;  %v6347_v11 = vld [vmem:[%s10844_s8 + $0x30] sm:$0xf] }
 0x2d1   :  { %v6616_v32 = vor.u32 %v7838_v25, %v6613_v53 }
 0x2d2   :  { %7387 = vmatmul.msk.bf16.vlgmr.msrb.gmra.mxu2 %vm9466_vm5, %v9470_v28  ;;  %7390 = vmatmul.msk.bf16.vlgmr.msrb.gmra.mxu3 %vm9466_vm5, %v9470_v28 }
 0x2d3   :  { %7393 = vmatmul.msk.bf16.vlgmr.msrb.gmra.mxu0 %vm9466_vm5, %v9470_v28  ;;  %7396 = vmatmul.msk.bf16.vlgmr.msrb.gmra.mxu1 %vm9466_vm5, %v9470_v28 }
 0x2d4   :  { %4792 = vmatpush.bf16.msrb.mxu2 %v7284_v29  ;;  %4805 = vmatpush.bf16.msrb.mxu3 %v7288_v30  ;;  %v6467_v29 = vld [vmem:[%s10844_s8 + $0x130] sm:$0xf]  ;;  %v7820_v30 = vld [vmem:[%s10844_s8 + $0x1b4] sm:$0xf0] }
 0x2d5   :  { %4818 = vmatpush.bf16.msrb.mxu0 %v7292_v33  ;;  %4831 = vmatpush.bf16.msrb.mxu1 %v7296_v34  ;;  %v7803_v33 = vld [vmem:[%s10844_s8 + $0x134] sm:$0xf]  ;;  %v6469_v34 = vld [vmem:[%s10844_s8 + $0x1b8] sm:$0xf0]  ;;  %v6468_v40 = vor.u32 %v7820_v30, %v6467_v29  ;;  %v7036_v29 = vor.u32 %v7959_v22, %v7035_v21  ;;  %v7040_v30 = vor.u32 %v7942_v23, %v7037_v24  ;;  %v6357_v22 = vld [vmem:[%s10844_s8 + $0xc0] sm:$0xf0] }
 0x2d6   :  { %v7772_v21 = vld [vmem:[%s10844_s8 + $0x3c] sm:$0xf]  ;;  %v7315_v23 = vld [vmem:[%s10844_s8 + $0x7b0] sm:$0xf]  ;;  %v8028_v24 = vld [vmem:[%s10844_s8 + $0x834] sm:$0xf0] }
 0x2d8   :  { %4793 = vmatpush.bf16.msrb.mxu2 %v7148_v41  ;;  %4806 = vmatpush.bf16.msrb.mxu3 %v7152_v42  ;;  %v6472_v41 = vor.u32 %v7803_v33, %v6469_v34  ;;  %v7786_v42 = vld [vmem:[%s10844_s8 + $0xa4] sm:$0xf0]  ;;  %v6899_v33 = vld [vmem:[%s10844_s8 + $0x478] sm:$0xf]  ;;  %v7925_v34 = vld [vmem:[%s10844_s8 + $0x4fc] sm:$0xf0] }
 0x2d9   :  { %4819 = vmatpush.bf16.msrb.mxu0 %v7156_v46  ;;  %4832 = vmatpush.bf16.msrb.mxu1 %v7160_v48  ;;  %v6476_v46 = vor.u32 %v7821_v36, %v6475_v35  ;;  %v6480_v48 = vor.u32 %v7804_v37, %v6477_v38  ;;  %v6332_v58 = vor.u32 %v7786_v42, %v6331_v39  ;;  %v7908_v35 = vld [vmem:[%s10844_s8 + $0x47c] sm:$0xf]  ;;  %v6901_v36 = vld [vmem:[%s10844_s8 + $0x500] sm:$0xf0]  ;;  %v6755_v39 = vld [vmem:[%s10844_s8 + $0x360] sm:$0xf] }
 0x2da   :  { %v6904_v42 = vor.u32 %v7908_v35, %v6901_v36  ;;  %v7316_v35 = vor.u32 %v8028_v24, %v7315_v23  ;;  %v6635_v23 = vld [vmem:[%s10844_s8 + $0x260] sm:$0xf]  ;;  %v7858_v24 = vld [vmem:[%s10844_s8 + $0x2e4] sm:$0xf0] }
 0x2dc   :  { %4794 = vmatpush.bf16.msrb.mxu2 %v7012_v55  ;;  %4807 = vmatpush.bf16.msrb.mxu3 %v7016_v56  ;;  %v8009_v55 = vld [vmem:[%s10844_s8 + $0x7a4] sm:$0xf]  ;;  %v7301_v56 = vld [vmem:[%s10844_s8 + $0x828] sm:$0xf0] }
 0x2dd   :  { %4820 = vmatpush.bf16.msrb.mxu0 %v7020_v59  ;;  %4833 = vmatpush.bf16.msrb.mxu1 %v7024_v60  ;;  %v6336_v59 = vor.u32 %v7769_v43, %v6333_v44  ;;  %v8027_v60 = vld [vmem:[%s10844_s8 + $0x82c] sm:$0xf0]  ;;  %v7304_v2 = vor.u32 %v8009_v55, %v7301_v56  ;;  %v7873_v43 = vld [vmem:[%s10844_s8 + $0x364] sm:$0xf]  ;;  %v6757_v44 = vld [vmem:[%s10844_s8 + $0x3e8] sm:$0xf0]  ;;  %v6768_v56 = vor.u32 %v7874_v49, %v6765_v50 }
 0x2de   :  { %v7308_v5 = vor.u32 %v8027_v60, %v7307_v57  ;;  %v6760_v52 = vor.u32 %v7873_v43, %v6757_v44  ;;  %v7839_v57 = vld [vmem:[%s10844_s8 + $0x254] sm:$0xf]  ;;  %v7857_v60 = vld [vmem:[%s10844_s8 + $0x2dc] sm:$0xf0]  ;;  %v7187_v43 = vld [vmem:[%s10844_s8 + $0x6a8] sm:$0xf] }
 0x2df   :  { %v7995_v44 = vld [vmem:[%s10844_s8 + $0x72c] sm:$0xf0] }
 0x2e0   :  { %4795 = vmatpush.bf16.msrb.mxu2 %v6876_v3  ;;  %4808 = vmatpush.bf16.msrb.mxu3 %v6880_v4  ;;  %v7163_v3 = vld [vmem:[%s10844_s8 + $0x690] sm:$0xf]  ;;  %v7992_v4 = vld [vmem:[%s10844_s8 + $0x714] sm:$0xf0] }
 0x2e1   :  { %4821 = vmatpush.bf16.msrb.mxu0 %v6884_v7  ;;  %4834 = vmatpush.bf16.msrb.mxu1 %v6888_v8  ;;  %v7975_v7 = vld [vmem:[%s10844_s8 + $0x694] sm:$0xf]  ;;  %v7165_v8 = vld [vmem:[%s10844_s8 + $0x718] sm:$0xf0]  ;;  %v7164_v13 = vor.u32 %v7992_v4, %v7163_v3  ;;  %v6632_v4 = vor.u32 %v7840_v61, %v6629_v62 }
 0x2e2   :  { %7399 = vmatmul.msk.bf16.vlgmr.msra.gmra.mxu2 %vm9466_vm5, %v9470_v28  ;;  %7402 = vmatmul.msk.bf16.vlgmr.msra.gmra.mxu3 %vm9466_vm5, %v9470_v28  ;;  %v7168_v14 = vor.u32 %v7975_v7, %v7165_v8  ;;  %v6491_v7 = vld [vmem:[%s10844_s8 + $0x148] sm:$0xf]  ;;  %v7823_v8 = vld [vmem:[%s10844_s8 + $0x1cc] sm:$0xf0] }
 0x2e3   :  { %7405 = vmatmul.msk.bf16.vlgmr.msra.gmra.mxu0 %vm9466_vm5, %v9470_v28  ;;  %7408 = vmatmul.msk.bf16.vlgmr.msra.gmra.mxu1 %vm9466_vm5, %v9470_v28 }
 0x2e4   :  { %4796 = vmatpush.bf16.msrb.mxu2 %v6740_v15  ;;  %4809 = vmatpush.bf16.msrb.mxu3 %v6744_v16  ;;  %v7027_v15 = vld [vmem:[%s10844_s8 + $0x580] sm:$0xf]  ;;  %v7958_v16 = vld [vmem:[%s10844_s8 + $0x604] sm:$0xf0] }
 0x2e5   :  { %4822 = vmatpush.bf16.msrb.mxu0 %v6748_v19  ;;  %4835 = vmatpush.bf16.msrb.mxu1 %v6752_v20  ;;  %v7941_v19 = vld [vmem:[%s10844_s8 + $0x584] sm:$0xf]  ;;  %v7029_v20 = vld [vmem:[%s10844_s8 + $0x608] sm:$0xf0]  ;;  %v7028_v25 = vor.u32 %v7958_v16, %v7027_v15  ;;  %v7771_v15 = vld [vmem:[%s10844_s8 + $0x34] sm:$0xf] }
 0x2e6   :  { %v7032_v53 = vor.u32 %v7941_v19, %v7029_v20  ;;  %v6349_v16 = vld [vmem:[%s10844_s8 + $0xb8] sm:$0xf0]  ;;  %v6355_v19 = vld [vmem:[%s10844_s8 + $0x38] sm:$0xf]  ;;  %v7789_v20 = vld [vmem:[%s10844_s8 + $0xbc] sm:$0xf0] }
 0x2e8   :  { %4797 = vmatpush.bf16.msrb.mxu2 %v6604_v54  ;;  %4810 = vmatpush.bf16.msrb.mxu3 %v6608_v26  ;;  %v6891_v54 = vld [vmem:[%s10844_s8 + $0x470] sm:$0xf]  ;;  %v7924_v26 = vld [vmem:[%s10844_s8 + $0x4f4] sm:$0xf0] }
 0x2e9   :  { %4823 = vmatpush.bf16.msrb.mxu0 %v6612_v31  ;;  %4836 = vmatpush.bf16.msrb.mxu1 %v6616_v32  ;;  %v7907_v31 = vld [vmem:[%s10844_s8 + $0x474] sm:$0xf]  ;;  %v6893_v32 = vld [vmem:[%s10844_s8 + $0x4f8] sm:$0xf0]  ;;  %v6892_v37 = vor.u32 %v7924_v26, %v6891_v54  ;;  %v7323_v54 = vld [vmem:[%s10844_s8 + $0x7b8] sm:$0xf] }
 0x2ea   :  { %v6896_v38 = vor.u32 %v7907_v31, %v6893_v32  ;;  %v8012_v31 = vld [vmem:[%s10844_s8 + $0x7bc] sm:$0xf]  ;;  %v7325_v32 = vld [vmem:[%s10844_s8 + $0x840] sm:$0xf0] }
 0x2ec   :  { %4798 = vmatpush.bf16.msrb.mxu2 %v6468_v40  ;;  %4811 = vmatpush.bf16.msrb.mxu3 %v6472_v41  ;;  %v7890_v40 = vld [vmem:[%s10844_s8 + $0x3e4] sm:$0xf0]  ;;  %v6900_v41 = vor.u32 %v7925_v34, %v6899_v33  ;;  %v6356_v33 = vor.u32 %v7789_v20, %v6355_v19  ;;  %v6360_v34 = vor.u32 %v7772_v21, %v6357_v22  ;;  %v7876_v19 = vld [vmem:[%s10844_s8 + $0x37c] sm:$0xf]  ;;  %v6781_v20 = vld [vmem:[%s10844_s8 + $0x400] sm:$0xf0] }
 0x2ed   :  { %4824 = vmatpush.bf16.msrb.mxu0 %v6476_v46  ;;  %4837 = vmatpush.bf16.msrb.mxu1 %v6480_v48  ;;  %v6763_v46 = vld [vmem:[%s10844_s8 + $0x368] sm:$0xf]  ;;  %v7891_v48 = vld [vmem:[%s10844_s8 + $0x3ec] sm:$0xf0]  ;;  %v6756_v51 = vor.u32 %v7890_v40, %v6755_v39  ;;  %v7328_v40 = vor.u32 %v8012_v31, %v7325_v32  ;;  %v7842_v31 = vld [vmem:[%s10844_s8 + $0x26c] sm:$0xf] }
 0x2ee   :  { %v6764_v55 = vor.u32 %v7891_v48, %v6763_v46  ;;  %v7978_v46 = vld [vmem:[%s10844_s8 + $0x6ac] sm:$0xf]  ;;  %v7189_v48 = vld [vmem:[%s10844_s8 + $0x730] sm:$0xf0] }
 0x2ef   :  { %v6645_v32 = vld [vmem:[%s10844_s8 + $0x2f0] sm:$0xf0] }
 0x2f0   :  { %4799 = vmatpush.bf16.msrb.mxu2 %v6332_v58  ;;  %4812 = vmatpush.bf16.msrb.mxu3 %v6336_v59  ;;  %v6621_v58 = vld [vmem:[%s10844_s8 + $0x2d8] sm:$0xf0]  ;;  %v6627_v59 = vld [vmem:[%s10844_s8 + $0x258] sm:$0xf] }
 0x2f1   :  { %4825 = vmatpush.bf16.msrb.mxu0 %v6340_v63  ;;  %4838 = vmatpush.bf16.msrb.mxu1 %v6344_v0  ;;  %v6620_v63 = vor.u32 %v7856_v47, %v6619_v45  ;;  %v6624_v0 = vor.u32 %v7839_v57, %v6621_v58  ;;  %v6628_v3 = vor.u32 %v7857_v60, %v6627_v59  ;;  %v7051_v57 = vld [vmem:[%s10844_s8 + $0x598] sm:$0xf]  ;;  %v7961_v58 = vld [vmem:[%s10844_s8 + $0x61c] sm:$0xf0]  ;;  %v7944_v59 = vld [vmem:[%s10844_s8 + $0x59c] sm:$0xf] }
 0x2f2   :  { %v7188_v45 = vor.u32 %v7995_v44, %v7187_v43  ;;  %v7192_v47 = vor.u32 %v7978_v46, %v7189_v48  ;;  %v7053_v60 = vld [vmem:[%s10844_s8 + $0x620] sm:$0xf0]  ;;  %v7808_v43 = vld [vmem:[%s10844_s8 + $0x15c] sm:$0xf]  ;;  %v6363_v46 = vld [vmem:[%s10844_s8 + $0x40] sm:$0xf] }
 0x2f3   :  { %7411 = vmatmul.msk.bf16.vlgmr.msrb.gmra.mxu2 %vm9466_vm5, %v9470_v28  ;;  %7414 = vmatmul.msk.bf16.vlgmr.msrb.gmra.mxu3 %vm9466_vm5, %v9470_v28  ;;  %v6509_v44 = vld [vmem:[%s10844_s8 + $0x1e0] sm:$0xf0] }
 0x2f4   :  { %4844 = vmatpush.bf16.msra.mxu2 %v7300_v1  ;;  %4857 = vmatpush.bf16.msra.mxu3 %v7304_v2  ;;  %v6483_v1 = vld [vmem:[%s10844_s8 + $0x140] sm:$0xf]  ;;  %v7822_v2 = vld [vmem:[%s10844_s8 + $0x1c4] sm:$0xf0] }
 0x2f5   :  { %4870 = vmatpush.bf16.msra.mxu0 %v7308_v5  ;;  %4883 = vmatpush.bf16.msra.mxu1 %v7312_v6  ;;  %v7805_v5 = vld [vmem:[%s10844_s8 + $0x144] sm:$0xf]  ;;  %v6485_v6 = vld [vmem:[%s10844_s8 + $0x1c8] sm:$0xf0]  ;;  %v6484_v12 = vor.u32 %v7822_v2, %v6483_v1  ;;  %v7052_v1 = vor.u32 %v7961_v58, %v7051_v57  ;;  %v7056_v2 = vor.u32 %v7944_v59, %v7053_v60  ;;  %v6373_v58 = vld [vmem:[%s10844_s8 + $0xd0] sm:$0xf0] }
 0x2f6   :  { %7417 = vmatmul.msk.bf16.vlgmr.msrb.gmra.mxu0 %vm9466_vm5, %v9470_v28  ;;  %7420 = vmatmul.msk.bf16.vlgmr.msrb.gmra.mxu1 %vm9466_vm5, %v9470_v28  ;;  %v7774_v57 = vld [vmem:[%s10844_s8 + $0x4c] sm:$0xf]  ;;  %v7331_v59 = vld [vmem:[%s10844_s8 + $0x7c0] sm:$0xf]  ;;  %v8030_v60 = vld [vmem:[%s10844_s8 + $0x844] sm:$0xf0] }
 0x2f8   :  { %4845 = vmatpush.bf16.msra.mxu2 %v7164_v13  ;;  %4858 = vmatpush.bf16.msra.mxu3 %v7168_v14  ;;  %v6488_v13 = vor.u32 %v7805_v5, %v6485_v6  ;;  %v7788_v14 = vld [vmem:[%s10844_s8 + $0xb4] sm:$0xf0]  ;;  %v6915_v5 = vld [vmem:[%s10844_s8 + $0x488] sm:$0xf]  ;;  %v7927_v6 = vld [vmem:[%s10844_s8 + $0x50c] sm:$0xf0] }
 0x2f9   :  { %4871 = vmatpush.bf16.msra.mxu0 %v7172_v17  ;;  %4884 = vmatpush.bf16.msra.mxu1 %v7176_v18  ;;  %v6492_v17 = vor.u32 %v7823_v8, %v6491_v7  ;;  %v6496_v18 = vor.u32 %v7806_v9, %v6493_v10  ;;  %v6348_v26 = vor.u32 %v7788_v14, %v6347_v11  ;;  %v7910_v7 = vld [vmem:[%s10844_s8 + $0x48c] sm:$0xf]  ;;  %v6917_v8 = vld [vmem:[%s10844_s8 + $0x510] sm:$0xf0]  ;;  %v6771_v11 = vld [vmem:[%s10844_s8 + $0x370] sm:$0xf] }
 0x2fa   :  { %v6920_v14 = vor.u32 %v7910_v7, %v6917_v8  ;;  %v7332_v7 = vor.u32 %v8030_v60, %v7331_v59  ;;  %v6651_v59 = vld [vmem:[%s10844_s8 + $0x270] sm:$0xf]  ;;  %v7860_v60 = vld [vmem:[%s10844_s8 + $0x2f4] sm:$0xf0] }
 0x2fc   :  { %4846 = vmatpush.bf16.msra.mxu2 %v7028_v25  ;;  %4859 = vmatpush.bf16.msra.mxu3 %v7032_v53  ;;  %v8011_v25 = vld [vmem:[%s10844_s8 + $0x7b4] sm:$0xf]  ;;  %v7317_v53 = vld [vmem:[%s10844_s8 + $0x838] sm:$0xf0] }
 0x2fd   :  { %4872 = vmatpush.bf16.msra.mxu0 %v7036_v29  ;;  %4885 = vmatpush.bf16.msra.mxu1 %v7040_v30  ;;  %v6352_v29 = vor.u32 %v7771_v15, %v6349_v16  ;;  %v8029_v30 = vld [vmem:[%s10844_s8 + $0x83c] sm:$0xf0]  ;;  %v7320_v36 = vor.u32 %v8011_v25, %v7317_v53  ;;  %v7875_v15 = vld [vmem:[%s10844_s8 + $0x374] sm:$0xf]  ;;  %v6773_v16 = vld [vmem:[%s10844_s8 + $0x3f8] sm:$0xf0]  ;;  %v6784_v53 = vor.u32 %v7876_v19, %v6781_v20 }
 0x2fe   :  { %v7324_v39 = vor.u32 %v8029_v30, %v7323_v54  ;;  %v6776_v22 = vor.u32 %v7875_v15, %v6773_v16  ;;  %v7841_v54 = vld [vmem:[%s10844_s8 + $0x264] sm:$0xf]  ;;  %v7859_v30 = vld [vmem:[%s10844_s8 + $0x2ec] sm:$0xf0]  ;;  %v7203_v15 = vld [vmem:[%s10844_s8 + $0x6b8] sm:$0xf] }
 0x2ff   :  { %v7997_v16 = vld [vmem:[%s10844_s8 + $0x73c] sm:$0xf0] }
 0x300   :  { %4847 = vmatpush.bf16.msra.mxu2 %v6892_v37  ;;  %4860 = vmatpush.bf16.msra.mxu3 %v6896_v38  ;;  %v7179_v37 = vld [vmem:[%s10844_s8 + $0x6a0] sm:$0xf]  ;;  %v7994_v38 = vld [vmem:[%s10844_s8 + $0x724] sm:$0xf0] }
 0x301   :  { %4873 = vmatpush.bf16.msra.mxu0 %v6900_v41  ;;  %4886 = vmatpush.bf16.msra.mxu1 %v6904_v42  ;;  %v7977_v41 = vld [vmem:[%s10844_s8 + $0x6a4] sm:$0xf]  ;;  %v7181_v42 = vld [vmem:[%s10844_s8 + $0x728] sm:$0xf0]  ;;  %v7180_v49 = vor.u32 %v7994_v38, %v7179_v37  ;;  %v6648_v38 = vor.u32 %v7842_v31, %v6645_v32 }
 0x302   :  { %v7184_v50 = vor.u32 %v7977_v41, %v7181_v42  ;;  %v6507_v41 = vld [vmem:[%s10844_s8 + $0x158] sm:$0xf]  ;;  %v7825_v42 = vld [vmem:[%s10844_s8 + $0x1dc] sm:$0xf0] }
 0x304   :  { %4848 = vmatpush.bf16.msra.mxu2 %v6756_v51  ;;  %4861 = vmatpush.bf16.msra.mxu3 %v6760_v52  ;;  %v7043_v51 = vld [vmem:[%s10844_s8 + $0x590] sm:$0xf]  ;;  %v7960_v52 = vld [vmem:[%s10844_s8 + $0x614] sm:$0xf0] }
 0x305   :  { %4874 = vmatpush.bf16.msra.mxu0 %v6764_v55  ;;  %4887 = vmatpush.bf16.msra.mxu1 %v6768_v56  ;;  %v7943_v55 = vld [vmem:[%s10844_s8 + $0x594] sm:$0xf]  ;;  %v7045_v56 = vld [vmem:[%s10844_s8 + $0x618] sm:$0xf0]  ;;  %v7044_v61 = vor.u32 %v7960_v52, %v7043_v51  ;;  %v7773_v51 = vld [vmem:[%s10844_s8 + $0x44] sm:$0xf] }
 0x306   :  { %v7048_v62 = vor.u32 %v7943_v55, %v7045_v56  ;;  %v6365_v52 = vld [vmem:[%s10844_s8 + $0xc8] sm:$0xf0]  ;;  %v6371_v55 = vld [vmem:[%s10844_s8 + $0x48] sm:$0xf]  ;;  %v7791_v56 = vld [vmem:[%s10844_s8 + $0xcc] sm:$0xf0] }
 0x308   :  { %4849 = vmatpush.bf16.msra.mxu2 %v6620_v63  ;;  %4862 = vmatpush.bf16.msra.mxu3 %v6624_v0  ;;  %v6907_v63 = vld [vmem:[%s10844_s8 + $0x480] sm:$0xf]  ;;  %v7926_v0 = vld [vmem:[%s10844_s8 + $0x504] sm:$0xf0] }
 0x309   :  { %4875 = vmatpush.bf16.msra.mxu0 %v6628_v3  ;;  %4888 = vmatpush.bf16.msra.mxu1 %v6632_v4  ;;  %v7909_v3 = vld [vmem:[%s10844_s8 + $0x484] sm:$0xf]  ;;  %v6909_v4 = vld [vmem:[%s10844_s8 + $0x508] sm:$0xf0]  ;;  %v6908_v9 = vor.u32 %v7926_v0, %v6907_v63  ;;  %v7339_v63 = vld [vmem:[%s10844_s8 + $0x7c8] sm:$0xf] }
 0x30a   :  { %v6912_v10 = vor.u32 %v7909_v3, %v6909_v4  ;;  %v8014_v3 = vld [vmem:[%s10844_s8 + $0x7cc] sm:$0xf]  ;;  %v7341_v4 = vld [vmem:[%s10844_s8 + $0x850] sm:$0xf0] }
 0x30c   :  { %4850 = vmatpush.bf16.msra.mxu2 %v6484_v12  ;;  %4863 = vmatpush.bf16.msra.mxu3 %v6488_v13  ;;  %v7892_v12 = vld [vmem:[%s10844_s8 + $0x3f4] sm:$0xf0]  ;;  %v6916_v13 = vor.u32 %v7927_v6, %v6915_v5  ;;  %v6372_v5 = vor.u32 %v7791_v56, %v6371_v55  ;;  %v6376_v6 = vor.u32 %v7774_v57, %v6373_v58  ;;  %v7878_v55 = vld [vmem:[%s10844_s8 + $0x38c] sm:$0xf]  ;;  %v6797_v56 = vld [vmem:[%s10844_s8 + $0x410] sm:$0xf0] }
 0x30d   :  { %4876 = vmatpush.bf16.msra.mxu0 %v6492_v17  ;;  %4889 = vmatpush.bf16.msra.mxu1 %v6496_v18  ;;  %v6779_v17 = vld [vmem:[%s10844_s8 + $0x378] sm:$0xf]  ;;  %v7893_v18 = vld [vmem:[%s10844_s8 + $0x3fc] sm:$0xf0]  ;;  %v6772_v21 = vor.u32 %v7892_v12, %v6771_v11  ;;  %v7344_v12 = vor.u32 %v8014_v3, %v7341_v4  ;;  %v7844_v3 = vld [vmem:[%s10844_s8 + $0x27c] sm:$0xf] }
 0x30e   :  { %v6780_v25 = vor.u32 %v7893_v18, %v6779_v17  ;;  %v7980_v17 = vld [vmem:[%s10844_s8 + $0x6bc] sm:$0xf]  ;;  %v7205_v18 = vld [vmem:[%s10844_s8 + $0x740] sm:$0xf0] }
 0x30f   :  { %v6661_v4 = vld [vmem:[%s10844_s8 + $0x300] sm:$0xf0] }
 0x310   :  { %4851 = vmatpush.bf16.msra.mxu2 %v6348_v26  ;;  %4864 = vmatpush.bf16.msra.mxu3 %v6352_v29  ;;  %v6637_v26 = vld [vmem:[%s10844_s8 + $0x2e8] sm:$0xf0]  ;;  %v6643_v29 = vld [vmem:[%s10844_s8 + $0x268] sm:$0xf] }
 0x311   :  { %4877 = vmatpush.bf16.msra.mxu0 %v6356_v33  ;;  %4890 = vmatpush.bf16.msra.mxu1 %v6360_v34  ;;  %v6636_v33 = vor.u32 %v7858_v24, %v6635_v23  ;;  %v6640_v34 = vor.u32 %v7841_v54, %v6637_v26  ;;  %v6644_v37 = vor.u32 %v7859_v30, %v6643_v29  ;;  %v7067_v54 = vld [vmem:[%s10844_s8 + $0x5a8] sm:$0xf]  ;;  %v7963_v26 = vld [vmem:[%s10844_s8 + $0x62c] sm:$0xf0]  ;;  %v7946_v29 = vld [vmem:[%s10844_s8 + $0x5ac] sm:$0xf] }
 0x312   :  { %v7204_v23 = vor.u32 %v7997_v16, %v7203_v15  ;;  %v7208_v24 = vor.u32 %v7980_v17, %v7205_v18  ;;  %v7069_v30 = vld [vmem:[%s10844_s8 + $0x630] sm:$0xf0]  ;;  %v7810_v15 = vld [vmem:[%s10844_s8 + $0x16c] sm:$0xf]  ;;  %v6379_v17 = vld [vmem:[%s10844_s8 + $0x50] sm:$0xf] }
 0x313   :  { %7423 = vmatmul.msk.bf16.vlgmr.msra.gmra.mxu2 %vm9466_vm5, %v9470_v28  ;;  %7426 = vmatmul.msk.bf16.vlgmr.msra.gmra.mxu3 %vm9466_vm5, %v9470_v28  ;;  %v6525_v16 = vld [vmem:[%s10844_s8 + $0x1f0] sm:$0xf0] }
 0x314   :  { %4896 = vmatpush.bf16.msrb.mxu2 %v7316_v35  ;;  %4909 = vmatpush.bf16.msrb.mxu3 %v7320_v36  ;;  %v6499_v35 = vld [vmem:[%s10844_s8 + $0x150] sm:$0xf]  ;;  %v7824_v36 = vld [vmem:[%s10844_s8 + $0x1d4] sm:$0xf0] }
 0x315   :  { %4922 = vmatpush.bf16.msrb.mxu0 %v7324_v39  ;;  %4935 = vmatpush.bf16.msrb.mxu1 %v7328_v40  ;;  %v7807_v39 = vld [vmem:[%s10844_s8 + $0x154] sm:$0xf]  ;;  %v6501_v40 = vld [vmem:[%s10844_s8 + $0x1d8] sm:$0xf0]  ;;  %v6500_v48 = vor.u32 %v7824_v36, %v6499_v35  ;;  %v7068_v35 = vor.u32 %v7963_v26, %v7067_v54  ;;  %v7072_v36 = vor.u32 %v7946_v29, %v7069_v30  ;;  %v6389_v26 = vld [vmem:[%s10844_s8 + $0xe0] sm:$0xf0] }
 0x316   :  { %7429 = vmatmul.msk.bf16.vlgmr.msra.gmra.mxu0 %vm9466_vm5, %v9470_v28  ;;  %7432 = vmatmul.msk.bf16.vlgmr.msra.gmra.mxu1 %vm9466_vm5, %v9470_v28  ;;  %v7776_v54 = vld [vmem:[%s10844_s8 + $0x5c] sm:$0xf]  ;;  %v7347_v29 = vld [vmem:[%s10844_s8 + $0x7d0] sm:$0xf]  ;;  %v8032_v30 = vld [vmem:[%s10844_s8 + $0x854] sm:$0xf0] }
 0x318   :  { %4897 = vmatpush.bf16.msrb.mxu2 %v7180_v49  ;;  %4910 = vmatpush.bf16.msrb.mxu3 %v7184_v50  ;;  %v6504_v49 = vor.u32 %v7807_v39, %v6501_v40  ;;  %v7790_v50 = vld [vmem:[%s10844_s8 + $0xc4] sm:$0xf0]  ;;  %v6931_v39 = vld [vmem:[%s10844_s8 + $0x498] sm:$0xf]  ;;  %v7929_v40 = vld [vmem:[%s10844_s8 + $0x51c] sm:$0xf0] }
 0x319   :  { %4923 = vmatpush.bf16.msrb.mxu0 %v7188_v45  ;;  %4936 = vmatpush.bf16.msrb.mxu1 %v7192_v47  ;;  %v6508_v45 = vor.u32 %v7825_v42, %v6507_v41  ;;  %v6512_v47 = vor.u32 %v7808_v43, %v6509_v44  ;;  %v6364_v0 = vor.u32 %v7790_v50, %v6363_v46  ;;  %v7912_v41 = vld [vmem:[%s10844_s8 + $0x49c] sm:$0xf]  ;;  %v6933_v42 = vld [vmem:[%s10844_s8 + $0x520] sm:$0xf0]  ;;  %v6787_v46 = vld [vmem:[%s10844_s8 + $0x380] sm:$0xf] }
 0x31a   :  { %v6936_v50 = vor.u32 %v7912_v41, %v6933_v42  ;;  %v7348_v41 = vor.u32 %v8032_v30, %v7347_v29 }
 0x31c   :  { %4898 = vmatpush.bf16.msrb.mxu2 %v7044_v61  ;;  %4911 = vmatpush.bf16.msrb.mxu3 %v7048_v62  ;;  %v8013_v61 = vld [vmem:[%s10844_s8 + $0x7c4] sm:$0xf]  ;;  %v7333_v62 = vld [vmem:[%s10844_s8 + $0x848] sm:$0xf0] }
 0x31d   :  { %4924 = vmatpush.bf16.msrb.mxu0 %v7052_v1  ;;  %4937 = vmatpush.bf16.msrb.mxu1 %v7056_v2  ;;  %v6368_v1 = vor.u32 %v7773_v51, %v6365_v52  ;;  %v8031_v2 = vld [vmem:[%s10844_s8 + $0x84c] sm:$0xf0]  ;;  %v7336_v8 = vor.u32 %v8013_v61, %v7333_v62  ;;  %v7877_v51 = vld [vmem:[%s10844_s8 + $0x384] sm:$0xf]  ;;  %v6789_v52 = vld [vmem:[%s10844_s8 + $0x408] sm:$0xf0]  ;;  %v6800_v62 = vor.u32 %v7878_v55, %v6797_v56 }
 0x31e   :  { %v7340_v11 = vor.u32 %v8031_v2, %v7339_v63  ;;  %v6792_v58 = vor.u32 %v7877_v51, %v6789_v52  ;;  %v7843_v63 = vld [vmem:[%s10844_s8 + $0x274] sm:$0xf]  ;;  %v7861_v2 = vld [vmem:[%s10844_s8 + $0x2fc] sm:$0xf0]  ;;  %v7219_v51 = vld [vmem:[%s10844_s8 + $0x6c8] sm:$0xf] }
 0x31f   :  { %v7999_v52 = vld [vmem:[%s10844_s8 + $0x74c] sm:$0xf0]  ;;  %v10327_v55 = vld [vmem:[%s10845_s9] sm:$0xff] }
 0x320   :  { %4899 = vmatpush.bf16.msrb.mxu2 %v6908_v9  ;;  %4912 = vmatpush.bf16.msrb.mxu3 %v6912_v10  ;;  %v7195_v9 = vld [vmem:[%s10844_s8 + $0x6b0] sm:$0xf]  ;;  %v7996_v10 = vld [vmem:[%s10844_s8 + $0x734] sm:$0xf0] }
 0x321   :  { %4925 = vmatpush.bf16.msrb.mxu0 %v6916_v13  ;;  %4938 = vmatpush.bf16.msrb.mxu1 %v6920_v14  ;;  %v7979_v13 = vld [vmem:[%s10844_s8 + $0x6b4] sm:$0xf]  ;;  %v7197_v14 = vld [vmem:[%s10844_s8 + $0x738] sm:$0xf0]  ;;  %v7196_v19 = vor.u32 %v7996_v10, %v7195_v9  ;;  %v6664_v10 = vor.u32 %v7844_v3, %v6661_v4  ;;  %v7075_v56 = vld [vmem:[%s10844_s8 + $0x5b0] sm:$0xf] }
 0x322   :  { %v7200_v20 = vor.u32 %v7979_v13, %v7197_v14  ;;  %v6523_v13 = vld [vmem:[%s10844_s8 + $0x168] sm:$0xf]  ;;  %v7827_v14 = vld [vmem:[%s10844_s8 + $0x1ec] sm:$0xf0]  ;;  %v3263_v3 = vperm.slane %v10327_v55, 3 }
 0x323   :  { %v7948_v4 = vld [vmem:[%s10844_s8 + $0x5bc] sm:$0xf] }
 0x324   :  { %4900 = vmatpush.bf16.msrb.mxu2 %v6772_v21  ;;  %4913 = vmatpush.bf16.msrb.mxu3 %v6776_v22  ;;  %v7059_v21 = vld [vmem:[%s10844_s8 + $0x5a0] sm:$0xf]  ;;  %v7962_v22 = vld [vmem:[%s10844_s8 + $0x624] sm:$0xf0] }
 0x325   :  { %4926 = vmatpush.bf16.msrb.mxu0 %v6780_v25  ;;  %4939 = vmatpush.bf16.msrb.mxu1 %v6784_v53  ;;  %v7945_v25 = vld [vmem:[%s10844_s8 + $0x5a4] sm:$0xf]  ;;  %v7061_v53 = vld [vmem:[%s10844_s8 + $0x628] sm:$0xf0]  ;;  %v7060_v31 = vor.u32 %v7962_v22, %v7059_v21  ;;  %v7775_v21 = vld [vmem:[%s10844_s8 + $0x54] sm:$0xf] }
 0x326   :  { %v7064_v32 = vor.u32 %v7945_v25, %v7061_v53  ;;  %v6381_v22 = vld [vmem:[%s10844_s8 + $0xd8] sm:$0xf0]  ;;  %v6387_v25 = vld [vmem:[%s10844_s8 + $0x58] sm:$0xf]  ;;  %v7793_v53 = vld [vmem:[%s10844_s8 + $0xdc] sm:$0xf0] }
 0x328   :  { %4901 = vmatpush.bf16.msrb.mxu2 %v6636_v33  ;;  %4914 = vmatpush.bf16.msrb.mxu3 %v6640_v34  ;;  %v6923_v33 = vld [vmem:[%s10844_s8 + $0x490] sm:$0xf]  ;;  %v7928_v34 = vld [vmem:[%s10844_s8 + $0x514] sm:$0xf0] }
 0x329   :  { %4927 = vmatpush.bf16.msrb.mxu0 %v6644_v37  ;;  %4940 = vmatpush.bf16.msrb.mxu1 %v6648_v38  ;;  %v7911_v37 = vld [vmem:[%s10844_s8 + $0x494] sm:$0xf]  ;;  %v6925_v38 = vld [vmem:[%s10844_s8 + $0x518] sm:$0xf0]  ;;  %v6924_v43 = vor.u32 %v7928_v34, %v6923_v33  ;;  %v7355_v33 = vld [vmem:[%s10844_s8 + $0x7d8] sm:$0xf] }
 0x32a   :  { %v6928_v44 = vor.u32 %v7911_v37, %v6925_v38  ;;  %v8016_v37 = vld [vmem:[%s10844_s8 + $0x7dc] sm:$0xf]  ;;  %v7357_v38 = vld [vmem:[%s10844_s8 + $0x860] sm:$0xf0] }
 0x32c   :  { %4902 = vmatpush.bf16.msrb.mxu2 %v6500_v48  ;;  %4915 = vmatpush.bf16.msrb.mxu3 %v6504_v49  ;;  %v7894_v48 = vld [vmem:[%s10844_s8 + $0x404] sm:$0xf0]  ;;  %v6932_v49 = vor.u32 %v7929_v40, %v6931_v39  ;;  %v6388_v39 = vor.u32 %v7793_v53, %v6387_v25  ;;  %v6392_v40 = vor.u32 %v7776_v54, %v6389_v26  ;;  %v6803_v53 = vld [vmem:[%s10844_s8 + $0x390] sm:$0xf]  ;;  %v7896_v54 = vld [vmem:[%s10844_s8 + $0x414] sm:$0xf0] }
 0x32d   :  { %4928 = vmatpush.bf16.msrb.mxu0 %v6508_v45  ;;  %4941 = vmatpush.bf16.msrb.mxu1 %v6512_v47  ;;  %v6795_v45 = vld [vmem:[%s10844_s8 + $0x388] sm:$0xf]  ;;  %v7895_v47 = vld [vmem:[%s10844_s8 + $0x40c] sm:$0xf0]  ;;  %v6788_v57 = vor.u32 %v7894_v48, %v6787_v46  ;;  %v7981_v46 = vld [vmem:[%s10844_s8 + $0x6c4] sm:$0xf] }
 0x32e   :  { %v6796_v61 = vor.u32 %v7895_v47, %v6795_v45  ;;  %v7982_v45 = vld [vmem:[%s10844_s8 + $0x6cc] sm:$0xf]  ;;  %v7221_v47 = vld [vmem:[%s10844_s8 + $0x750] sm:$0xf0] }
 0x330   :  { %4903 = vmatpush.bf16.msrb.mxu2 %v6364_v0  ;;  %4916 = vmatpush.bf16.msrb.mxu3 %v6368_v1  ;;  %v6653_v0 = vld [vmem:[%s10844_s8 + $0x2f8] sm:$0xf0]  ;;  %v6659_v1 = vld [vmem:[%s10844_s8 + $0x278] sm:$0xf] }
 0x331   :  { %4929 = vmatpush.bf16.msrb.mxu0 %v6372_v5  ;;  %4942 = vmatpush.bf16.msrb.mxu1 %v6376_v6  ;;  %v6652_v5 = vor.u32 %v7860_v60, %v6651_v59  ;;  %v6656_v6 = vor.u32 %v7843_v63, %v6653_v0  ;;  %v6660_v9 = vor.u32 %v7861_v2, %v6659_v1  ;;  %v7964_v59 = vld [vmem:[%s10844_s8 + $0x634] sm:$0xf0]  ;;  %v7947_v60 = vld [vmem:[%s10844_s8 + $0x5b4] sm:$0xf]  ;;  %v7965_v1 = vld [vmem:[%s10844_s8 + $0x63c] sm:$0xf0] }
 0x332   :  { %v7224_v63 = vor.u32 %v7982_v45, %v7221_v47  ;;  %v7083_v0 = vld [vmem:[%s10844_s8 + $0x5b8] sm:$0xf]  ;;  %v3262_v2 = vperm.slane %v10327_v55, 2  ;;  %v7863_v45 = vld [vmem:[%s10844_s8 + $0x30c] sm:$0xf0] }
 0x333   :  { %7435 = vmatmul.msk.bf16.vlgmr.msrb.gmra.mxu2 %vm9466_vm5, %v9470_v28  ;;  %7438 = vmatmul.msk.bf16.vlgmr.msrb.gmra.mxu3 %vm9466_vm5, %v9470_v28  ;;  %v7846_v47 = vld [vmem:[%s10844_s8 + $0x28c] sm:$0xf] }
 0x334   :  { %4948 = vmatpush.bf16.msra.mxu2 %v7332_v7  ;;  %4961 = vmatpush.bf16.msra.mxu3 %v7336_v8  ;;  %v6515_v7 = vld [vmem:[%s10844_s8 + $0x160] sm:$0xf]  ;;  %v7826_v8 = vld [vmem:[%s10844_s8 + $0x1e4] sm:$0xf0] }
 0x335   :  { %4974 = vmatpush.bf16.msra.mxu0 %v7340_v11  ;;  %4987 = vmatpush.bf16.msra.mxu1 %v7344_v12  ;;  %v7809_v11 = vld [vmem:[%s10844_s8 + $0x164] sm:$0xf]  ;;  %v6517_v12 = vld [vmem:[%s10844_s8 + $0x1e8] sm:$0xf0]  ;;  %v6516_v18 = vor.u32 %v7826_v8, %v6515_v7  ;;  %v7084_v8 = vor.u32 %v7965_v1, %v7083_v0 }
 0x336   :  { %7441 = vmatmul.msk.bf16.vlgmr.msrb.gmra.mxu0 %vm9466_vm5, %v9470_v28  ;;  %7444 = vmatmul.msk.bf16.vlgmr.msrb.gmra.mxu1 %vm9466_vm5, %v9470_v28 }
 0x338   :  { %4949 = vmatpush.bf16.msra.mxu2 %v7196_v19  ;;  %4962 = vmatpush.bf16.msra.mxu3 %v7200_v20  ;;  %v6520_v19 = vor.u32 %v7809_v11, %v6517_v12  ;;  %v7792_v20 = vld [vmem:[%s10844_s8 + $0xd4] sm:$0xf0]  ;;  %v6939_v11 = vld [vmem:[%s10844_s8 + $0x4a0] sm:$0xf]  ;;  %v7930_v12 = vld [vmem:[%s10844_s8 + $0x524] sm:$0xf0] }
 0x339   :  { %4975 = vmatpush.bf16.msra.mxu0 %v7204_v23  ;;  %4988 = vmatpush.bf16.msra.mxu1 %v7208_v24  ;;  %v6524_v23 = vor.u32 %v7827_v14, %v6523_v13  ;;  %v6528_v24 = vor.u32 %v7810_v15, %v6525_v16  ;;  %v6380_v34 = vor.u32 %v7792_v20, %v6379_v17  ;;  %v7913_v13 = vld [vmem:[%s10844_s8 + $0x4a4] sm:$0xf]  ;;  %v6941_v17 = vld [vmem:[%s10844_s8 + $0x528] sm:$0xf0] }
 0x33a   :  { %v7914_v20 = vld [vmem:[%s10844_s8 + $0x4ac] sm:$0xf]  ;;  %v6944_v25 = vor.u32 %v7913_v13, %v6941_v17 }
 0x33c   :  { %4950 = vmatpush.bf16.msra.mxu2 %v7060_v31  ;;  %4963 = vmatpush.bf16.msra.mxu3 %v7064_v32  ;;  %v8015_v31 = vld [vmem:[%s10844_s8 + $0x7d4] sm:$0xf]  ;;  %v7349_v32 = vld [vmem:[%s10844_s8 + $0x858] sm:$0xf0] }
 0x33d   :  { %4976 = vmatpush.bf16.msra.mxu0 %v7068_v35  ;;  %4989 = vmatpush.bf16.msra.mxu1 %v7072_v36  ;;  %v6384_v35 = vor.u32 %v7775_v21, %v6381_v22  ;;  %v8033_v36 = vld [vmem:[%s10844_s8 + $0x85c] sm:$0xf0]  ;;  %v7352_v42 = vor.u32 %v8015_v31, %v7349_v32  ;;  %v6949_v21 = vld [vmem:[%s10844_s8 + $0x530] sm:$0xf0]  ;;  %v3260_v22 = vperm.slane %v10327_v55, 0 }
 0x33e   :  { %v7356_v48 = vor.u32 %v8033_v36, %v7355_v33  ;;  %v6952_v29 = vor.u32 %v7914_v20, %v6949_v21  ;;  %v7879_v32 = vld [vmem:[%s10844_s8 + $0x394] sm:$0xf]  ;;  %v6805_v33 = vld [vmem:[%s10844_s8 + $0x418] sm:$0xf0]  ;;  %v7778_v20 = vld [vmem:[%s10844_s8 + $0x6c] sm:$0xf] }
 0x340   :  { %4951 = vmatpush.bf16.msra.mxu2 %v6924_v43  ;;  %4964 = vmatpush.bf16.msra.mxu3 %v6928_v44  ;;  %v7211_v43 = vld [vmem:[%s10844_s8 + $0x6c0] sm:$0xf]  ;;  %v7998_v44 = vld [vmem:[%s10844_s8 + $0x744] sm:$0xf0] }
 0x341   :  { %4977 = vmatpush.bf16.msra.mxu0 %v6932_v49  ;;  %4990 = vmatpush.bf16.msra.mxu1 %v6936_v50  ;;  %v7360_v49 = vor.u32 %v8016_v37, %v7357_v38  ;;  %v7213_v50 = vld [vmem:[%s10844_s8 + $0x748] sm:$0xf0]  ;;  %v7897_v37 = vld [vmem:[%s10844_s8 + $0x41c] sm:$0xf0]  ;;  %v7880_v38 = vld [vmem:[%s10844_s8 + $0x39c] sm:$0xf] }
 0x344   :  { %4952 = vmatpush.bf16.msra.mxu2 %v6788_v57  ;;  %4965 = vmatpush.bf16.msra.mxu3 %v6792_v58  ;;  %v7212_v57 = vor.u32 %v7998_v44, %v7211_v43  ;;  %v7216_v58 = vor.u32 %v7981_v46, %v7213_v50  ;;  %v7862_v46 = vld [vmem:[%s10844_s8 + $0x304] sm:$0xf0] }
 0x345   :  { %4978 = vmatpush.bf16.msra.mxu0 %v6796_v61  ;;  %4991 = vmatpush.bf16.msra.mxu1 %v6800_v62  ;;  %v7077_v61 = vld [vmem:[%s10844_s8 + $0x638] sm:$0xf0]  ;;  %v7220_v62 = vor.u32 %v7999_v52, %v7219_v51  ;;  %v6669_v51 = vld [vmem:[%s10844_s8 + $0x308] sm:$0xf0]  ;;  %v6675_v52 = vld [vmem:[%s10844_s8 + $0x288] sm:$0xf] }
 0x346   :  { %v7080_v7 = vor.u32 %v7947_v60, %v7077_v61  ;;  %v7828_v60 = vld [vmem:[%s10844_s8 + $0x1f4] sm:$0xf0]  ;;  %v7811_v61 = vld [vmem:[%s10844_s8 + $0x174] sm:$0xf] }
 0x348   :  { %4953 = vmatpush.bf16.msra.mxu2 %v6652_v5  ;;  %4966 = vmatpush.bf16.msra.mxu3 %v6656_v6  ;;  %v7085_v5 = vld [vmem:[%s10844_s8 + $0x640] sm:$0xf0]  ;;  %v7076_v6 = vor.u32 %v7964_v59, %v7075_v56  ;;  %v6677_v56 = vld [vmem:[%s10844_s8 + $0x310] sm:$0xf0] }
 0x349   :  { %4979 = vmatpush.bf16.msra.mxu0 %v6660_v9  ;;  %4992 = vmatpush.bf16.msra.mxu1 %v6664_v10  ;;  %v7088_v14 = vor.u32 %v7948_v4, %v7085_v5  ;;  %v6680_v0 = vor.u32 %v7846_v47, %v6677_v56  ;;  %v7829_v4 = vld [vmem:[%s10844_s8 + $0x1fc] sm:$0xf0]  ;;  %v3266_v5 = vperm.slane %v10327_v55, 6 }
 0x34c   :  { %4954 = vmatpush.bf16.msra.mxu2 %v6516_v18  ;;  %4967 = vmatpush.bf16.msra.mxu3 %v6520_v19  ;;  %v6947_v18 = vld [vmem:[%s10844_s8 + $0x4a8] sm:$0xf]  ;;  %v7931_v19 = vld [vmem:[%s10844_s8 + $0x52c] sm:$0xf0] }
 0x34d   :  { %4980 = vmatpush.bf16.msra.mxu0 %v6524_v23  ;;  %4993 = vmatpush.bf16.msra.mxu1 %v6528_v24  ;;  %v3261_v23 = vperm.slane %v10327_v55, 1  ;;  %v6940_v24 = vor.u32 %v7930_v12, %v6939_v11  ;;  %v6948_v26 = vor.u32 %v7931_v19, %v6947_v18  ;;  %v7777_v11 = vld [vmem:[%s10844_s8 + $0x64] sm:$0xf]  ;;  %v6397_v12 = vld [vmem:[%s10844_s8 + $0xe8] sm:$0xf0] }
 0x34e   :  { %v6403_v18 = vld [vmem:[%s10844_s8 + $0x68] sm:$0xf]  ;;  %v7795_v19 = vld [vmem:[%s10844_s8 + $0xec] sm:$0xf0] }
 0x350   :  { %4955 = vmatpush.bf16.msra.mxu2 %v6380_v34  ;;  %4968 = vmatpush.bf16.msra.mxu3 %v6384_v35  ;;  %v4723_v9 = vpop.f32.mrf.mxu0  ;;  %v4736_v10 = vpop.f32.mrf.mxu1  ;;  %v6811_v34 = vld [vmem:[%s10844_s8 + $0x398] sm:$0xf] }
 0x351   :  { %4981 = vmatpush.bf16.msra.mxu0 %v6388_v39  ;;  %4994 = vmatpush.bf16.msra.mxu1 %v6392_v40  ;;  %v4724_v15 = vadd.f32 %v4723_v9, %v3262_v2  ;;  %v4737_v16 = vadd.f32 %v4736_v10, %v3263_v3  ;;  %v6813_v39 = vld [vmem:[%s10844_s8 + $0x420] sm:$0xf0]  ;;  %v6667_v40 = vld [vmem:[%s10844_s8 + $0x280] sm:$0xf]  ;;  %v6539_v3 = vld [vmem:[%s10844_s8 + $0x178] sm:$0xf] }
 0x352   :  { %v6816_v50 = vor.u32 %v7880_v38, %v6813_v39  ;;  %v6395_v9 = vld [vmem:[%s10844_s8 + $0x60] sm:$0xf]  ;;  %v7794_v10 = vld [vmem:[%s10844_s8 + $0xe4] sm:$0xf0] }
 0x353   :  { %7447 = vmatmul.msk.bf16.vlgmr.msra.gmra.mxu2 %vm9466_vm5, %v9470_v28  ;;  %7450 = vmatmul.msk.bf16.vlgmr.msra.gmra.mxu3 %vm9466_vm5, %v9470_v28  ;;  %5132 = vst [vmem:[#allocation3 + $0x10] sm:$0xff] %v4724_v15  ;;  %v6540_v15 = vor.u32 %v7829_v4, %v6539_v3  ;;  %v7099_v3 = vld [vmem:[%s10844_s8 + $0x5c8] sm:$0xf] }
 0x354   :  { %5000 = vmatpush.bf16.msrb.mxu2 %v7348_v41  ;;  %5013 = vmatpush.bf16.msrb.mxu3 %v7352_v42  ;;  %5133 = vst [vmem:[#allocation3 + $0x18] sm:$0xff] %v4737_v16  ;;  %v6804_v41 = vor.u32 %v7896_v54, %v6803_v53  ;;  %v6808_v42 = vor.u32 %v7879_v32, %v6805_v33  ;;  %v8034_v53 = vld [vmem:[%s10844_s8 + $0x864] sm:$0xf0]  ;;  %v8017_v54 = vld [vmem:[%s10844_s8 + $0x7e4] sm:$0xf] }
 0x355   :  { %5026 = vmatpush.bf16.msrb.mxu0 %v7356_v48  ;;  %5039 = vmatpush.bf16.msrb.mxu1 %v7360_v49  ;;  %v4697_v30 = vpop.f32.mrf.mxu2  ;;  %v4710_v31 = vpop.f32.mrf.mxu3  ;;  %v7845_v48 = vld [vmem:[%s10844_s8 + $0x284] sm:$0xf]  ;;  %v6812_v49 = vor.u32 %v7897_v37, %v6811_v34  ;;  %v8035_v32 = vld [vmem:[%s10844_s8 + $0x86c] sm:$0xf0]  ;;  %v6396_v33 = vor.u32 %v7794_v10, %v6395_v9  ;;  %v6400_v34 = vor.u32 %v7777_v11, %v6397_v12  ;;  %v10559_v4 = vld [vmem:[%s10845_s9 + $0x8] sm:$0xff] }
 0x356   :  { %7453 = vmatmul.msk.bf16.vlgmr.msra.gmra.mxu0 %vm9466_vm5, %v9470_v28  ;;  %7456 = vmatmul.msk.bf16.vlgmr.msra.gmra.mxu1 %vm9466_vm5, %v9470_v28  ;;  %v4698_v35 = vadd.f32 %v4697_v30, %v3260_v22  ;;  %v4711_v36 = vadd.f32 %v4710_v31, %v3261_v23  ;;  %v6672_v59 = vor.u32 %v7845_v48, %v6669_v51  ;;  %v3265_v30 = vperm.slane %v10327_v55, 5  ;;  %v7371_v31 = vld [vmem:[%s10844_s8 + $0x7e8] sm:$0xf]  ;;  %v7983_v48 = vld [vmem:[%s10844_s8 + $0x6d4] sm:$0xf] }
 0x357   :  { %v7229_v51 = vld [vmem:[%s10844_s8 + $0x758] sm:$0xf0]  ;;  %v6955_v10 = vld [vmem:[%s10844_s8 + $0x4b0] sm:$0xf] }
 0x358   :  { %5001 = vmatpush.bf16.msrb.mxu2 %v7212_v57  ;;  %5014 = vmatpush.bf16.msrb.mxu3 %v7216_v58  ;;  %5130 = vst [vmem:[#allocation3] sm:$0xff] %v4698_v35  ;;  %v4725_v43 = vpop.f32.mrf.mxu0  ;;  %v4738_v44 = vpop.f32.mrf.mxu1  ;;  %v6531_v57 = vld [vmem:[%s10844_s8 + $0x170] sm:$0xf]  ;;  %v6668_v58 = vor.u32 %v7862_v46, %v6667_v40  ;;  %v8018_v35 = vld [vmem:[%s10844_s8 + $0x7ec] sm:$0xf] }
 0x359   :  { %5027 = vmatpush.bf16.msrb.mxu0 %v7220_v62  ;;  %5040 = vmatpush.bf16.msrb.mxu1 %v7224_v63  ;;  %5131 = vst [vmem:[#allocation3 + $0x8] sm:$0xff] %v4711_v36  ;;  %v6533_v62 = vld [vmem:[%s10844_s8 + $0x1f8] sm:$0xf0]  ;;  %v6676_v63 = vor.u32 %v7863_v45, %v6675_v52  ;;  %v6532_v13 = vor.u32 %v7828_v60, %v6531_v57  ;;  %v7227_v44 = vld [vmem:[%s10844_s8 + $0x6d0] sm:$0xf] }
 0x35a   :  { %v6404_v36 = vor.u32 %v7795_v19, %v6403_v18  ;;  %v8000_v46 = vld [vmem:[%s10844_s8 + $0x754] sm:$0xf0]  ;;  %v8001_v45 = vld [vmem:[%s10844_s8 + $0x75c] sm:$0xf0]  ;;  %v7984_v57 = vld [vmem:[%s10844_s8 + $0x6dc] sm:$0xf]  ;;  %v7232_v60 = vor.u32 %v7983_v48, %v7229_v51 }
 0x35b   :  { %v7235_v52 = vld [vmem:[%s10844_s8 + $0x6d8] sm:$0xf]  ;;  %v6957_v19 = vld [vmem:[%s10844_s8 + $0x538] sm:$0xf0]  ;;  %v7847_v51 = vld [vmem:[%s10844_s8 + $0x294] sm:$0xf] }
 0x35c   :  { %5002 = vmatpush.bf16.msrb.mxu2 %v7076_v6  ;;  %5015 = vmatpush.bf16.msrb.mxu3 %v7080_v7  ;;  %v3267_v6 = vperm.slane %v10327_v55, 7  ;;  %v7812_v7 = vld [vmem:[%s10844_s8 + $0x17c] sm:$0xf] }
 0x35d   :  { %5028 = vmatpush.bf16.msrb.mxu0 %v7084_v8  ;;  %5041 = vmatpush.bf16.msrb.mxu1 %v7088_v14  ;;  %v4699_v1 = vpop.f32.mrf.mxu2  ;;  %v4712_v2 = vpop.f32.mrf.mxu3  ;;  %v6541_v8 = vld [vmem:[%s10844_s8 + $0x200] sm:$0xf0]  ;;  %v6536_v14 = vor.u32 %v7811_v61, %v6533_v62  ;;  %v7091_v61 = vld [vmem:[%s10844_s8 + $0x5c0] sm:$0xf]  ;;  %v7966_v62 = vld [vmem:[%s10844_s8 + $0x644] sm:$0xf0] }
 0x35e   :  { %v6544_v21 = vor.u32 %v7812_v7, %v6541_v8  ;;  %v7093_v2 = vld [vmem:[%s10844_s8 + $0x648] sm:$0xf0]  ;;  %v7101_v7 = vld [vmem:[%s10844_s8 + $0x650] sm:$0xf0]  ;;  %v7092_v11 = vor.u32 %v7966_v62, %v7091_v61 }
 0x360   :  { %5003 = vmatpush.bf16.msrb.mxu2 %v6940_v24  ;;  %5016 = vmatpush.bf16.msrb.mxu3 %v6944_v25  ;;  %v4775_v16 = vpop.f32.mrf.mxu0  ;;  %v4788_v17 = vpop.f32.mrf.mxu1  ;;  %v6405_v24 = vld [vmem:[%s10844_s8 + $0xf0] sm:$0xf0]  ;;  %v7363_v25 = vld [vmem:[%s10844_s8 + $0x7e0] sm:$0xf] }
 0x361   :  { %5029 = vmatpush.bf16.msrb.mxu0 %v6948_v26  ;;  %5042 = vmatpush.bf16.msrb.mxu1 %v6952_v29  ;;  %v4776_v22 = vadd.f32 %v4775_v16, %v3266_v5  ;;  %v4789_v23 = vadd.f32 %v4788_v17, %v3267_v6  ;;  %v7365_v26 = vld [vmem:[%s10844_s8 + $0x868] sm:$0xf0]  ;;  %v3264_v29 = vperm.slane %v10327_v55, 4  ;;  %v7373_v55 = vld [vmem:[%s10844_s8 + $0x870] sm:$0xf0]  ;;  %v6408_v37 = vor.u32 %v7778_v20, %v6405_v24 }
 0x362   :  { %v7364_v40 = vor.u32 %v8034_v53, %v7363_v25  ;;  %v7967_v5 = vld [vmem:[%s10844_s8 + $0x64c] sm:$0xf0]  ;;  %v7950_v6 = vld [vmem:[%s10844_s8 + $0x5cc] sm:$0xf]  ;;  %v7915_v16 = vld [vmem:[%s10844_s8 + $0x4b4] sm:$0xf] }
 0x363   :  { %5136 = vst [vmem:[#allocation3 + $0x30] sm:$0xff] %v4776_v22  ;;  %v7100_v17 = vor.u32 %v7967_v5, %v7099_v3  ;;  %v7104_v18 = vor.u32 %v7950_v6, %v7101_v7  ;;  %v6963_v20 = vld [vmem:[%s10844_s8 + $0x4b8] sm:$0xf]  ;;  %v7916_v22 = vld [vmem:[%s10844_s8 + $0x4bc] sm:$0xf] }
 0x364   :  { %5004 = vmatpush.bf16.msrb.mxu2 %v6804_v41  ;;  %5017 = vmatpush.bf16.msrb.mxu3 %v6808_v42  ;;  %5137 = vst [vmem:[#allocation3 + $0x38] sm:$0xff] %v4789_v23  ;;  %v7368_v41 = vor.u32 %v8017_v54, %v7365_v26  ;;  %v6965_v23 = vld [vmem:[%s10844_s8 + $0x540] sm:$0xf0]  ;;  %v6960_v54 = vor.u32 %v7915_v16, %v6957_v19  ;;  %v6549_v6 = vld [vmem:[%s10844_s8 + $0x208] sm:$0xf0] }
 0x365   :  { %5030 = vmatpush.bf16.msrb.mxu0 %v6812_v49  ;;  %5043 = vmatpush.bf16.msrb.mxu1 %v6816_v50  ;;  %v4749_v38 = vpop.f32.mrf.mxu2  ;;  %v4762_v39 = vpop.f32.mrf.mxu3  ;;  %v7372_v49 = vor.u32 %v8035_v32, %v7371_v31  ;;  %v7376_v50 = vor.u32 %v8018_v35, %v7373_v55  ;;  %v7881_v31 = vld [vmem:[%s10844_s8 + $0x3a4] sm:$0xf]  ;;  %v6821_v35 = vld [vmem:[%s10844_s8 + $0x428] sm:$0xf0]  ;;  %v6827_v55 = vld [vmem:[%s10844_s8 + $0x3a8] sm:$0xf] }
 0x366   :  { %v4750_v42 = vadd.f32 %v4749_v38, %v3264_v29  ;;  %v4763_v43 = vadd.f32 %v4762_v39, %v3265_v30  ;;  %v6819_v29 = vld [vmem:[%s10844_s8 + $0x3a0] sm:$0xf]  ;;  %v7898_v30 = vld [vmem:[%s10844_s8 + $0x424] sm:$0xf0]  ;;  %v6829_v38 = vld [vmem:[%s10844_s8 + $0x430] sm:$0xf0] }
 0x367   :  { %v3268_v39 = vperm.slane %v10559_v4, 0  ;;  %v6555_v7 = vld [vmem:[%s10844_s8 + $0x188] sm:$0xf] }
 0x368   :  { %5005 = vmatpush.bf16.msrb.mxu2 %v6668_v58  ;;  %5018 = vmatpush.bf16.msrb.mxu3 %v6672_v59  ;;  %5134 = vst [vmem:[#allocation3 + $0x20] sm:$0xff] %v4750_v42  ;;  %v4777_v47 = vpop.f32.mrf.mxu0  ;;  %v4790_v56 = vpop.f32.mrf.mxu1  ;;  %v7237_v58 = vld [vmem:[%s10844_s8 + $0x760] sm:$0xf0]  ;;  %v7228_v59 = vor.u32 %v8000_v46, %v7227_v44  ;;  %v6824_v42 = vor.u32 %v7881_v31, %v6821_v35  ;;  %v7864_v44 = vld [vmem:[%s10844_s8 + $0x314] sm:$0xf0] }
 0x369   :  { %5031 = vmatpush.bf16.msrb.mxu0 %v6676_v63  ;;  %5044 = vmatpush.bf16.msrb.mxu1 %v6680_v0  ;;  %5135 = vst [vmem:[#allocation3 + $0x28] sm:$0xff] %v4763_v43  ;;  %v7949_v63 = vld [vmem:[%s10844_s8 + $0x5c4] sm:$0xf]  ;;  %v7236_v0 = vor.u32 %v8001_v45, %v7235_v52  ;;  %v7240_v1 = vor.u32 %v7984_v57, %v7237_v58  ;;  %v6683_v43 = vld [vmem:[%s10844_s8 + $0x290] sm:$0xf] }
 0x36a   :  { %v7096_v12 = vor.u32 %v7949_v63, %v7093_v2  ;;  %v6685_v52 = vld [vmem:[%s10844_s8 + $0x318] sm:$0xf0]  ;;  %v6691_v45 = vld [vmem:[%s10844_s8 + $0x298] sm:$0xf]  ;;  %v7865_v57 = vld [vmem:[%s10844_s8 + $0x31c] sm:$0xf0]  ;;  %v6684_v63 = vor.u32 %v7864_v44, %v6683_v43 }
 0x36b   :  { %v7848_v58 = vld [vmem:[%s10844_s8 + $0x29c] sm:$0xf]  ;;  %v7813_v2 = vld [vmem:[%s10844_s8 + $0x184] sm:$0xf]  ;;  %v6692_v3 = vor.u32 %v7865_v57, %v6691_v45  ;;  %v7243_v35 = vld [vmem:[%s10844_s8 + $0x6e0] sm:$0xf] }
 0x36c   :  { %5006 = vmatpush.bf16.msrb.mxu2 %v6532_v13  ;;  %5019 = vmatpush.bf16.msrb.mxu3 %v6536_v14  ;;  %v3270_v13 = vperm.slane %v10559_v4, 2  ;;  %v3271_v14 = vperm.slane %v10559_v4, 3  ;;  %v7109_v43 = vld [vmem:[%s10844_s8 + $0x658] sm:$0xf0]  ;;  %v6973_v45 = vld [vmem:[%s10844_s8 + $0x548] sm:$0xf0] }
 0x36d   :  { %5032 = vmatpush.bf16.msrb.mxu0 %v6540_v15  ;;  %5045 = vmatpush.bf16.msrb.mxu1 %v6544_v21  ;;  %v4751_v8 = vpop.f32.mrf.mxu2  ;;  %v4764_v9 = vpop.f32.mrf.mxu3  ;;  %v7932_v15 = vld [vmem:[%s10844_s8 + $0x534] sm:$0xf0]  ;;  %v7933_v21 = vld [vmem:[%s10844_s8 + $0x53c] sm:$0xf0] }
 0x36e   :  { %v6956_v53 = vor.u32 %v7932_v15, %v6955_v10  ;;  %v6964_v26 = vor.u32 %v7933_v21, %v6963_v20  ;;  %v7831_v8 = vld [vmem:[%s10844_s8 + $0x20c] sm:$0xf0]  ;;  %v7814_v9 = vld [vmem:[%s10844_s8 + $0x18c] sm:$0xf]  ;;  %v6557_v10 = vld [vmem:[%s10844_s8 + $0x210] sm:$0xf0] }
 0x36f   :  { %v7779_v15 = vld [vmem:[%s10844_s8 + $0x74] sm:$0xf]  ;;  %v6556_v16 = vor.u32 %v7831_v8, %v6555_v7  ;;  %v6413_v20 = vld [vmem:[%s10844_s8 + $0xf8] sm:$0xf0]  ;;  %v6419_v21 = vld [vmem:[%s10844_s8 + $0x78] sm:$0xf] }
 0x370   :  { %5007 = vmatpush.bf16.msrb.mxu2 %v6396_v33  ;;  %5020 = vmatpush.bf16.msrb.mxu3 %v6400_v34  ;;  %v6968_v34 = vor.u32 %v7916_v22, %v6965_v23  ;;  %v7797_v22 = vld [vmem:[%s10844_s8 + $0xfc] sm:$0xf0]  ;;  %v7780_v23 = vld [vmem:[%s10844_s8 + $0x7c] sm:$0xf] }
 0x371   :  { %5033 = vmatpush.bf16.msrb.mxu0 %v6404_v36  ;;  %5046 = vmatpush.bf16.msrb.mxu1 %v6408_v37  ;;  %v7899_v36 = vld [vmem:[%s10844_s8 + $0x42c] sm:$0xf0]  ;;  %v7882_v37 = vld [vmem:[%s10844_s8 + $0x3ac] sm:$0xf]  ;;  %v6420_v31 = vor.u32 %v7797_v22, %v6419_v21 }
 0x372   :  { %v6828_v46 = vor.u32 %v7899_v36, %v6827_v55  ;;  %v6832_v48 = vor.u32 %v7882_v37, %v6829_v38  ;;  %v8002_v55 = vld [vmem:[%s10844_s8 + $0x764] sm:$0xf0]  ;;  %v7985_v36 = vld [vmem:[%s10844_s8 + $0x6e4] sm:$0xf]  ;;  %v7245_v37 = vld [vmem:[%s10844_s8 + $0x768] sm:$0xf0] }
 0x373   :  { %7459 = vmatmul.msk.bf16.vlgmr.msrb.gmra.mxu2 %vm9466_vm5, %v9470_v28  ;;  %7462 = vmatmul.msk.bf16.vlgmr.msrb.gmra.mxu3 %vm9466_vm5, %v9470_v28  ;;  %v4827_v24 = vpop.f32.mrf.mxu0  ;;  %v4840_v25 = vpop.f32.mrf.mxu1  ;;  %v7244_v38 = vor.u32 %v8002_v55, %v7243_v35 }
 0x374   :  { %5052 = vmatpush.bf16.msra.mxu2 %v7364_v40  ;;  %5065 = vmatpush.bf16.msra.mxu3 %v7368_v41  ;;  %v4828_v32 = vadd.f32 %v4827_v24, %v3270_v13  ;;  %v4841_v33 = vadd.f32 %v4840_v25, %v3271_v14  ;;  %v3269_v40 = vperm.slane %v10559_v4, 1  ;;  %v6820_v41 = vor.u32 %v7898_v30, %v6819_v29  ;;  %v6411_v13 = vld [vmem:[%s10844_s8 + $0x70] sm:$0xf]  ;;  %v7796_v14 = vld [vmem:[%s10844_s8 + $0xf4] sm:$0xf0] }
 0x375   :  { %5078 = vmatpush.bf16.msra.mxu0 %v7372_v49  ;;  %5091 = vmatpush.bf16.msra.mxu1 %v7376_v50  ;;  %v6421_v24 = vld [vmem:[%s10844_s8 + $0x100] sm:$0xf0]  ;;  %v7379_v25 = vld [vmem:[%s10844_s8 + $0x7f0] sm:$0xf]  ;;  %v6412_v29 = vor.u32 %v7796_v14, %v6411_v13  ;;  %v6416_v30 = vor.u32 %v7779_v15, %v6413_v20  ;;  %v6565_v20 = vld [vmem:[%s10844_s8 + $0x218] sm:$0xf0] }
 0x376   :  { %7465 = vmatmul.msk.bf16.vlgmr.msrb.gmra.mxu0 %vm9466_vm5, %v9470_v28  ;;  %7468 = vmatmul.msk.bf16.vlgmr.msrb.gmra.mxu1 %vm9466_vm5, %v9470_v28  ;;  %5140 = vst [vmem:[#allocation3 + $0x50] sm:$0xff] %v4828_v32  ;;  %v4801_v49 = vpop.f32.mrf.mxu2  ;;  %v4814_v50 = vpop.f32.mrf.mxu3  ;;  %v6424_v32 = vor.u32 %v7780_v23, %v6421_v24  ;;  %v6427_v23 = vld [vmem:[%s10844_s8 + $0x80] sm:$0xf] }
 0x377   :  { %5141 = vst [vmem:[#allocation3 + $0x58] sm:$0xff] %v4841_v33  ;;  %v4802_v47 = vadd.f32 %v4801_v49, %v3268_v39  ;;  %v4815_v56 = vadd.f32 %v4814_v50, %v3269_v40  ;;  %v7248_v39 = vor.u32 %v7985_v36, %v7245_v37  ;;  %v7107_v40 = vld [vmem:[%s10844_s8 + $0x5d0] sm:$0xf]  ;;  %v7934_v49 = vld [vmem:[%s10844_s8 + $0x544] sm:$0xf0]  ;;  %v3274_v50 = vperm.slane %v10559_v4, 6 }
 0x378   :  { %5053 = vmatpush.bf16.msra.mxu2 %v7228_v59  ;;  %5066 = vmatpush.bf16.msra.mxu3 %v7232_v60  ;;  %v6693_v59 = vld [vmem:[%s10844_s8 + $0x320] sm:$0xf0]  ;;  %v6547_v60 = vld [vmem:[%s10844_s8 + $0x180] sm:$0xf] }
 0x379   :  { %5079 = vmatpush.bf16.msra.mxu0 %v7236_v0  ;;  %5092 = vmatpush.bf16.msra.mxu1 %v7240_v1  ;;  %5138 = vst [vmem:[#allocation3 + $0x40] sm:$0xff] %v4802_v47  ;;  %v6688_v0 = vor.u32 %v7847_v51, %v6685_v52  ;;  %v7830_v1 = vld [vmem:[%s10844_s8 + $0x204] sm:$0xf0]  ;;  %v6696_v5 = vor.u32 %v7848_v58, %v6693_v59  ;;  %v3275_v51 = vperm.slane %v10559_v4, 7  ;;  %v7917_v52 = vld [vmem:[%s10844_s8 + $0x4c4] sm:$0xf] }
 0x37a   :  { %5139 = vst [vmem:[#allocation3 + $0x48] sm:$0xff] %v4815_v56  ;;  %v6976_v58 = vor.u32 %v7917_v52, %v6973_v45  ;;  %v6835_v59 = vld [vmem:[%s10844_s8 + $0x3b0] sm:$0xf] }
 0x37b   :  { %v4829_v61 = vpop.f32.mrf.mxu0  ;;  %v4842_v62 = vpop.f32.mrf.mxu1 }
 0x37c   :  { %5054 = vmatpush.bf16.msra.mxu2 %v7092_v11  ;;  %5067 = vmatpush.bf16.msra.mxu3 %v7096_v12  ;;  %v6548_v11 = vor.u32 %v7830_v1, %v6547_v60  ;;  %v6552_v12 = vor.u32 %v7813_v2, %v6549_v6  ;;  %v7900_v62 = vld [vmem:[%s10844_s8 + $0x434] sm:$0xf0]  ;;  %v3272_v1 = vperm.slane %v10559_v4, 4  ;;  %v3273_v2 = vperm.slane %v10559_v4, 5  ;;  %v6699_v6 = vld [vmem:[%s10844_s8 + $0x2a0] sm:$0xf] }
 0x37d   :  { %5080 = vmatpush.bf16.msra.mxu0 %v7100_v17  ;;  %5093 = vmatpush.bf16.msra.mxu1 %v7104_v18  ;;  %v6560_v17 = vor.u32 %v7814_v9, %v6557_v10  ;;  %v7866_v9 = vld [vmem:[%s10844_s8 + $0x324] sm:$0xf0]  ;;  %v7849_v4 = vld [vmem:[%s10844_s8 + $0x2a4] sm:$0xf]  ;;  %v6701_v10 = vld [vmem:[%s10844_s8 + $0x328] sm:$0xf0] }
 0x37e   :  { %v4803_v18 = vpop.f32.mrf.mxu2  ;;  %v4816_v19 = vpop.f32.mrf.mxu3  ;;  %v6700_v15 = vor.u32 %v7866_v9, %v6699_v6 }
 0x37f   :  { %v7832_v18 = vld [vmem:[%s10844_s8 + $0x214] sm:$0xf0]  ;;  %v7815_v19 = vld [vmem:[%s10844_s8 + $0x194] sm:$0xf] }
 0x380   :  { %5055 = vmatpush.bf16.msra.mxu2 %v6956_v53  ;;  %5068 = vmatpush.bf16.msra.mxu3 %v6960_v54  ;;  %v8036_v53 = vld [vmem:[%s10844_s8 + $0x874] sm:$0xf0]  ;;  %v8019_v54 = vld [vmem:[%s10844_s8 + $0x7f4] sm:$0xf]  ;;  %v6568_v22 = vor.u32 %v7815_v19, %v6565_v20 }
 0x381   :  { %5081 = vmatpush.bf16.msra.mxu0 %v6964_v26  ;;  %5094 = vmatpush.bf16.msra.mxu1 %v6968_v34  ;;  %v7381_v26 = vld [vmem:[%s10844_s8 + $0x878] sm:$0xf0]  ;;  %v7380_v33 = vor.u32 %v8036_v53, %v7379_v25  ;;  %v7798_v53 = vld [vmem:[%s10844_s8 + $0x104] sm:$0xf0] }
 0x382   :  { %v7384_v34 = vor.u32 %v8019_v54, %v7381_v26  ;;  %v7781_v54 = vld [vmem:[%s10844_s8 + $0x84] sm:$0xf]  ;;  %v6429_v26 = vld [vmem:[%s10844_s8 + $0x108] sm:$0xf0] }
 0x384   :  { %5056 = vmatpush.bf16.msra.mxu2 %v6820_v41  ;;  %5069 = vmatpush.bf16.msra.mxu3 %v6824_v42  ;;  %v7968_v41 = vld [vmem:[%s10844_s8 + $0x654] sm:$0xf0]  ;;  %v7951_v42 = vld [vmem:[%s10844_s8 + $0x5d4] sm:$0xf] }
 0x385   :  { %5082 = vmatpush.bf16.msra.mxu0 %v6828_v46  ;;  %5095 = vmatpush.bf16.msra.mxu1 %v6832_v48  ;;  %v7108_v44 = vor.u32 %v7968_v41, %v7107_v40  ;;  %v7112_v46 = vor.u32 %v7951_v42, %v7109_v43  ;;  %v6971_v48 = vld [vmem:[%s10844_s8 + $0x4c0] sm:$0xf] }
 0x386   :  { %v6972_v57 = vor.u32 %v7934_v49, %v6971_v48 }
 0x388   :  { %5057 = vmatpush.bf16.msra.mxu2 %v6684_v63  ;;  %5070 = vmatpush.bf16.msra.mxu3 %v6688_v0  ;;  %v7883_v63 = vld [vmem:[%s10844_s8 + $0x3b4] sm:$0xf]  ;;  %v6837_v0 = vld [vmem:[%s10844_s8 + $0x438] sm:$0xf0] }
 0x389   :  { %5083 = vmatpush.bf16.msra.mxu0 %v6692_v3  ;;  %5096 = vmatpush.bf16.msra.mxu1 %v6696_v5  ;;  %v6836_v3 = vor.u32 %v7900_v62, %v6835_v59  ;;  %v6840_v5 = vor.u32 %v7883_v63, %v6837_v0  ;;  %v3253_v0 = vld [vmem:[%s10845_s9 + $0x18] sm:$0xff] }
 0x38a   :  { %v3285_v9 = vperm.slane %v3253_v0, 1 }
 0x38c   :  { %5058 = vmatpush.bf16.msra.mxu2 %v6548_v11  ;;  %5071 = vmatpush.bf16.msra.mxu3 %v6552_v12 }
 0x38d   :  { %5084 = vmatpush.bf16.msra.mxu0 %v6556_v16  ;;  %5097 = vmatpush.bf16.msra.mxu1 %v6560_v17  ;;  %v6704_v16 = vor.u32 %v7849_v4, %v6701_v10  ;;  %v6563_v17 = vld [vmem:[%s10844_s8 + $0x190] sm:$0xf] }
 0x38e   :  { %v6564_v21 = vor.u32 %v7832_v18, %v6563_v17  ;;  %v3290_v17 = vperm.slane %v3253_v0, 6  ;;  %v3291_v18 = vperm.slane %v3253_v0, 7 }
 0x390   :  { %5059 = vmatpush.bf16.msra.mxu2 %v6412_v29  ;;  %5072 = vmatpush.bf16.msra.mxu3 %v6416_v30  ;;  %v6428_v29 = vor.u32 %v7798_v53, %v6427_v23  ;;  %v6432_v30 = vor.u32 %v7781_v54, %v6429_v26  ;;  %v3288_v23 = vperm.slane %v3253_v0, 4 }
 0x391   :  { %5085 = vmatpush.bf16.msra.mxu0 %v6420_v31  ;;  %5098 = vmatpush.bf16.msra.mxu1 %v6424_v32  ;;  %v3252_v31 = vld [vmem:[%s10845_s9 + $0x10] sm:$0xff] }
 0x392   :  { %v3278_v32 = vperm.slane %v3252_v31, 2  ;;  %v3276_v37 = vperm.slane %v3252_v31, 0  ;;  %v3283_v48 = vperm.slane %v3252_v31, 7  ;;  %v3280_v45 = vperm.slane %v3252_v31, 4 }
 0x393   :  { %7471 = vmatmul.msk.bf16.vlgmr.msra.gmra.mxu2 %vm9466_vm5, %v9470_v28  ;;  %7474 = vmatmul.msk.bf16.vlgmr.msra.gmra.mxu3 %vm9466_vm5, %v9470_v28  ;;  %v4879_v47 = vpop.f32.mrf.mxu0  ;;  %v4892_v56 = vpop.f32.mrf.mxu1 }
 0x394   :  { %5104 = vmatpush.bf16.msrb.mxu2 %v7380_v33  ;;  %5117 = vmatpush.bf16.msrb.mxu3 %v7384_v34  ;;  %v4880_v60 = vadd.f32 %v4879_v47, %v3274_v50  ;;  %v4893_v61 = vadd.f32 %v4892_v56, %v3275_v51  ;;  %v3279_v33 = vperm.slane %v3252_v31, 3  ;;  %v3281_v47 = vperm.slane %v3252_v31, 5 }
 0x395   :  { %7477 = vmatmul.msk.bf16.vlgmr.msra.gmra.mxu0 %vm9466_vm5, %v9470_v28  ;;  %7480 = vmatmul.msk.bf16.vlgmr.msra.gmra.mxu1 %vm9466_vm5, %v9470_v28 }
 0x396   :  { %5144 = vst [vmem:[#allocation3 + $0x70] sm:$0xff] %v4880_v60  ;;  %v4853_v7 = vpop.f32.mrf.mxu2  ;;  %v4866_v8 = vpop.f32.mrf.mxu3 }
 0x397   :  { %5145 = vst [vmem:[#allocation3 + $0x78] sm:$0xff] %v4893_v61  ;;  %v4854_v11 = vadd.f32 %v4853_v7, %v3272_v1  ;;  %v4867_v12 = vadd.f32 %v4866_v8, %v3273_v2  ;;  %v3286_v1 = vperm.slane %v3253_v0, 2  ;;  %v3287_v2 = vperm.slane %v3253_v0, 3 }
 0x398   :  { %5105 = vmatpush.bf16.msrb.mxu2 %v7244_v38  ;;  %5118 = vmatpush.bf16.msrb.mxu3 %v7248_v39  ;;  %v3277_v38 = vperm.slane %v3252_v31, 1  ;;  %v3284_v8 = vperm.slane %v3253_v0, 0 }
 0x399   :  { %5142 = vst [vmem:[#allocation3 + $0x60] sm:$0xff] %v4854_v11 }
 0x39a   :  { %5143 = vst [vmem:[#allocation3 + $0x68] sm:$0xff] %v4867_v12 }
 0x39b   :  { %v4881_v13 = vpop.f32.mrf.mxu0  ;;  %v4894_v14 = vpop.f32.mrf.mxu1 }
 0x39c   :  { %5106 = vmatpush.bf16.msrb.mxu2 %v7108_v44  ;;  %5119 = vmatpush.bf16.msrb.mxu3 %v7112_v46  ;;  %v3282_v46 = vperm.slane %v3252_v31, 6 }
 0x39e   :  { %v4855_v24 = vpop.f32.mrf.mxu2  ;;  %v4868_v25 = vpop.f32.mrf.mxu3 }
 0x39f   :  { %v3289_v24 = vperm.slane %v3253_v0, 5 }
 0x3a0   :  { %5107 = vmatpush.bf16.msrb.mxu2 %v6972_v57  ;;  %5120 = vmatpush.bf16.msrb.mxu3 %v6976_v58 }
 0x3a4   :  { %5108 = vmatpush.bf16.msrb.mxu2 %v6836_v3  ;;  %5121 = vmatpush.bf16.msrb.mxu3 %v6840_v5 }
 0x3a8   :  { %5109 = vmatpush.bf16.msrb.mxu2 %v6700_v15  ;;  %5122 = vmatpush.bf16.msrb.mxu3 %v6704_v16 }
 0x3ac   :  { %5110 = vmatpush.bf16.msrb.mxu2 %v6564_v21  ;;  %5123 = vmatpush.bf16.msrb.mxu3 %v6568_v22 }
 0x3b0   :  { %5111 = vmatpush.bf16.msrb.mxu2 %v6428_v29  ;;  %5124 = vmatpush.bf16.msrb.mxu3 %v6432_v30 }
 0x3b3   :  { %7483 = vmatmul.msk.bf16.vlgmr.msrb.gmra.mxu2 %vm9466_vm5, %v9470_v28  ;;  %7486 = vmatmul.msk.bf16.vlgmr.msrb.gmra.mxu3 %vm9466_vm5, %v9470_v28  ;;  %v4931_v34 = vpop.f32.mrf.mxu0  ;;  %v4944_v35 = vpop.f32.mrf.mxu1 }
 0x3b4   :  { %v4932_v55 = vadd.f32 %v4931_v34, %v3278_v32  ;;  %v4945_v36 = vadd.f32 %v4944_v35, %v3279_v33  ;;  %v3254_v33 = vld [vmem:[%s10845_s9 + $0x20] sm:$0x3] }
 0x3b5   :  { %v3292_v34 = vperm.slane %v3254_v33, 0  ;;  %v3293_v35 = vperm.slane %v3254_v33, 1 }
 0x3b6   :  { %5148 = vst [vmem:[#allocation3 + $0x90] sm:$0xff] %v4932_v55  ;;  %v4905_v39 = vpop.f32.mrf.mxu2  ;;  %v4918_v40 = vpop.f32.mrf.mxu3 }
 0x3b7   :  { %5149 = vst [vmem:[#allocation3 + $0x98] sm:$0xff] %v4945_v36  ;;  %v4906_v41 = vadd.f32 %v4905_v39, %v3276_v37  ;;  %v4919_v42 = vadd.f32 %v4918_v40, %v3277_v38 }
 0x3b9   :  { %5146 = vst [vmem:[#allocation3 + $0x80] sm:$0xff] %v4906_v41 }
 0x3ba   :  { %5147 = vst [vmem:[#allocation3 + $0x88] sm:$0xff] %v4919_v42 }
 0x3bb   :  { %v4933_v27 = vpop.f32.mrf.mxu0  ;;  %v4946_v28 = vpop.f32.mrf.mxu1 }
 0x3be   :  { %v4907_v43 = vpop.f32.mrf.mxu2  ;;  %v4920_v44 = vpop.f32.mrf.mxu3 }
 0x3d3   :  { %v4983_v49 = vpop.f32.mrf.mxu0  ;;  %v4996_v50 = vpop.f32.mrf.mxu1 }
 0x3d4   :  { %v4984_v51 = vadd.f32 %v4983_v49, %v3282_v46  ;;  %v4997_v52 = vadd.f32 %v4996_v50, %v3283_v48 }
 0x3d6   :  { %5152 = vst [vmem:[#allocation3 + $0xb0] sm:$0xff] %v4984_v51  ;;  %v4957_v56 = vpop.f32.mrf.mxu2  ;;  %v4970_v57 = vpop.f32.mrf.mxu3 }
 0x3d7   :  { %5153 = vst [vmem:[#allocation3 + $0xb8] sm:$0xff] %v4997_v52  ;;  %v4958_v58 = vadd.f32 %v4957_v56, %v3280_v45  ;;  %v4971_v59 = vadd.f32 %v4970_v57, %v3281_v47 }
 0x3d9   :  { %5150 = vst [vmem:[#allocation3 + $0xa0] sm:$0xff] %v4958_v58 }
 0x3da   :  { %5151 = vst [vmem:[#allocation3 + $0xa8] sm:$0xff] %v4971_v59 }
 0x3db   :  { %v4985_v60 = vpop.f32.mrf.mxu0  ;;  %v4998_v61 = vpop.f32.mrf.mxu1 }
 0x3de   :  { %v4959_v62 = vpop.f32.mrf.mxu2  ;;  %v4972_v63 = vpop.f32.mrf.mxu3 }
 0x3f3   :  { %v5035_v3 = vpop.f32.mrf.mxu0  ;;  %v5048_v5 = vpop.f32.mrf.mxu1 }
 0x3f4   :  { %v5036_v6 = vadd.f32 %v5035_v3, %v3286_v1  ;;  %v5049_v7 = vadd.f32 %v5048_v5, %v3287_v2 }
 0x3f6   :  { %5156 = vst [vmem:[#allocation3 + $0xd0] sm:$0xff] %v5036_v6  ;;  %v5009_v4 = vpop.f32.mrf.mxu2  ;;  %v5022_v10 = vpop.f32.mrf.mxu3 }
 0x3f7   :  { %5157 = vst [vmem:[#allocation3 + $0xd8] sm:$0xff] %v5049_v7  ;;  %v5010_v11 = vadd.f32 %v5009_v4, %v3284_v8  ;;  %v5023_v12 = vadd.f32 %v5022_v10, %v3285_v9 }
 0x3f9   :  { %5154 = vst [vmem:[#allocation3 + $0xc0] sm:$0xff] %v5010_v11 }
 0x3fa   :  { %5155 = vst [vmem:[#allocation3 + $0xc8] sm:$0xff] %v5023_v12 }
 0x3fb   :  { %v5037_v13 = vpop.f32.mrf.mxu0  ;;  %v5050_v14 = vpop.f32.mrf.mxu1 }
 0x3fe   :  { %v5011_v15 = vpop.f32.mrf.mxu2  ;;  %v5024_v16 = vpop.f32.mrf.mxu3 }
 0x412   :  { %v5087_v19 = vpop.f32.mrf.mxu0  ;;  %v5100_v20 = vpop.f32.mrf.mxu1 }
 0x413   :  { %v5088_v21 = vadd.f32 %v5087_v19, %v3290_v17  ;;  %v5101_v22 = vadd.f32 %v5100_v20, %v3291_v18 }
 0x415   :  { %5160 = vst [vmem:[#allocation3 + $0xf0] sm:$0xff] %v5088_v21 }
 0x416   :  { %5161 = vst [vmem:[#allocation3 + $0xf8] sm:$0xff] %v5101_v22  ;;  %v5061_v25 = vpop.f32.mrf.mxu2  ;;  %v5074_v53 = vpop.f32.mrf.mxu3 }
 0x417   :  { %v5062_v54 = vadd.f32 %v5061_v25, %v3288_v23  ;;  %v5075_v26 = vadd.f32 %v5074_v53, %v3289_v24 }
 0x419   :  { %5158 = vst [vmem:[#allocation3 + $0xe0] sm:$0xff] %v5062_v54 }
 0x41a   :  { %v5089_v29 = vpop.f32.mrf.mxu0  ;;  %v5102_v30 = vpop.f32.mrf.mxu1  ;;  %5159 = vst [vmem:[#allocation3 + $0xe8] sm:$0xff] %v5075_v26 }
 0x41e   :  { %v5063_v31 = vpop.f32.mrf.mxu2  ;;  %v5076_v32 = vpop.f32.mrf.mxu3 }
 0x436   :  { %v5113_v55 = vpop.f32.mrf.mxu2  ;;  %v5126_v36 = vpop.f32.mrf.mxu3 }
 0x437   :  { %v5114_v37 = vadd.f32 %v5113_v55, %v3292_v34  ;;  %v5127_v38 = vadd.f32 %v5126_v36, %v3293_v35 }
 0x439   :  { %5162 = vst [vmem:[#allocation3 + $0x100] sm:$0xff] %v5114_v37 }
 0x43a   :  { %5163 = vst [vmem:[#allocation3 + $0x108] sm:$0xff] %v5127_v38 }
 0x43b   :  { %5174 = dma.vmem_to_hbm [thread:$0]  %s5170_s20, 4352, %s5172_s1, [#allocation4]  }
 0x43e   :  { %v5115_v39 = vpop.f32.mrf.mxu2  ;;  %v5128_v40 = vpop.f32.mrf.mxu3 }
 0x43f   :  { %8071 = dma.done.wait [#allocation4], 4352  }
 0x440   :  { %8072 = vsyncadd [#allocation4], 4294962944 }
 0x441   :  { %5179 = vsyncpa [#allocation4], 1 }

</bundles_post_ra>
